<compile_context>
chip_gen: v5e
topology: v5e:2x2
jax: 0.10.0
libtpu: 0.0.40
codegen_flags: <defaults>
</compile_context>

<pallas_src>
import functools

import numpy as np

import jax
import jax.numpy as jnp
from jax import lax
from jax.experimental import pallas as pl
from jax.experimental.pallas import tpu as pltpu

_EPS = 1e-5


# -----------------------------------------------------------------------------
# Wrapper-side constant builders (selection / Toeplitz-expanded weights).
# -----------------------------------------------------------------------------
def _pad_index(idx, n, pad_type):
    """Map a (possibly out-of-range) tap index onto a source index; -1 == zero."""
    if 0 <= idx < n:
        return idx
    if pad_type == "zero":
        return -1
    if pad_type == "replicate":
        return min(max(idx, 0), n - 1)
    # 'reflect' (PyTorch ReflectionPad2d / jnp.pad mode='reflect')
    return -idx if idx < 0 else 2 * (n - 1) - idx


def _row_select(H_in, OH, K, stride, pad, pad_type):
    """S[kh, h, src] = 1 iff output row h, row-tap kh reads source row src."""
    S = np.zeros((K, OH, H_in), np.float32)
    for kh in range(K):
        for h in range(OH):
            src = _pad_index(stride * h + kh - pad, H_in, pad_type)
            if src >= 0:
                S[kh, h, src] = 1.0
    return S


def _col_onehot(W_in, OW, K, stride, pad, pad_type):
    """T[kw, w, src] = 1 iff output col w, col-tap kw reads source col src."""
    T = np.zeros((K, OW, W_in), np.float32)
    for kw in range(K):
        for w in range(OW):
            src = _pad_index(stride * w + kw - pad, W_in, pad_type)
            if src >= 0:
                T[kw, w, src] = 1.0
    return T


def _channel_onehots(OW, Cout):
    """R (OW*Cout, Cout) sums lanes per channel; RT (Cout, OW*Cout) broadcasts back."""
    R = np.zeros((OW * Cout, Cout), np.float32)
    R[np.arange(OW * Cout), np.arange(OW * Cout) % Cout] = 1.0
    return R, np.ascontiguousarray(R.T)


# -----------------------------------------------------------------------------
# Fused whole-encoder kernel (one batch element per grid step).
# -----------------------------------------------------------------------------
def _make_encoder_kernel(layer_specs, mxu_dtype):
    def kernel(*refs):
        x_ref, o_ref = refs[0], refs[-1]
        prm = refs[1:-1]

        h = x_ref[0]                       # (H, W*C) f32, lane-dense
        idx = 0
        residual = None

        for sp in layer_specs:
            S_ref = prm[idx]               # (K, OH, H_in)       0/1 row selection
            WT_ref = prm[idx + 1]          # (K, Win*Cin, OW*Cout) Toeplitz weights
            b = prm[idx + 2][...]          # (1, OW*Cout)
            idx += 3
            if sp["norm"] == "in":
                R = prm[idx][...]          # (OW*Cout, Cout)
                RT = prm[idx + 1][...]     # (Cout, OW*Cout)
                idx += 2
            elif sp["norm"] == "ln":
                g = prm[idx][...]          # (1, OW*Cout)
                be = prm[idx + 1][...]
                idx += 2

            if sp["save_res"]:
                residual = h

            K, OH, OW, Cout = sp["K"], sp["OH"], sp["OW"], sp["Cout"]
            hm = h.astype(mxu_dtype)

            # conv: sum over row taps of (row-select matmul) @ (Toeplitz weight)
            acc = None
            for kh in range(K):
                rows = jnp.dot(S_ref[kh].astype(mxu_dtype), hm,
                               preferred_element_type=jnp.float32)   # (OH, Win*Cin)
                term = jnp.dot(rows.astype(mxu_dtype),
                               WT_ref[kh].astype(mxu_dtype),
                               preferred_element_type=jnp.float32)   # (OH, OW*Cout)
                acc = term if acc is None else acc + term
            y = acc + b

            if sp["norm"] == "in":
                # nn.InstanceNorm2d(affine=False): per-channel stats, single pass.
                inv_n = 1.0 / float(OH * OW)
                s1 = jnp.dot(jnp.sum(y, axis=0, keepdims=True), R,
                             preferred_element_type=jnp.float32)      # (1, Cout)
                s2 = jnp.dot(jnp.sum(y * y, axis=0, keepdims=True), R,
                             preferred_element_type=jnp.float32)
                mu = s1 * inv_n
                var = s2 * inv_n - mu * mu
                inv = lax.rsqrt(var + _EPS)
                mu_l = jnp.dot(mu, RT, preferred_element_type=jnp.float32)
                inv_l = jnp.dot(inv, RT, preferred_element_type=jnp.float32)
                y = (y - mu_l) * inv_l
            elif sp["norm"] == "ln":
                # custom LayerNorm: per-sample stats over (C,H,W), unbiased std,
                # (y - mean) / (std + eps), per-channel affine.  Single-pass stats.
                n = float(OH * OW * Cout)
                s1 = jnp.sum(y, axis=(0, 1), keepdims=True)           # (1, 1)
                s2 = jnp.sum(y * y, axis=(0, 1), keepdims=True)
                mu = s1 / n
                var_u = jnp.maximum(s2 - n * mu * mu, 0.0) / (n - 1.0)
                std = jnp.sqrt(var_u)
                y = (y - mu) * pl.reciprocal(std + _EPS, approx=False)
                y = y * g + be

            if sp["act"] == "relu":
                y = jnp.maximum(y, 0.0)
            if sp["add_res"]:
                y = y + residual
            h = y

        o_ref[0] = h.astype(o_ref.dtype)

    return kernel


# -----------------------------------------------------------------------------
# ContentEncoder forward: one fused pallas_call.
# -----------------------------------------------------------------------------
def content_encoder_forward(x_nchw, params, *, norm, activ, pad_type,
                            mxu_dtype=jnp.float32):
    assert norm in ("in", "ln", "none"), f"norm '{norm}' not implemented"
    assert activ in ("relu", "none"), f"activation '{activ}' not implemented"
    assert pad_type in ("zero", "reflect", "replicate"), f"pad '{pad_type}' unsupported"
    # TODO(synk): 'bn'/'adain'/'grp'/'sn' norms and 'lrelu'/'prelu'/'selu'/'tanh'/
    # 'sigmoid' activations are Conv2dBlock constructor options not exercised here.

    N, Cin, H, W = x_nchw.shape

    # (w, b, gamma, beta, K, stride, pad, norm, act, save_res, add_res)
    layers = [(params["stem"][0], params["stem"][1], None, None, 7, 1, 3,
               norm, activ, False, False)]
    for (w, b) in params["down"]:
        layers.append((w, b, None, None, 4, 2, 1, norm, activ, False, False))
    for rb in params["res"]:
        layers.append((rb["w1"], rb["b1"], rb["g1"], rb["be1"], 3, 1, 1,
                       "ln", activ, True, False))
        layers.append((rb["w2"], rb["b2"], rb["g2"], rb["be2"], 3, 1, 1,
                       "ln", "none", False, True))
    if params["final"] is not None:
        w, b = params["final"]
        layers.append((w, b, None, None, 3, 1, 1, norm, activ, False, False))

    def _const_spec(a):
        zeros = (0,) * a.ndim
        return pl.BlockSpec(a.shape, lambda n: zeros)

    # Encoder input as a lane-dense 2-D (H, W*Cin) slab per sample.
    x2 = jnp.transpose(x_nchw, (0, 2, 3, 1)).reshape(N, H, W * Cin)
    args = [x2]
    in_specs = [pl.BlockSpec((1, H, W * Cin), lambda n: (n, 0, 0))]
    specs = []

    curH, curW, curC = H, W, Cin
    for (w, b, g, be, K, stride, pad, lnorm, lact, save_res, add_res) in layers:
        Cout = int(w.shape[0])
        OH = (curH + 2 * pad - K) // stride + 1
        OW = (curW + 2 * pad - K) // stride + 1

        S = jnp.asarray(_row_select(curH, OH, K, stride, pad, pad_type))
        T = jnp.asarray(_col_onehot(curW, OW, K, stride, pad, pad_type))
        w_hwio = jnp.transpose(w, (2, 3, 1, 0))                 # (K, K, Cin, Cout)
        # WT[kh, src_w*Cin + c, w*Cout + co] = sum_kw T[kw,w,src_w] * W[kh,kw,c,co]
        WT = jnp.einsum("qws,kqco->kscwo", T, w_hwio)
        WT = WT.reshape(K, curW * curC, OW * Cout)
        b_t = jnp.tile(b, OW).reshape(1, OW * Cout)

        layer_args = [S, WT, b_t]
        if lnorm == "in":
            R, RT = _channel_onehots(OW, Cout)
            layer_args += [jnp.asarray(R), jnp.asarray(RT)]
        elif lnorm == "ln":
            layer_args += [jnp.tile(g, OW).reshape(1, OW * Cout),
                           jnp.tile(be, OW).reshape(1, OW * Cout)]
        args += layer_args
        in_specs += [_const_spec(a) for a in layer_args]

        specs.append(dict(K=K, OH=OH, OW=OW, Cout=Cout, norm=lnorm, act=lact,
                          save_res=save_res, add_res=add_res))
        curH, curW, curC = OH, OW, Cout

    kernel = _make_encoder_kernel(specs, mxu_dtype)
    out = pl.pallas_call(
        kernel,
        out_shape=jax.ShapeDtypeStruct((N, curH, curW * curC), jnp.float32),
        grid=(N,),
        in_specs=in_specs,
        out_specs=pl.BlockSpec((1, curH, curW * curC), lambda n: (n, 0, 0)),
        compiler_params=pltpu.CompilerParams(
            dimension_semantics=("parallel",),          # batch split across TCs
            vmem_limit_bytes=32 * 1024 * 1024),
    )(*args)

    return jnp.transpose(out.reshape(N, curH, curW, curC), (0, 3, 1, 2))   # NCHW


# -----------------------------------------------------------------------------
# Pure-XLA reference and parameter init (for the correctness gate).
# -----------------------------------------------------------------------------
def _conv2d_block_ref(x, w, b, *, stride, padding, norm, activation, pad_type,
                      gamma=None, beta=None):
    mode = {"zero": "constant", "reflect": "reflect", "replicate": "edge"}[pad_type]
    if padding > 0:
        x = jnp.pad(x, ((0, 0), (0, 0), (padding, padding), (padding, padding)),
                    mode=mode)
    y = lax.conv_general_dilated(x, w, (stride, stride), "VALID",
                                 dimension_numbers=("NCHW", "OIHW", "NCHW"))
    y = y + b[None, :, None, None]
    if norm == "in":
        mu = y.mean(axis=(2, 3), keepdims=True)
        var = ((y - mu) ** 2).mean(axis=(2, 3), keepdims=True)
        y = (y - mu) / jnp.sqrt(var + _EPS)
    elif norm == "ln":
        n = y.shape[0]
        flat = y.reshape(n, -1)
        mu = flat.mean(axis=1).reshape(n, 1, 1, 1)
        std = flat.std(axis=1, ddof=1).reshape(n, 1, 1, 1)
        y = (y - mu) / (std + _EPS)
        y = y * gamma[None, :, None, None] + beta[None, :, None, None]
    if activation == "relu":
        y = jnp.maximum(y, 0.0)
    return y


def content_encoder_ref(x, params, *, norm, activ, pad_type):
    w, b = params["stem"]
    h = _conv2d_block_ref(x, w, b, stride=1, padding=3, norm=norm, activation=activ,
                          pad_type=pad_type)
    for (w, b) in params["down"]:
        h = _conv2d_block_ref(h, w, b, stride=2, padding=1, norm=norm,
                              activation=activ, pad_type=pad_type)
    for rb in params["res"]:
        residual = h
        h = _conv2d_block_ref(h, rb["w1"], rb["b1"], stride=1, padding=1, norm="ln",
                              activation=activ, pad_type=pad_type,
                              gamma=rb["g1"], beta=rb["be1"])
        h = _conv2d_block_ref(h, rb["w2"], rb["b2"], stride=1, padding=1, norm="ln",
                              activation="none", pad_type=pad_type,
                              gamma=rb["g2"], beta=rb["be2"])
        h = h + residual
    if params["final"] is not None:
        w, b = params["final"]
        h = _conv2d_block_ref(h, w, b, stride=1, padding=1, norm=norm,
                              activation=activ, pad_type=pad_type)
    return h


def init_content_encoder_params(key, *, n_downsample, n_res, input_dim, dim, output_dim):
    kit = iter(list(jax.random.split(key, 64)))

    def conv_init(cin, cout, k):
        bound = 1.0 / float((cin * k * k) ** 0.5)
        w = jax.random.uniform(next(kit), (cout, cin, k, k), jnp.float32, -bound, bound)
        b = jax.random.uniform(next(kit), (cout,), jnp.float32, -bound, bound)
        return w, b

    params = {"stem": conv_init(input_dim, dim, 7), "down": [], "res": []}
    d = dim
    for _ in range(n_downsample):
        params["down"].append(conv_init(d, 2 * d, 4))
        d *= 2
    for _ in range(n_res):
        w1, b1 = conv_init(d, d, 3)
        w2, b2 = conv_init(d, d, 3)
        params["res"].append(dict(
            w1=w1, b1=b1,
            g1=jax.random.uniform(next(kit), (d,), jnp.float32),
            be1=jnp.zeros((d,), jnp.float32),
            w2=w2, b2=b2,
            g2=jax.random.uniform(next(kit), (d,), jnp.float32),
            be2=jnp.zeros((d,), jnp.float32)))
    params["final"] = conv_init(d, output_dim, 3) if d != output_dim else None
    return params, d


if __name__ == "__main__":
    # ContentEncoder(n_downsample=2, n_res=2, input_dim=4, output_dim=32, dim=8,
    #                norm='in', activ='relu', pad_type='reflect')
    n_downsample, n_res = 2, 2
    input_dim, dim, output_dim = 4, 8, 32
    norm, activ, pad_type = "in", "relu", "reflect"
    N, H, W = 2, 16, 16

    key = jax.random.PRNGKey(0)
    kx, kp = jax.random.split(key)
    x = jax.random.normal(kx, (N, input_dim, H, W), dtype=jnp.float32)
    params, final_dim = init_content_encoder_params(
        kp, n_downsample=n_downsample, n_res=n_res,
        input_dim=input_dim, dim=dim, output_dim=output_dim)

    fwd = jax.jit(functools.partial(content_encoder_forward,
                                    norm=norm, activ=activ, pad_type=pad_type))
    y = jax.block_until_ready(fwd(x, params))

    y_ref = content_encoder_ref(x, params, norm=norm, activ=activ, pad_type=pad_type)
    assert y.shape == (N, final_dim, H // (2 ** n_downsample), W // (2 ** n_downsample)), y.shape
    err = float(jnp.max(jnp.abs(y - y_ref)))
    assert jnp.allclose(y, y_ref, atol=1e-3, rtol=1e-3), f"mismatch vs XLA ref: {err}"
    print("KERNEL_OK")
</pallas_src>

<mosaic_0001>
module attributes {stable_mosaic.version = 11 : i64} {
  func.func @kernel(%arg0: i32, %arg1: memref<1x16x64xf32, #tpu.memory_space<vmem>>, %arg2: memref<7x16x16xf32, #tpu.memory_space<vmem>>, %arg3: memref<7x64x128xf32, #tpu.memory_space<vmem>>, %arg4: memref<1x128xf32, #tpu.memory_space<vmem>>, %arg5: memref<128x8xf32, #tpu.memory_space<vmem>>, %arg6: memref<8x128xf32, #tpu.memory_space<vmem>>, %arg7: memref<4x8x16xf32, #tpu.memory_space<vmem>>, %arg8: memref<4x128x128xf32, #tpu.memory_space<vmem>>, %arg9: memref<1x128xf32, #tpu.memory_space<vmem>>, %arg10: memref<128x16xf32, #tpu.memory_space<vmem>>, %arg11: memref<16x128xf32, #tpu.memory_space<vmem>>, %arg12: memref<4x4x8xf32, #tpu.memory_space<vmem>>, %arg13: memref<4x128x128xf32, #tpu.memory_space<vmem>>, %arg14: memref<1x128xf32, #tpu.memory_space<vmem>>, %arg15: memref<128x32xf32, #tpu.memory_space<vmem>>, %arg16: memref<32x128xf32, #tpu.memory_space<vmem>>, %arg17: memref<3x4x4xf32, #tpu.memory_space<vmem>>, %arg18: memref<3x128x128xf32, #tpu.memory_space<vmem>>, %arg19: memref<1x128xf32, #tpu.memory_space<vmem>>, %arg20: memref<1x128xf32, #tpu.memory_space<vmem>>, %arg21: memref<1x128xf32, #tpu.memory_space<vmem>>, %arg22: memref<3x4x4xf32, #tpu.memory_space<vmem>>, %arg23: memref<3x128x128xf32, #tpu.memory_space<vmem>>, %arg24: memref<1x128xf32, #tpu.memory_space<vmem>>, %arg25: memref<1x128xf32, #tpu.memory_space<vmem>>, %arg26: memref<1x128xf32, #tpu.memory_space<vmem>>, %arg27: memref<3x4x4xf32, #tpu.memory_space<vmem>>, %arg28: memref<3x128x128xf32, #tpu.memory_space<vmem>>, %arg29: memref<1x128xf32, #tpu.memory_space<vmem>>, %arg30: memref<1x128xf32, #tpu.memory_space<vmem>>, %arg31: memref<1x128xf32, #tpu.memory_space<vmem>>, %arg32: memref<3x4x4xf32, #tpu.memory_space<vmem>>, %arg33: memref<3x128x128xf32, #tpu.memory_space<vmem>>, %arg34: memref<1x128xf32, #tpu.memory_space<vmem>>, %arg35: memref<1x128xf32, #tpu.memory_space<vmem>>, %arg36: memref<1x128xf32, #tpu.memory_space<vmem>>, %arg37: memref<1x4x128xf32, #tpu.memory_space<vmem>>) attributes {dimension_semantics = [#tpu.dimension_semantics<parallel>], iteration_bounds = array<i64: 2>, scalar_prefetch = 0 : i64, scratch_operands = 0 : i64, tpu.core_type = #tpu.core_type<tc>, window_params = [{transform_indices = @transform_0, window_bounds = array<i64: 1, 16, 64>}, {pipeline_mode = #tpu.pipeline_mode<synchronous>, transform_indices = @transform_1, window_bounds = array<i64: 7, 16, 16>}, {pipeline_mode = #tpu.pipeline_mode<synchronous>, transform_indices = @transform_2, window_bounds = array<i64: 7, 64, 128>}, {pipeline_mode = #tpu.pipeline_mode<synchronous>, transform_indices = @transform_3, window_bounds = array<i64: 1, 128>}, {pipeline_mode = #tpu.pipeline_mode<synchronous>, transform_indices = @transform_4, window_bounds = array<i64: 128, 8>}, {pipeline_mode = #tpu.pipeline_mode<synchronous>, transform_indices = @transform_5, window_bounds = array<i64: 8, 128>}, {pipeline_mode = #tpu.pipeline_mode<synchronous>, transform_indices = @transform_6, window_bounds = array<i64: 4, 8, 16>}, {pipeline_mode = #tpu.pipeline_mode<synchronous>, transform_indices = @transform_7, window_bounds = array<i64: 4, 128, 128>}, {pipeline_mode = #tpu.pipeline_mode<synchronous>, transform_indices = @transform_8, window_bounds = array<i64: 1, 128>}, {pipeline_mode = #tpu.pipeline_mode<synchronous>, transform_indices = @transform_9, window_bounds = array<i64: 128, 16>}, {pipeline_mode = #tpu.pipeline_mode<synchronous>, transform_indices = @transform_10, window_bounds = array<i64: 16, 128>}, {pipeline_mode = #tpu.pipeline_mode<synchronous>, transform_indices = @transform_11, window_bounds = array<i64: 4, 4, 8>}, {pipeline_mode = #tpu.pipeline_mode<synchronous>, transform_indices = @transform_12, window_bounds = array<i64: 4, 128, 128>}, {pipeline_mode = #tpu.pipeline_mode<synchronous>, transform_indices = @transform_13, window_bounds = array<i64: 1, 128>}, {pipeline_mode = #tpu.pipeline_mode<synchronous>, transform_indices = @transform_14, window_bounds = array<i64: 128, 32>}, {pipeline_mode = #tpu.pipeline_mode<synchronous>, transform_indices = @transform_15, window_bounds = array<i64: 32, 128>}, {pipeline_mode = #tpu.pipeline_mode<synchronous>, transform_indices = @transform_16, window_bounds = array<i64: 3, 4, 4>}, {pipeline_mode = #tpu.pipeline_mode<synchronous>, transform_indices = @transform_17, window_bounds = array<i64: 3, 128, 128>}, {pipeline_mode = #tpu.pipeline_mode<synchronous>, transform_indices = @transform_18, window_bounds = array<i64: 1, 128>}, {pipeline_mode = #tpu.pipeline_mode<synchronous>, transform_indices = @transform_19, window_bounds = array<i64: 1, 128>}, {pipeline_mode = #tpu.pipeline_mode<synchronous>, transform_indices = @transform_20, window_bounds = array<i64: 1, 128>}, {pipeline_mode = #tpu.pipeline_mode<synchronous>, transform_indices = @transform_21, window_bounds = array<i64: 3, 4, 4>}, {pipeline_mode = #tpu.pipeline_mode<synchronous>, transform_indices = @transform_22, window_bounds = array<i64: 3, 128, 128>}, {pipeline_mode = #tpu.pipeline_mode<synchronous>, transform_indices = @transform_23, window_bounds = array<i64: 1, 128>}, {pipeline_mode = #tpu.pipeline_mode<synchronous>, transform_indices = @transform_24, window_bounds = array<i64: 1, 128>}, {pipeline_mode = #tpu.pipeline_mode<synchronous>, transform_indices = @transform_25, window_bounds = array<i64: 1, 128>}, {pipeline_mode = #tpu.pipeline_mode<synchronous>, transform_indices = @transform_26, window_bounds = array<i64: 3, 4, 4>}, {pipeline_mode = #tpu.pipeline_mode<synchronous>, transform_indices = @transform_27, window_bounds = array<i64: 3, 128, 128>}, {pipeline_mode = #tpu.pipeline_mode<synchronous>, transform_indices = @transform_28, window_bounds = array<i64: 1, 128>}, {pipeline_mode = #tpu.pipeline_mode<synchronous>, transform_indices = @transform_29, window_bounds = array<i64: 1, 128>}, {pipeline_mode = #tpu.pipeline_mode<synchronous>, transform_indices = @transform_30, window_bounds = array<i64: 1, 128>}, {pipeline_mode = #tpu.pipeline_mode<synchronous>, transform_indices = @transform_31, window_bounds = array<i64: 3, 4, 4>}, {pipeline_mode = #tpu.pipeline_mode<synchronous>, transform_indices = @transform_32, window_bounds = array<i64: 3, 128, 128>}, {pipeline_mode = #tpu.pipeline_mode<synchronous>, transform_indices = @transform_33, window_bounds = array<i64: 1, 128>}, {pipeline_mode = #tpu.pipeline_mode<synchronous>, transform_indices = @transform_34, window_bounds = array<i64: 1, 128>}, {pipeline_mode = #tpu.pipeline_mode<synchronous>, transform_indices = @transform_35, window_bounds = array<i64: 1, 128>}, {transform_indices = @transform_36, window_bounds = array<i64: 1, 4, 128>}]} {
    %c0 = arith.constant 0 : index
    %c0_0 = arith.constant 0 : index
    %c0_1 = arith.constant 0 : index
    %0 = vector.load %arg1[%c0, %c0_0, %c0_1] : memref<1x16x64xf32, #tpu.memory_space<vmem>>, vector<1x16x64xf32>
    %1 = vector.shape_cast %0 : vector<1x16x64xf32> to vector<16x64xf32>
    %c0_2 = arith.constant 0 : index
    %c0_3 = arith.constant 0 : index
    %2 = vector.load %arg4[%c0_2, %c0_3] : memref<1x128xf32, #tpu.memory_space<vmem>>, vector<1x128xf32>
    %c0_4 = arith.constant 0 : index
    %c0_5 = arith.constant 0 : index
    %3 = vector.load %arg5[%c0_4, %c0_5] : memref<128x8xf32, #tpu.memory_space<vmem>>, vector<128x8xf32>
    %c0_6 = arith.constant 0 : index
    %c0_7 = arith.constant 0 : index
    %4 = vector.load %arg6[%c0_6, %c0_7] : memref<8x128xf32, #tpu.memory_space<vmem>>, vector<8x128xf32>
    %c0_8 = arith.constant 0 : index
    %c0_9 = arith.constant 0 : index
    %c0_10 = arith.constant 0 : index
    %5 = vector.load %arg2[%c0_8, %c0_9, %c0_10] : memref<7x16x16xf32, #tpu.memory_space<vmem>>, vector<1x16x16xf32>
    %6 = vector.shape_cast %5 : vector<1x16x16xf32> to vector<16x16xf32>
    %cst = arith.constant dense<0.000000e+00> : vector<16x64xf32>
    %7 = tpu.matmul %6, %1, %cst {dimension_numbers = #tpu.dot_dimension_numbers<[1], [0], [0], [1], [0, 0, 1, 1], [], []>} : vector<16x16xf32>, vector<16x64xf32>, vector<16x64xf32> -> vector<16x64xf32>
    %c0_11 = arith.constant 0 : index
    %c0_12 = arith.constant 0 : index
    %c0_13 = arith.constant 0 : index
    %8 = vector.load %arg3[%c0_11, %c0_12, %c0_13] : memref<7x64x128xf32, #tpu.memory_space<vmem>>, vector<1x64x128xf32>
    %9 = vector.shape_cast %8 : vector<1x64x128xf32> to vector<64x128xf32>
    %cst_14 = arith.constant dense<0.000000e+00> : vector<16x128xf32>
    %10 = tpu.matmul %7, %9, %cst_14 {dimension_numbers = #tpu.dot_dimension_numbers<[1], [0], [0], [1], [0, 0, 1, 1], [], []>} : vector<16x64xf32>, vector<64x128xf32>, vector<16x128xf32> -> vector<16x128xf32>
    %c1 = arith.constant 1 : index
    %c0_15 = arith.constant 0 : index
    %c0_16 = arith.constant 0 : index
    %11 = vector.load %arg2[%c1, %c0_15, %c0_16] : memref<7x16x16xf32, #tpu.memory_space<vmem>>, vector<1x16x16xf32>
    %12 = vector.shape_cast %11 : vector<1x16x16xf32> to vector<16x16xf32>
    %cst_17 = arith.constant dense<0.000000e+00> : vector<16x64xf32>
    %13 = tpu.matmul %12, %1, %cst_17 {dimension_numbers = #tpu.dot_dimension_numbers<[1], [0], [0], [1], [0, 0, 1, 1], [], []>} : vector<16x16xf32>, vector<16x64xf32>, vector<16x64xf32> -> vector<16x64xf32>
    %c1_18 = arith.constant 1 : index
    %c0_19 = arith.constant 0 : index
    %c0_20 = arith.constant 0 : index
    %14 = vector.load %arg3[%c1_18, %c0_19, %c0_20] : memref<7x64x128xf32, #tpu.memory_space<vmem>>, vector<1x64x128xf32>
    %15 = vector.shape_cast %14 : vector<1x64x128xf32> to vector<64x128xf32>
    %cst_21 = arith.constant dense<0.000000e+00> : vector<16x128xf32>
    %16 = tpu.matmul %13, %15, %cst_21 {dimension_numbers = #tpu.dot_dimension_numbers<[1], [0], [0], [1], [0, 0, 1, 1], [], []>} : vector<16x64xf32>, vector<64x128xf32>, vector<16x128xf32> -> vector<16x128xf32>
    %17 = arith.addf %10, %16 : vector<16x128xf32>
    %c2 = arith.constant 2 : index
    %c0_22 = arith.constant 0 : index
    %c0_23 = arith.constant 0 : index
    %18 = vector.load %arg2[%c2, %c0_22, %c0_23] : memref<7x16x16xf32, #tpu.memory_space<vmem>>, vector<1x16x16xf32>
    %19 = vector.shape_cast %18 : vector<1x16x16xf32> to vector<16x16xf32>
    %cst_24 = arith.constant dense<0.000000e+00> : vector<16x64xf32>
    %20 = tpu.matmul %19, %1, %cst_24 {dimension_numbers = #tpu.dot_dimension_numbers<[1], [0], [0], [1], [0, 0, 1, 1], [], []>} : vector<16x16xf32>, vector<16x64xf32>, vector<16x64xf32> -> vector<16x64xf32>
    %c2_25 = arith.constant 2 : index
    %c0_26 = arith.constant 0 : index
    %c0_27 = arith.constant 0 : index
    %21 = vector.load %arg3[%c2_25, %c0_26, %c0_27] : memref<7x64x128xf32, #tpu.memory_space<vmem>>, vector<1x64x128xf32>
    %22 = vector.shape_cast %21 : vector<1x64x128xf32> to vector<64x128xf32>
    %cst_28 = arith.constant dense<0.000000e+00> : vector<16x128xf32>
    %23 = tpu.matmul %20, %22, %cst_28 {dimension_numbers = #tpu.dot_dimension_numbers<[1], [0], [0], [1], [0, 0, 1, 1], [], []>} : vector<16x64xf32>, vector<64x128xf32>, vector<16x128xf32> -> vector<16x128xf32>
    %24 = arith.addf %17, %23 : vector<16x128xf32>
    %c3 = arith.constant 3 : index
    %c0_29 = arith.constant 0 : index
    %c0_30 = arith.constant 0 : index
    %25 = vector.load %arg2[%c3, %c0_29, %c0_30] : memref<7x16x16xf32, #tpu.memory_space<vmem>>, vector<1x16x16xf32>
    %26 = vector.shape_cast %25 : vector<1x16x16xf32> to vector<16x16xf32>
    %cst_31 = arith.constant dense<0.000000e+00> : vector<16x64xf32>
    %27 = tpu.matmul %26, %1, %cst_31 {dimension_numbers = #tpu.dot_dimension_numbers<[1], [0], [0], [1], [0, 0, 1, 1], [], []>} : vector<16x16xf32>, vector<16x64xf32>, vector<16x64xf32> -> vector<16x64xf32>
    %c3_32 = arith.constant 3 : index
    %c0_33 = arith.constant 0 : index
    %c0_34 = arith.constant 0 : index
    %28 = vector.load %arg3[%c3_32, %c0_33, %c0_34] : memref<7x64x128xf32, #tpu.memory_space<vmem>>, vector<1x64x128xf32>
    %29 = vector.shape_cast %28 : vector<1x64x128xf32> to vector<64x128xf32>
    %cst_35 = arith.constant dense<0.000000e+00> : vector<16x128xf32>
    %30 = tpu.matmul %27, %29, %cst_35 {dimension_numbers = #tpu.dot_dimension_numbers<[1], [0], [0], [1], [0, 0, 1, 1], [], []>} : vector<16x64xf32>, vector<64x128xf32>, vector<16x128xf32> -> vector<16x128xf32>
    %31 = arith.addf %24, %30 : vector<16x128xf32>
    %c4 = arith.constant 4 : index
    %c0_36 = arith.constant 0 : index
    %c0_37 = arith.constant 0 : index
    %32 = vector.load %arg2[%c4, %c0_36, %c0_37] : memref<7x16x16xf32, #tpu.memory_space<vmem>>, vector<1x16x16xf32>
    %33 = vector.shape_cast %32 : vector<1x16x16xf32> to vector<16x16xf32>
    %cst_38 = arith.constant dense<0.000000e+00> : vector<16x64xf32>
    %34 = tpu.matmul %33, %1, %cst_38 {dimension_numbers = #tpu.dot_dimension_numbers<[1], [0], [0], [1], [0, 0, 1, 1], [], []>} : vector<16x16xf32>, vector<16x64xf32>, vector<16x64xf32> -> vector<16x64xf32>
    %c4_39 = arith.constant 4 : index
    %c0_40 = arith.constant 0 : index
    %c0_41 = arith.constant 0 : index
    %35 = vector.load %arg3[%c4_39, %c0_40, %c0_41] : memref<7x64x128xf32, #tpu.memory_space<vmem>>, vector<1x64x128xf32>
    %36 = vector.shape_cast %35 : vector<1x64x128xf32> to vector<64x128xf32>
    %cst_42 = arith.constant dense<0.000000e+00> : vector<16x128xf32>
    %37 = tpu.matmul %34, %36, %cst_42 {dimension_numbers = #tpu.dot_dimension_numbers<[1], [0], [0], [1], [0, 0, 1, 1], [], []>} : vector<16x64xf32>, vector<64x128xf32>, vector<16x128xf32> -> vector<16x128xf32>
    %38 = arith.addf %31, %37 : vector<16x128xf32>
    %c5 = arith.constant 5 : index
    %c0_43 = arith.constant 0 : index
    %c0_44 = arith.constant 0 : index
    %39 = vector.load %arg2[%c5, %c0_43, %c0_44] : memref<7x16x16xf32, #tpu.memory_space<vmem>>, vector<1x16x16xf32>
    %40 = vector.shape_cast %39 : vector<1x16x16xf32> to vector<16x16xf32>
    %cst_45 = arith.constant dense<0.000000e+00> : vector<16x64xf32>
    %41 = tpu.matmul %40, %1, %cst_45 {dimension_numbers = #tpu.dot_dimension_numbers<[1], [0], [0], [1], [0, 0, 1, 1], [], []>} : vector<16x16xf32>, vector<16x64xf32>, vector<16x64xf32> -> vector<16x64xf32>
    %c5_46 = arith.constant 5 : index
    %c0_47 = arith.constant 0 : index
    %c0_48 = arith.constant 0 : index
    %42 = vector.load %arg3[%c5_46, %c0_47, %c0_48] : memref<7x64x128xf32, #tpu.memory_space<vmem>>, vector<1x64x128xf32>
    %43 = vector.shape_cast %42 : vector<1x64x128xf32> to vector<64x128xf32>
    %cst_49 = arith.constant dense<0.000000e+00> : vector<16x128xf32>
    %44 = tpu.matmul %41, %43, %cst_49 {dimension_numbers = #tpu.dot_dimension_numbers<[1], [0], [0], [1], [0, 0, 1, 1], [], []>} : vector<16x64xf32>, vector<64x128xf32>, vector<16x128xf32> -> vector<16x128xf32>
    %45 = arith.addf %38, %44 : vector<16x128xf32>
    %c6 = arith.constant 6 : index
    %c0_50 = arith.constant 0 : index
    %c0_51 = arith.constant 0 : index
    %46 = vector.load %arg2[%c6, %c0_50, %c0_51] : memref<7x16x16xf32, #tpu.memory_space<vmem>>, vector<1x16x16xf32>
    %47 = vector.shape_cast %46 : vector<1x16x16xf32> to vector<16x16xf32>
    %cst_52 = arith.constant dense<0.000000e+00> : vector<16x64xf32>
    %48 = tpu.matmul %47, %1, %cst_52 {dimension_numbers = #tpu.dot_dimension_numbers<[1], [0], [0], [1], [0, 0, 1, 1], [], []>} : vector<16x16xf32>, vector<16x64xf32>, vector<16x64xf32> -> vector<16x64xf32>
    %c6_53 = arith.constant 6 : index
    %c0_54 = arith.constant 0 : index
    %c0_55 = arith.constant 0 : index
    %49 = vector.load %arg3[%c6_53, %c0_54, %c0_55] : memref<7x64x128xf32, #tpu.memory_space<vmem>>, vector<1x64x128xf32>
    %50 = vector.shape_cast %49 : vector<1x64x128xf32> to vector<64x128xf32>
    %cst_56 = arith.constant dense<0.000000e+00> : vector<16x128xf32>
    %51 = tpu.matmul %48, %50, %cst_56 {dimension_numbers = #tpu.dot_dimension_numbers<[1], [0], [0], [1], [0, 0, 1, 1], [], []>} : vector<16x64xf32>, vector<64x128xf32>, vector<16x128xf32> -> vector<16x128xf32>
    %52 = arith.addf %45, %51 : vector<16x128xf32>
    %53 = vector.broadcast %2 : vector<1x128xf32> to vector<16x128xf32>
    %54 = arith.addf %52, %53 : vector<16x128xf32>
    %cst_57 = arith.constant dense<0.000000e+00> : vector<128xf32>
    %55 = vector.multi_reduction <add>, %54, %cst_57 [0] : vector<16x128xf32> to vector<128xf32>
    %56 = vector.shape_cast %55 : vector<128xf32> to vector<1x128xf32>
    %cst_58 = arith.constant dense<0.000000e+00> : vector<1x8xf32>
    %57 = tpu.matmul %56, %3, %cst_58 {dimension_numbers = #tpu.dot_dimension_numbers<[1], [0], [0], [1], [0, 0, 1, 1], [], []>} : vector<1x128xf32>, vector<128x8xf32>, vector<1x8xf32> -> vector<1x8xf32>
    %58 = arith.mulf %54, %54 : vector<16x128xf32>
    %cst_59 = arith.constant dense<0.000000e+00> : vector<128xf32>
    %59 = vector.multi_reduction <add>, %58, %cst_59 [0] : vector<16x128xf32> to vector<128xf32>
    %60 = vector.shape_cast %59 : vector<128xf32> to vector<1x128xf32>
    %cst_60 = arith.constant dense<0.000000e+00> : vector<1x8xf32>
    %61 = tpu.matmul %60, %3, %cst_60 {dimension_numbers = #tpu.dot_dimension_numbers<[1], [0], [0], [1], [0, 0, 1, 1], [], []>} : vector<1x128xf32>, vector<128x8xf32>, vector<1x8xf32> -> vector<1x8xf32>
    %cst_61 = arith.constant 3.906250e-03 : f32
    %62 = vector.broadcast %cst_61 : f32 to vector<1x8xf32>
    %63 = arith.mulf %57, %62 : vector<1x8xf32>
    %cst_62 = arith.constant 3.906250e-03 : f32
    %64 = vector.broadcast %cst_62 : f32 to vector<1x8xf32>
    %65 = arith.mulf %61, %64 : vector<1x8xf32>
    %66 = arith.mulf %63, %63 : vector<1x8xf32>
    %67 = arith.subf %65, %66 : vector<1x8xf32>
    %cst_63 = arith.constant 9.99999974E-6 : f32
    %68 = vector.broadcast %cst_63 : f32 to vector<1x8xf32>
    %69 = arith.addf %67, %68 : vector<1x8xf32>
    %70 = math.rsqrt %69 : vector<1x8xf32>
    %cst_64 = arith.constant dense<0.000000e+00> : vector<1x128xf32>
    %71 = tpu.matmul %63, %4, %cst_64 {dimension_numbers = #tpu.dot_dimension_numbers<[1], [0], [0], [1], [0, 0, 1, 1], [], []>} : vector<1x8xf32>, vector<8x128xf32>, vector<1x128xf32> -> vector<1x128xf32>
    %cst_65 = arith.constant dense<0.000000e+00> : vector<1x128xf32>
    %72 = tpu.matmul %70, %4, %cst_65 {dimension_numbers = #tpu.dot_dimension_numbers<[1], [0], [0], [1], [0, 0, 1, 1], [], []>} : vector<1x8xf32>, vector<8x128xf32>, vector<1x128xf32> -> vector<1x128xf32>
    %73 = vector.broadcast %71 : vector<1x128xf32> to vector<16x128xf32>
    %74 = arith.subf %54, %73 : vector<16x128xf32>
    %75 = vector.broadcast %72 : vector<1x128xf32> to vector<16x128xf32>
    %76 = arith.mulf %74, %75 : vector<16x128xf32>
    %cst_66 = arith.constant 0.000000e+00 : f32
    %77 = vector.broadcast %cst_66 : f32 to vector<16x128xf32>
    %78 = arith.maximumf %76, %77 : vector<16x128xf32>
    %c0_67 = arith.constant 0 : index
    %c0_68 = arith.constant 0 : index
    %79 = vector.load %arg9[%c0_67, %c0_68] : memref<1x128xf32, #tpu.memory_space<vmem>>, vector<1x128xf32>
    %c0_69 = arith.constant 0 : index
    %c0_70 = arith.constant 0 : index
    %80 = vector.load %arg10[%c0_69, %c0_70] : memref<128x16xf32, #tpu.memory_space<vmem>>, vector<128x16xf32>
    %c0_71 = arith.constant 0 : index
    %c0_72 = arith.constant 0 : index
    %81 = vector.load %arg11[%c0_71, %c0_72] : memref<16x128xf32, #tpu.memory_space<vmem>>, vector<16x128xf32>
    %c0_73 = arith.constant 0 : index
    %c0_74 = arith.constant 0 : index
    %c0_75 = arith.constant 0 : index
    %82 = vector.load %arg7[%c0_73, %c0_74, %c0_75] : memref<4x8x16xf32, #tpu.memory_space<vmem>>, vector<1x8x16xf32>
    %83 = vector.shape_cast %82 : vector<1x8x16xf32> to vector<8x16xf32>
    %cst_76 = arith.constant dense<0.000000e+00> : vector<8x128xf32>
    %84 = tpu.matmul %83, %78, %cst_76 {dimension_numbers = #tpu.dot_dimension_numbers<[1], [0], [0], [1], [0, 0, 1, 1], [], []>} : vector<8x16xf32>, vector<16x128xf32>, vector<8x128xf32> -> vector<8x128xf32>
    %c0_77 = arith.constant 0 : index
    %c0_78 = arith.constant 0 : index
    %c0_79 = arith.constant 0 : index
    %85 = vector.load %arg8[%c0_77, %c0_78, %c0_79] : memref<4x128x128xf32, #tpu.memory_space<vmem>>, vector<1x128x128xf32>
    %86 = vector.shape_cast %85 : vector<1x128x128xf32> to vector<128x128xf32>
    %cst_80 = arith.constant dense<0.000000e+00> : vector<8x128xf32>
    %87 = tpu.matmul %84, %86, %cst_80 {dimension_numbers = #tpu.dot_dimension_numbers<[1], [0], [0], [1], [0, 0, 1, 1], [], []>} : vector<8x128xf32>, vector<128x128xf32>, vector<8x128xf32> -> vector<8x128xf32>
    %c1_81 = arith.constant 1 : index
    %c0_82 = arith.constant 0 : index
    %c0_83 = arith.constant 0 : index
    %88 = vector.load %arg7[%c1_81, %c0_82, %c0_83] : memref<4x8x16xf32, #tpu.memory_space<vmem>>, vector<1x8x16xf32>
    %89 = vector.shape_cast %88 : vector<1x8x16xf32> to vector<8x16xf32>
    %cst_84 = arith.constant dense<0.000000e+00> : vector<8x128xf32>
    %90 = tpu.matmul %89, %78, %cst_84 {dimension_numbers = #tpu.dot_dimension_numbers<[1], [0], [0], [1], [0, 0, 1, 1], [], []>} : vector<8x16xf32>, vector<16x128xf32>, vector<8x128xf32> -> vector<8x128xf32>
    %c1_85 = arith.constant 1 : index
    %c0_86 = arith.constant 0 : index
    %c0_87 = arith.constant 0 : index
    %91 = vector.load %arg8[%c1_85, %c0_86, %c0_87] : memref<4x128x128xf32, #tpu.memory_space<vmem>>, vector<1x128x128xf32>
    %92 = vector.shape_cast %91 : vector<1x128x128xf32> to vector<128x128xf32>
    %cst_88 = arith.constant dense<0.000000e+00> : vector<8x128xf32>
    %93 = tpu.matmul %90, %92, %cst_88 {dimension_numbers = #tpu.dot_dimension_numbers<[1], [0], [0], [1], [0, 0, 1, 1], [], []>} : vector<8x128xf32>, vector<128x128xf32>, vector<8x128xf32> -> vector<8x128xf32>
    %94 = arith.addf %87, %93 : vector<8x128xf32>
    %c2_89 = arith.constant 2 : index
    %c0_90 = arith.constant 0 : index
    %c0_91 = arith.constant 0 : index
    %95 = vector.load %arg7[%c2_89, %c0_90, %c0_91] : memref<4x8x16xf32, #tpu.memory_space<vmem>>, vector<1x8x16xf32>
    %96 = vector.shape_cast %95 : vector<1x8x16xf32> to vector<8x16xf32>
    %cst_92 = arith.constant dense<0.000000e+00> : vector<8x128xf32>
    %97 = tpu.matmul %96, %78, %cst_92 {dimension_numbers = #tpu.dot_dimension_numbers<[1], [0], [0], [1], [0, 0, 1, 1], [], []>} : vector<8x16xf32>, vector<16x128xf32>, vector<8x128xf32> -> vector<8x128xf32>
    %c2_93 = arith.constant 2 : index
    %c0_94 = arith.constant 0 : index
    %c0_95 = arith.constant 0 : index
    %98 = vector.load %arg8[%c2_93, %c0_94, %c0_95] : memref<4x128x128xf32, #tpu.memory_space<vmem>>, vector<1x128x128xf32>
    %99 = vector.shape_cast %98 : vector<1x128x128xf32> to vector<128x128xf32>
    %cst_96 = arith.constant dense<0.000000e+00> : vector<8x128xf32>
    %100 = tpu.matmul %97, %99, %cst_96 {dimension_numbers = #tpu.dot_dimension_numbers<[1], [0], [0], [1], [0, 0, 1, 1], [], []>} : vector<8x128xf32>, vector<128x128xf32>, vector<8x128xf32> -> vector<8x128xf32>
    %101 = arith.addf %94, %100 : vector<8x128xf32>
    %c3_97 = arith.constant 3 : index
    %c0_98 = arith.constant 0 : index
    %c0_99 = arith.constant 0 : index
    %102 = vector.load %arg7[%c3_97, %c0_98, %c0_99] : memref<4x8x16xf32, #tpu.memory_space<vmem>>, vector<1x8x16xf32>
    %103 = vector.shape_cast %102 : vector<1x8x16xf32> to vector<8x16xf32>
    %cst_100 = arith.constant dense<0.000000e+00> : vector<8x128xf32>
    %104 = tpu.matmul %103, %78, %cst_100 {dimension_numbers = #tpu.dot_dimension_numbers<[1], [0], [0], [1], [0, 0, 1, 1], [], []>} : vector<8x16xf32>, vector<16x128xf32>, vector<8x128xf32> -> vector<8x128xf32>
    %c3_101 = arith.constant 3 : index
    %c0_102 = arith.constant 0 : index
    %c0_103 = arith.constant 0 : index
    %105 = vector.load %arg8[%c3_101, %c0_102, %c0_103] : memref<4x128x128xf32, #tpu.memory_space<vmem>>, vector<1x128x128xf32>
    %106 = vector.shape_cast %105 : vector<1x128x128xf32> to vector<128x128xf32>
    %cst_104 = arith.constant dense<0.000000e+00> : vector<8x128xf32>
    %107 = tpu.matmul %104, %106, %cst_104 {dimension_numbers = #tpu.dot_dimension_numbers<[1], [0], [0], [1], [0, 0, 1, 1], [], []>} : vector<8x128xf32>, vector<128x128xf32>, vector<8x128xf32> -> vector<8x128xf32>
    %108 = arith.addf %101, %107 : vector<8x128xf32>
    %109 = vector.broadcast %79 : vector<1x128xf32> to vector<8x128xf32>
    %110 = arith.addf %108, %109 : vector<8x128xf32>
    %cst_105 = arith.constant dense<0.000000e+00> : vector<128xf32>
    %111 = vector.multi_reduction <add>, %110, %cst_105 [0] : vector<8x128xf32> to vector<128xf32>
    %112 = vector.shape_cast %111 : vector<128xf32> to vector<1x128xf32>
    %cst_106 = arith.constant dense<0.000000e+00> : vector<1x16xf32>
    %113 = tpu.matmul %112, %80, %cst_106 {dimension_numbers = #tpu.dot_dimension_numbers<[1], [0], [0], [1], [0, 0, 1, 1], [], []>} : vector<1x128xf32>, vector<128x16xf32>, vector<1x16xf32> -> vector<1x16xf32>
    %114 = arith.mulf %110, %110 : vector<8x128xf32>
    %cst_107 = arith.constant dense<0.000000e+00> : vector<128xf32>
    %115 = vector.multi_reduction <add>, %114, %cst_107 [0] : vector<8x128xf32> to vector<128xf32>
    %116 = vector.shape_cast %115 : vector<128xf32> to vector<1x128xf32>
    %cst_108 = arith.constant dense<0.000000e+00> : vector<1x16xf32>
    %117 = tpu.matmul %116, %80, %cst_108 {dimension_numbers = #tpu.dot_dimension_numbers<[1], [0], [0], [1], [0, 0, 1, 1], [], []>} : vector<1x128xf32>, vector<128x16xf32>, vector<1x16xf32> -> vector<1x16xf32>
    %cst_109 = arith.constant 1.562500e-02 : f32
    %118 = vector.broadcast %cst_109 : f32 to vector<1x16xf32>
    %119 = arith.mulf %113, %118 : vector<1x16xf32>
    %cst_110 = arith.constant 1.562500e-02 : f32
    %120 = vector.broadcast %cst_110 : f32 to vector<1x16xf32>
    %121 = arith.mulf %117, %120 : vector<1x16xf32>
    %122 = arith.mulf %119, %119 : vector<1x16xf32>
    %123 = arith.subf %121, %122 : vector<1x16xf32>
    %cst_111 = arith.constant 9.99999974E-6 : f32
    %124 = vector.broadcast %cst_111 : f32 to vector<1x16xf32>
    %125 = arith.addf %123, %124 : vector<1x16xf32>
    %126 = math.rsqrt %125 : vector<1x16xf32>
    %cst_112 = arith.constant dense<0.000000e+00> : vector<1x128xf32>
    %127 = tpu.matmul %119, %81, %cst_112 {dimension_numbers = #tpu.dot_dimension_numbers<[1], [0], [0], [1], [0, 0, 1, 1], [], []>} : vector<1x16xf32>, vector<16x128xf32>, vector<1x128xf32> -> vector<1x128xf32>
    %cst_113 = arith.constant dense<0.000000e+00> : vector<1x128xf32>
    %128 = tpu.matmul %126, %81, %cst_113 {dimension_numbers = #tpu.dot_dimension_numbers<[1], [0], [0], [1], [0, 0, 1, 1], [], []>} : vector<1x16xf32>, vector<16x128xf32>, vector<1x128xf32> -> vector<1x128xf32>
    %129 = vector.broadcast %127 : vector<1x128xf32> to vector<8x128xf32>
    %130 = arith.subf %110, %129 : vector<8x128xf32>
    %131 = vector.broadcast %128 : vector<1x128xf32> to vector<8x128xf32>
    %132 = arith.mulf %130, %131 : vector<8x128xf32>
    %cst_114 = arith.constant 0.000000e+00 : f32
    %133 = vector.broadcast %cst_114 : f32 to vector<8x128xf32>
    %134 = arith.maximumf %132, %133 : vector<8x128xf32>
    %c0_115 = arith.constant 0 : index
    %c0_116 = arith.constant 0 : index
    %135 = vector.load %arg14[%c0_115, %c0_116] : memref<1x128xf32, #tpu.memory_space<vmem>>, vector<1x128xf32>
    %c0_117 = arith.constant 0 : index
    %c0_118 = arith.constant 0 : index
    %136 = vector.load %arg15[%c0_117, %c0_118] : memref<128x32xf32, #tpu.memory_space<vmem>>, vector<128x32xf32>
    %c0_119 = arith.constant 0 : index
    %c0_120 = arith.constant 0 : index
    %137 = vector.load %arg16[%c0_119, %c0_120] : memref<32x128xf32, #tpu.memory_space<vmem>>, vector<32x128xf32>
    %c0_121 = arith.constant 0 : index
    %c0_122 = arith.constant 0 : index
    %c0_123 = arith.constant 0 : index
    %138 = vector.load %arg12[%c0_121, %c0_122, %c0_123] : memref<4x4x8xf32, #tpu.memory_space<vmem>>, vector<1x4x8xf32>
    %139 = vector.shape_cast %138 : vector<1x4x8xf32> to vector<4x8xf32>
    %cst_124 = arith.constant dense<0.000000e+00> : vector<4x128xf32>
    %140 = tpu.matmul %139, %134, %cst_124 {dimension_numbers = #tpu.dot_dimension_numbers<[1], [0], [0], [1], [0, 0, 1, 1], [], []>} : vector<4x8xf32>, vector<8x128xf32>, vector<4x128xf32> -> vector<4x128xf32>
    %c0_125 = arith.constant 0 : index
    %c0_126 = arith.constant 0 : index
    %c0_127 = arith.constant 0 : index
    %141 = vector.load %arg13[%c0_125, %c0_126, %c0_127] : memref<4x128x128xf32, #tpu.memory_space<vmem>>, vector<1x128x128xf32>
    %142 = vector.shape_cast %141 : vector<1x128x128xf32> to vector<128x128xf32>
    %cst_128 = arith.constant dense<0.000000e+00> : vector<4x128xf32>
    %143 = tpu.matmul %140, %142, %cst_128 {dimension_numbers = #tpu.dot_dimension_numbers<[1], [0], [0], [1], [0, 0, 1, 1], [], []>} : vector<4x128xf32>, vector<128x128xf32>, vector<4x128xf32> -> vector<4x128xf32>
    %c1_129 = arith.constant 1 : index
    %c0_130 = arith.constant 0 : index
    %c0_131 = arith.constant 0 : index
    %144 = vector.load %arg12[%c1_129, %c0_130, %c0_131] : memref<4x4x8xf32, #tpu.memory_space<vmem>>, vector<1x4x8xf32>
    %145 = vector.shape_cast %144 : vector<1x4x8xf32> to vector<4x8xf32>
    %cst_132 = arith.constant dense<0.000000e+00> : vector<4x128xf32>
    %146 = tpu.matmul %145, %134, %cst_132 {dimension_numbers = #tpu.dot_dimension_numbers<[1], [0], [0], [1], [0, 0, 1, 1], [], []>} : vector<4x8xf32>, vector<8x128xf32>, vector<4x128xf32> -> vector<4x128xf32>
    %c1_133 = arith.constant 1 : index
    %c0_134 = arith.constant 0 : index
    %c0_135 = arith.constant 0 : index
    %147 = vector.load %arg13[%c1_133, %c0_134, %c0_135] : memref<4x128x128xf32, #tpu.memory_space<vmem>>, vector<1x128x128xf32>
    %148 = vector.shape_cast %147 : vector<1x128x128xf32> to vector<128x128xf32>
    %cst_136 = arith.constant dense<0.000000e+00> : vector<4x128xf32>
    %149 = tpu.matmul %146, %148, %cst_136 {dimension_numbers = #tpu.dot_dimension_numbers<[1], [0], [0], [1], [0, 0, 1, 1], [], []>} : vector<4x128xf32>, vector<128x128xf32>, vector<4x128xf32> -> vector<4x128xf32>
    %150 = arith.addf %143, %149 : vector<4x128xf32>
    %c2_137 = arith.constant 2 : index
    %c0_138 = arith.constant 0 : index
    %c0_139 = arith.constant 0 : index
    %151 = vector.load %arg12[%c2_137, %c0_138, %c0_139] : memref<4x4x8xf32, #tpu.memory_space<vmem>>, vector<1x4x8xf32>
    %152 = vector.shape_cast %151 : vector<1x4x8xf32> to vector<4x8xf32>
    %cst_140 = arith.constant dense<0.000000e+00> : vector<4x128xf32>
    %153 = tpu.matmul %152, %134, %cst_140 {dimension_numbers = #tpu.dot_dimension_numbers<[1], [0], [0], [1], [0, 0, 1, 1], [], []>} : vector<4x8xf32>, vector<8x128xf32>, vector<4x128xf32> -> vector<4x128xf32>
    %c2_141 = arith.constant 2 : index
    %c0_142 = arith.constant 0 : index
    %c0_143 = arith.constant 0 : index
    %154 = vector.load %arg13[%c2_141, %c0_142, %c0_143] : memref<4x128x128xf32, #tpu.memory_space<vmem>>, vector<1x128x128xf32>
    %155 = vector.shape_cast %154 : vector<1x128x128xf32> to vector<128x128xf32>
    %cst_144 = arith.constant dense<0.000000e+00> : vector<4x128xf32>
    %156 = tpu.matmul %153, %155, %cst_144 {dimension_numbers = #tpu.dot_dimension_numbers<[1], [0], [0], [1], [0, 0, 1, 1], [], []>} : vector<4x128xf32>, vector<128x128xf32>, vector<4x128xf32> -> vector<4x128xf32>
    %157 = arith.addf %150, %156 : vector<4x128xf32>
    %c3_145 = arith.constant 3 : index
    %c0_146 = arith.constant 0 : index
    %c0_147 = arith.constant 0 : index
    %158 = vector.load %arg12[%c3_145, %c0_146, %c0_147] : memref<4x4x8xf32, #tpu.memory_space<vmem>>, vector<1x4x8xf32>
    %159 = vector.shape_cast %158 : vector<1x4x8xf32> to vector<4x8xf32>
    %cst_148 = arith.constant dense<0.000000e+00> : vector<4x128xf32>
    %160 = tpu.matmul %159, %134, %cst_148 {dimension_numbers = #tpu.dot_dimension_numbers<[1], [0], [0], [1], [0, 0, 1, 1], [], []>} : vector<4x8xf32>, vector<8x128xf32>, vector<4x128xf32> -> vector<4x128xf32>
    %c3_149 = arith.constant 3 : index
    %c0_150 = arith.constant 0 : index
    %c0_151 = arith.constant 0 : index
    %161 = vector.load %arg13[%c3_149, %c0_150, %c0_151] : memref<4x128x128xf32, #tpu.memory_space<vmem>>, vector<1x128x128xf32>
    %162 = vector.shape_cast %161 : vector<1x128x128xf32> to vector<128x128xf32>
    %cst_152 = arith.constant dense<0.000000e+00> : vector<4x128xf32>
    %163 = tpu.matmul %160, %162, %cst_152 {dimension_numbers = #tpu.dot_dimension_numbers<[1], [0], [0], [1], [0, 0, 1, 1], [], []>} : vector<4x128xf32>, vector<128x128xf32>, vector<4x128xf32> -> vector<4x128xf32>
    %164 = arith.addf %157, %163 : vector<4x128xf32>
    %165 = vector.broadcast %135 : vector<1x128xf32> to vector<4x128xf32>
    %166 = arith.addf %164, %165 : vector<4x128xf32>
    %cst_153 = arith.constant dense<0.000000e+00> : vector<128xf32>
    %167 = vector.multi_reduction <add>, %166, %cst_153 [0] : vector<4x128xf32> to vector<128xf32>
    %168 = vector.shape_cast %167 : vector<128xf32> to vector<1x128xf32>
    %cst_154 = arith.constant dense<0.000000e+00> : vector<1x32xf32>
    %169 = tpu.matmul %168, %136, %cst_154 {dimension_numbers = #tpu.dot_dimension_numbers<[1], [0], [0], [1], [0, 0, 1, 1], [], []>} : vector<1x128xf32>, vector<128x32xf32>, vector<1x32xf32> -> vector<1x32xf32>
    %170 = arith.mulf %166, %166 : vector<4x128xf32>
    %cst_155 = arith.constant dense<0.000000e+00> : vector<128xf32>
    %171 = vector.multi_reduction <add>, %170, %cst_155 [0] : vector<4x128xf32> to vector<128xf32>
    %172 = vector.shape_cast %171 : vector<128xf32> to vector<1x128xf32>
    %cst_156 = arith.constant dense<0.000000e+00> : vector<1x32xf32>
    %173 = tpu.matmul %172, %136, %cst_156 {dimension_numbers = #tpu.dot_dimension_numbers<[1], [0], [0], [1], [0, 0, 1, 1], [], []>} : vector<1x128xf32>, vector<128x32xf32>, vector<1x32xf32> -> vector<1x32xf32>
    %cst_157 = arith.constant 6.250000e-02 : f32
    %174 = vector.broadcast %cst_157 : f32 to vector<1x32xf32>
    %175 = arith.mulf %169, %174 : vector<1x32xf32>
    %cst_158 = arith.constant 6.250000e-02 : f32
    %176 = vector.broadcast %cst_158 : f32 to vector<1x32xf32>
    %177 = arith.mulf %173, %176 : vector<1x32xf32>
    %178 = arith.mulf %175, %175 : vector<1x32xf32>
    %179 = arith.subf %177, %178 : vector<1x32xf32>
    %cst_159 = arith.constant 9.99999974E-6 : f32
    %180 = vector.broadcast %cst_159 : f32 to vector<1x32xf32>
    %181 = arith.addf %179, %180 : vector<1x32xf32>
    %182 = math.rsqrt %181 : vector<1x32xf32>
    %cst_160 = arith.constant dense<0.000000e+00> : vector<1x128xf32>
    %183 = tpu.matmul %175, %137, %cst_160 {dimension_numbers = #tpu.dot_dimension_numbers<[1], [0], [0], [1], [0, 0, 1, 1], [], []>} : vector<1x32xf32>, vector<32x128xf32>, vector<1x128xf32> -> vector<1x128xf32>
    %cst_161 = arith.constant dense<0.000000e+00> : vector<1x128xf32>
    %184 = tpu.matmul %182, %137, %cst_161 {dimension_numbers = #tpu.dot_dimension_numbers<[1], [0], [0], [1], [0, 0, 1, 1], [], []>} : vector<1x32xf32>, vector<32x128xf32>, vector<1x128xf32> -> vector<1x128xf32>
    %185 = vector.broadcast %183 : vector<1x128xf32> to vector<4x128xf32>
    %186 = arith.subf %166, %185 : vector<4x128xf32>
    %187 = vector.broadcast %184 : vector<1x128xf32> to vector<4x128xf32>
    %188 = arith.mulf %186, %187 : vector<4x128xf32>
    %cst_162 = arith.constant 0.000000e+00 : f32
    %189 = vector.broadcast %cst_162 : f32 to vector<4x128xf32>
    %190 = arith.maximumf %188, %189 : vector<4x128xf32>
    %c0_163 = arith.constant 0 : index
    %c0_164 = arith.constant 0 : index
    %191 = vector.load %arg19[%c0_163, %c0_164] : memref<1x128xf32, #tpu.memory_space<vmem>>, vector<1x128xf32>
    %c0_165 = arith.constant 0 : index
    %c0_166 = arith.constant 0 : index
    %192 = vector.load %arg20[%c0_165, %c0_166] : memref<1x128xf32, #tpu.memory_space<vmem>>, vector<1x128xf32>
    %c0_167 = arith.constant 0 : index
    %c0_168 = arith.constant 0 : index
    %193 = vector.load %arg21[%c0_167, %c0_168] : memref<1x128xf32, #tpu.memory_space<vmem>>, vector<1x128xf32>
    %c0_169 = arith.constant 0 : index
    %c0_170 = arith.constant 0 : index
    %c0_171 = arith.constant 0 : index
    %194 = vector.load %arg17[%c0_169, %c0_170, %c0_171] : memref<3x4x4xf32, #tpu.memory_space<vmem>>, vector<1x4x4xf32>
    %195 = vector.shape_cast %194 : vector<1x4x4xf32> to vector<4x4xf32>
    %cst_172 = arith.constant dense<0.000000e+00> : vector<4x128xf32>
    %196 = tpu.matmul %195, %190, %cst_172 {dimension_numbers = #tpu.dot_dimension_numbers<[1], [0], [0], [1], [0, 0, 1, 1], [], []>} : vector<4x4xf32>, vector<4x128xf32>, vector<4x128xf32> -> vector<4x128xf32>
    %c0_173 = arith.constant 0 : index
    %c0_174 = arith.constant 0 : index
    %c0_175 = arith.constant 0 : index
    %197 = vector.load %arg18[%c0_173, %c0_174, %c0_175] : memref<3x128x128xf32, #tpu.memory_space<vmem>>, vector<1x128x128xf32>
    %198 = vector.shape_cast %197 : vector<1x128x128xf32> to vector<128x128xf32>
    %cst_176 = arith.constant dense<0.000000e+00> : vector<4x128xf32>
    %199 = tpu.matmul %196, %198, %cst_176 {dimension_numbers = #tpu.dot_dimension_numbers<[1], [0], [0], [1], [0, 0, 1, 1], [], []>} : vector<4x128xf32>, vector<128x128xf32>, vector<4x128xf32> -> vector<4x128xf32>
    %c1_177 = arith.constant 1 : index
    %c0_178 = arith.constant 0 : index
    %c0_179 = arith.constant 0 : index
    %200 = vector.load %arg17[%c1_177, %c0_178, %c0_179] : memref<3x4x4xf32, #tpu.memory_space<vmem>>, vector<1x4x4xf32>
    %201 = vector.shape_cast %200 : vector<1x4x4xf32> to vector<4x4xf32>
    %cst_180 = arith.constant dense<0.000000e+00> : vector<4x128xf32>
    %202 = tpu.matmul %201, %190, %cst_180 {dimension_numbers = #tpu.dot_dimension_numbers<[1], [0], [0], [1], [0, 0, 1, 1], [], []>} : vector<4x4xf32>, vector<4x128xf32>, vector<4x128xf32> -> vector<4x128xf32>
    %c1_181 = arith.constant 1 : index
    %c0_182 = arith.constant 0 : index
    %c0_183 = arith.constant 0 : index
    %203 = vector.load %arg18[%c1_181, %c0_182, %c0_183] : memref<3x128x128xf32, #tpu.memory_space<vmem>>, vector<1x128x128xf32>
    %204 = vector.shape_cast %203 : vector<1x128x128xf32> to vector<128x128xf32>
    %cst_184 = arith.constant dense<0.000000e+00> : vector<4x128xf32>
    %205 = tpu.matmul %202, %204, %cst_184 {dimension_numbers = #tpu.dot_dimension_numbers<[1], [0], [0], [1], [0, 0, 1, 1], [], []>} : vector<4x128xf32>, vector<128x128xf32>, vector<4x128xf32> -> vector<4x128xf32>
    %206 = arith.addf %199, %205 : vector<4x128xf32>
    %c2_185 = arith.constant 2 : index
    %c0_186 = arith.constant 0 : index
    %c0_187 = arith.constant 0 : index
    %207 = vector.load %arg17[%c2_185, %c0_186, %c0_187] : memref<3x4x4xf32, #tpu.memory_space<vmem>>, vector<1x4x4xf32>
    %208 = vector.shape_cast %207 : vector<1x4x4xf32> to vector<4x4xf32>
    %cst_188 = arith.constant dense<0.000000e+00> : vector<4x128xf32>
    %209 = tpu.matmul %208, %190, %cst_188 {dimension_numbers = #tpu.dot_dimension_numbers<[1], [0], [0], [1], [0, 0, 1, 1], [], []>} : vector<4x4xf32>, vector<4x128xf32>, vector<4x128xf32> -> vector<4x128xf32>
    %c2_189 = arith.constant 2 : index
    %c0_190 = arith.constant 0 : index
    %c0_191 = arith.constant 0 : index
    %210 = vector.load %arg18[%c2_189, %c0_190, %c0_191] : memref<3x128x128xf32, #tpu.memory_space<vmem>>, vector<1x128x128xf32>
    %211 = vector.shape_cast %210 : vector<1x128x128xf32> to vector<128x128xf32>
    %cst_192 = arith.constant dense<0.000000e+00> : vector<4x128xf32>
    %212 = tpu.matmul %209, %211, %cst_192 {dimension_numbers = #tpu.dot_dimension_numbers<[1], [0], [0], [1], [0, 0, 1, 1], [], []>} : vector<4x128xf32>, vector<128x128xf32>, vector<4x128xf32> -> vector<4x128xf32>
    %213 = arith.addf %206, %212 : vector<4x128xf32>
    %214 = vector.broadcast %191 : vector<1x128xf32> to vector<4x128xf32>
    %215 = arith.addf %213, %214 : vector<4x128xf32>
    %216 = vector.shape_cast %215 : vector<4x128xf32> to vector<1x4x128xf32>
    %cst_193 = arith.constant dense<0.000000e+00> : vector<1xf32>
    %217 = vector.multi_reduction <add>, %216, %cst_193 [1, 2] : vector<1x4x128xf32> to vector<1xf32>
    %218 = vector.shape_cast %217 : vector<1xf32> to vector<1x1x1xf32>
    %219 = vector.extract %218[0, 0, 0] : f32 from vector<1x1x1xf32>
    %220 = vector.broadcast %219 : f32 to vector<1x1xf32>
    %221 = arith.mulf %215, %215 : vector<4x128xf32>
    %222 = vector.shape_cast %221 : vector<4x128xf32> to vector<1x4x128xf32>
    %cst_194 = arith.constant dense<0.000000e+00> : vector<1xf32>
    %223 = vector.multi_reduction <add>, %222, %cst_194 [1, 2] : vector<1x4x128xf32> to vector<1xf32>
    %224 = vector.shape_cast %223 : vector<1xf32> to vector<1x1x1xf32>
    %225 = vector.extract %224[0, 0, 0] : f32 from vector<1x1x1xf32>
    %226 = vector.broadcast %225 : f32 to vector<1x1xf32>
    %cst_195 = arith.constant 5.120000e+02 : f32
    %227 = vector.broadcast %cst_195 : f32 to vector<1x1xf32>
    %228 = arith.divf %220, %227 : vector<1x1xf32>
    %cst_196 = arith.constant 5.120000e+02 : f32
    %229 = vector.broadcast %cst_196 : f32 to vector<1x1xf32>
    %230 = arith.mulf %229, %228 : vector<1x1xf32>
    %231 = arith.mulf %230, %228 : vector<1x1xf32>
    %232 = arith.subf %226, %231 : vector<1x1xf32>
    %cst_197 = arith.constant 0.000000e+00 : f32
    %233 = vector.broadcast %cst_197 : f32 to vector<1x1xf32>
    %234 = arith.maximumf %232, %233 : vector<1x1xf32>
    %cst_198 = arith.constant 5.110000e+02 : f32
    %235 = vector.broadcast %cst_198 : f32 to vector<1x1xf32>
    %236 = arith.divf %234, %235 : vector<1x1xf32>
    %237 = math.sqrt %236 : vector<1x1xf32>
    %238 = vector.broadcast %228 : vector<1x1xf32> to vector<4x128xf32>
    %239 = arith.subf %215, %238 : vector<4x128xf32>
    %cst_199 = arith.constant 9.99999974E-6 : f32
    %240 = vector.broadcast %cst_199 : f32 to vector<1x1xf32>
    %241 = arith.addf %237, %240 : vector<1x1xf32>
    %242 = tpu.reciprocal %241 : vector<1x1xf32> -> vector<1x1xf32>
    %243 = vector.broadcast %242 : vector<1x1xf32> to vector<4x128xf32>
    %244 = arith.mulf %239, %243 : vector<4x128xf32>
    %245 = vector.broadcast %192 : vector<1x128xf32> to vector<4x128xf32>
    %246 = arith.mulf %244, %245 : vector<4x128xf32>
    %247 = vector.broadcast %193 : vector<1x128xf32> to vector<4x128xf32>
    %248 = arith.addf %246, %247 : vector<4x128xf32>
    %cst_200 = arith.constant 0.000000e+00 : f32
    %249 = vector.broadcast %cst_200 : f32 to vector<4x128xf32>
    %250 = arith.maximumf %248, %249 : vector<4x128xf32>
    %c0_201 = arith.constant 0 : index
    %c0_202 = arith.constant 0 : index
    %251 = vector.load %arg24[%c0_201, %c0_202] : memref<1x128xf32, #tpu.memory_space<vmem>>, vector<1x128xf32>
    %c0_203 = arith.constant 0 : index
    %c0_204 = arith.constant 0 : index
    %252 = vector.load %arg25[%c0_203, %c0_204] : memref<1x128xf32, #tpu.memory_space<vmem>>, vector<1x128xf32>
    %c0_205 = arith.constant 0 : index
    %c0_206 = arith.constant 0 : index
    %253 = vector.load %arg26[%c0_205, %c0_206] : memref<1x128xf32, #tpu.memory_space<vmem>>, vector<1x128xf32>
    %c0_207 = arith.constant 0 : index
    %c0_208 = arith.constant 0 : index
    %c0_209 = arith.constant 0 : index
    %254 = vector.load %arg22[%c0_207, %c0_208, %c0_209] : memref<3x4x4xf32, #tpu.memory_space<vmem>>, vector<1x4x4xf32>
    %255 = vector.shape_cast %254 : vector<1x4x4xf32> to vector<4x4xf32>
    %cst_210 = arith.constant dense<0.000000e+00> : vector<4x128xf32>
    %256 = tpu.matmul %255, %250, %cst_210 {dimension_numbers = #tpu.dot_dimension_numbers<[1], [0], [0], [1], [0, 0, 1, 1], [], []>} : vector<4x4xf32>, vector<4x128xf32>, vector<4x128xf32> -> vector<4x128xf32>
    %c0_211 = arith.constant 0 : index
    %c0_212 = arith.constant 0 : index
    %c0_213 = arith.constant 0 : index
    %257 = vector.load %arg23[%c0_211, %c0_212, %c0_213] : memref<3x128x128xf32, #tpu.memory_space<vmem>>, vector<1x128x128xf32>
    %258 = vector.shape_cast %257 : vector<1x128x128xf32> to vector<128x128xf32>
    %cst_214 = arith.constant dense<0.000000e+00> : vector<4x128xf32>
    %259 = tpu.matmul %256, %258, %cst_214 {dimension_numbers = #tpu.dot_dimension_numbers<[1], [0], [0], [1], [0, 0, 1, 1], [], []>} : vector<4x128xf32>, vector<128x128xf32>, vector<4x128xf32> -> vector<4x128xf32>
    %c1_215 = arith.constant 1 : index
    %c0_216 = arith.constant 0 : index
    %c0_217 = arith.constant 0 : index
    %260 = vector.load %arg22[%c1_215, %c0_216, %c0_217] : memref<3x4x4xf32, #tpu.memory_space<vmem>>, vector<1x4x4xf32>
    %261 = vector.shape_cast %260 : vector<1x4x4xf32> to vector<4x4xf32>
    %cst_218 = arith.constant dense<0.000000e+00> : vector<4x128xf32>
    %262 = tpu.matmul %261, %250, %cst_218 {dimension_numbers = #tpu.dot_dimension_numbers<[1], [0], [0], [1], [0, 0, 1, 1], [], []>} : vector<4x4xf32>, vector<4x128xf32>, vector<4x128xf32> -> vector<4x128xf32>
    %c1_219 = arith.constant 1 : index
    %c0_220 = arith.constant 0 : index
    %c0_221 = arith.constant 0 : index
    %263 = vector.load %arg23[%c1_219, %c0_220, %c0_221] : memref<3x128x128xf32, #tpu.memory_space<vmem>>, vector<1x128x128xf32>
    %264 = vector.shape_cast %263 : vector<1x128x128xf32> to vector<128x128xf32>
    %cst_222 = arith.constant dense<0.000000e+00> : vector<4x128xf32>
    %265 = tpu.matmul %262, %264, %cst_222 {dimension_numbers = #tpu.dot_dimension_numbers<[1], [0], [0], [1], [0, 0, 1, 1], [], []>} : vector<4x128xf32>, vector<128x128xf32>, vector<4x128xf32> -> vector<4x128xf32>
    %266 = arith.addf %259, %265 : vector<4x128xf32>
    %c2_223 = arith.constant 2 : index
    %c0_224 = arith.constant 0 : index
    %c0_225 = arith.constant 0 : index
    %267 = vector.load %arg22[%c2_223, %c0_224, %c0_225] : memref<3x4x4xf32, #tpu.memory_space<vmem>>, vector<1x4x4xf32>
    %268 = vector.shape_cast %267 : vector<1x4x4xf32> to vector<4x4xf32>
    %cst_226 = arith.constant dense<0.000000e+00> : vector<4x128xf32>
    %269 = tpu.matmul %268, %250, %cst_226 {dimension_numbers = #tpu.dot_dimension_numbers<[1], [0], [0], [1], [0, 0, 1, 1], [], []>} : vector<4x4xf32>, vector<4x128xf32>, vector<4x128xf32> -> vector<4x128xf32>
    %c2_227 = arith.constant 2 : index
    %c0_228 = arith.constant 0 : index
    %c0_229 = arith.constant 0 : index
    %270 = vector.load %arg23[%c2_227, %c0_228, %c0_229] : memref<3x128x128xf32, #tpu.memory_space<vmem>>, vector<1x128x128xf32>
    %271 = vector.shape_cast %270 : vector<1x128x128xf32> to vector<128x128xf32>
    %cst_230 = arith.constant dense<0.000000e+00> : vector<4x128xf32>
    %272 = tpu.matmul %269, %271, %cst_230 {dimension_numbers = #tpu.dot_dimension_numbers<[1], [0], [0], [1], [0, 0, 1, 1], [], []>} : vector<4x128xf32>, vector<128x128xf32>, vector<4x128xf32> -> vector<4x128xf32>
    %273 = arith.addf %266, %272 : vector<4x128xf32>
    %274 = vector.broadcast %251 : vector<1x128xf32> to vector<4x128xf32>
    %275 = arith.addf %273, %274 : vector<4x128xf32>
    %276 = vector.shape_cast %275 : vector<4x128xf32> to vector<1x4x128xf32>
    %cst_231 = arith.constant dense<0.000000e+00> : vector<1xf32>
    %277 = vector.multi_reduction <add>, %276, %cst_231 [1, 2] : vector<1x4x128xf32> to vector<1xf32>
    %278 = vector.shape_cast %277 : vector<1xf32> to vector<1x1x1xf32>
    %279 = vector.extract %278[0, 0, 0] : f32 from vector<1x1x1xf32>
    %280 = vector.broadcast %279 : f32 to vector<1x1xf32>
    %281 = arith.mulf %275, %275 : vector<4x128xf32>
    %282 = vector.shape_cast %281 : vector<4x128xf32> to vector<1x4x128xf32>
    %cst_232 = arith.constant dense<0.000000e+00> : vector<1xf32>
    %283 = vector.multi_reduction <add>, %282, %cst_232 [1, 2] : vector<1x4x128xf32> to vector<1xf32>
    %284 = vector.shape_cast %283 : vector<1xf32> to vector<1x1x1xf32>
    %285 = vector.extract %284[0, 0, 0] : f32 from vector<1x1x1xf32>
    %286 = vector.broadcast %285 : f32 to vector<1x1xf32>
    %cst_233 = arith.constant 5.120000e+02 : f32
    %287 = vector.broadcast %cst_233 : f32 to vector<1x1xf32>
    %288 = arith.divf %280, %287 : vector<1x1xf32>
    %cst_234 = arith.constant 5.120000e+02 : f32
    %289 = vector.broadcast %cst_234 : f32 to vector<1x1xf32>
    %290 = arith.mulf %289, %288 : vector<1x1xf32>
    %291 = arith.mulf %290, %288 : vector<1x1xf32>
    %292 = arith.subf %286, %291 : vector<1x1xf32>
    %cst_235 = arith.constant 0.000000e+00 : f32
    %293 = vector.broadcast %cst_235 : f32 to vector<1x1xf32>
    %294 = arith.maximumf %292, %293 : vector<1x1xf32>
    %cst_236 = arith.constant 5.110000e+02 : f32
    %295 = vector.broadcast %cst_236 : f32 to vector<1x1xf32>
    %296 = arith.divf %294, %295 : vector<1x1xf32>
    %297 = math.sqrt %296 : vector<1x1xf32>
    %298 = vector.broadcast %288 : vector<1x1xf32> to vector<4x128xf32>
    %299 = arith.subf %275, %298 : vector<4x128xf32>
    %cst_237 = arith.constant 9.99999974E-6 : f32
    %300 = vector.broadcast %cst_237 : f32 to vector<1x1xf32>
    %301 = arith.addf %297, %300 : vector<1x1xf32>
    %302 = tpu.reciprocal %301 : vector<1x1xf32> -> vector<1x1xf32>
    %303 = vector.broadcast %302 : vector<1x1xf32> to vector<4x128xf32>
    %304 = arith.mulf %299, %303 : vector<4x128xf32>
    %305 = vector.broadcast %252 : vector<1x128xf32> to vector<4x128xf32>
    %306 = arith.mulf %304, %305 : vector<4x128xf32>
    %307 = vector.broadcast %253 : vector<1x128xf32> to vector<4x128xf32>
    %308 = arith.addf %306, %307 : vector<4x128xf32>
    %309 = arith.addf %308, %190 : vector<4x128xf32>
    %c0_238 = arith.constant 0 : index
    %c0_239 = arith.constant 0 : index
    %310 = vector.load %arg29[%c0_238, %c0_239] : memref<1x128xf32, #tpu.memory_space<vmem>>, vector<1x128xf32>
    %c0_240 = arith.constant 0 : index
    %c0_241 = arith.constant 0 : index
    %311 = vector.load %arg30[%c0_240, %c0_241] : memref<1x128xf32, #tpu.memory_space<vmem>>, vector<1x128xf32>
    %c0_242 = arith.constant 0 : index
    %c0_243 = arith.constant 0 : index
    %312 = vector.load %arg31[%c0_242, %c0_243] : memref<1x128xf32, #tpu.memory_space<vmem>>, vector<1x128xf32>
    %c0_244 = arith.constant 0 : index
    %c0_245 = arith.constant 0 : index
    %c0_246 = arith.constant 0 : index
    %313 = vector.load %arg27[%c0_244, %c0_245, %c0_246] : memref<3x4x4xf32, #tpu.memory_space<vmem>>, vector<1x4x4xf32>
    %314 = vector.shape_cast %313 : vector<1x4x4xf32> to vector<4x4xf32>
    %cst_247 = arith.constant dense<0.000000e+00> : vector<4x128xf32>
    %315 = tpu.matmul %314, %309, %cst_247 {dimension_numbers = #tpu.dot_dimension_numbers<[1], [0], [0], [1], [0, 0, 1, 1], [], []>} : vector<4x4xf32>, vector<4x128xf32>, vector<4x128xf32> -> vector<4x128xf32>
    %c0_248 = arith.constant 0 : index
    %c0_249 = arith.constant 0 : index
    %c0_250 = arith.constant 0 : index
    %316 = vector.load %arg28[%c0_248, %c0_249, %c0_250] : memref<3x128x128xf32, #tpu.memory_space<vmem>>, vector<1x128x128xf32>
    %317 = vector.shape_cast %316 : vector<1x128x128xf32> to vector<128x128xf32>
    %cst_251 = arith.constant dense<0.000000e+00> : vector<4x128xf32>
    %318 = tpu.matmul %315, %317, %cst_251 {dimension_numbers = #tpu.dot_dimension_numbers<[1], [0], [0], [1], [0, 0, 1, 1], [], []>} : vector<4x128xf32>, vector<128x128xf32>, vector<4x128xf32> -> vector<4x128xf32>
    %c1_252 = arith.constant 1 : index
    %c0_253 = arith.constant 0 : index
    %c0_254 = arith.constant 0 : index
    %319 = vector.load %arg27[%c1_252, %c0_253, %c0_254] : memref<3x4x4xf32, #tpu.memory_space<vmem>>, vector<1x4x4xf32>
    %320 = vector.shape_cast %319 : vector<1x4x4xf32> to vector<4x4xf32>
    %cst_255 = arith.constant dense<0.000000e+00> : vector<4x128xf32>
    %321 = tpu.matmul %320, %309, %cst_255 {dimension_numbers = #tpu.dot_dimension_numbers<[1], [0], [0], [1], [0, 0, 1, 1], [], []>} : vector<4x4xf32>, vector<4x128xf32>, vector<4x128xf32> -> vector<4x128xf32>
    %c1_256 = arith.constant 1 : index
    %c0_257 = arith.constant 0 : index
    %c0_258 = arith.constant 0 : index
    %322 = vector.load %arg28[%c1_256, %c0_257, %c0_258] : memref<3x128x128xf32, #tpu.memory_space<vmem>>, vector<1x128x128xf32>
    %323 = vector.shape_cast %322 : vector<1x128x128xf32> to vector<128x128xf32>
    %cst_259 = arith.constant dense<0.000000e+00> : vector<4x128xf32>
    %324 = tpu.matmul %321, %323, %cst_259 {dimension_numbers = #tpu.dot_dimension_numbers<[1], [0], [0], [1], [0, 0, 1, 1], [], []>} : vector<4x128xf32>, vector<128x128xf32>, vector<4x128xf32> -> vector<4x128xf32>
    %325 = arith.addf %318, %324 : vector<4x128xf32>
    %c2_260 = arith.constant 2 : index
    %c0_261 = arith.constant 0 : index
    %c0_262 = arith.constant 0 : index
    %326 = vector.load %arg27[%c2_260, %c0_261, %c0_262] : memref<3x4x4xf32, #tpu.memory_space<vmem>>, vector<1x4x4xf32>
    %327 = vector.shape_cast %326 : vector<1x4x4xf32> to vector<4x4xf32>
    %cst_263 = arith.constant dense<0.000000e+00> : vector<4x128xf32>
    %328 = tpu.matmul %327, %309, %cst_263 {dimension_numbers = #tpu.dot_dimension_numbers<[1], [0], [0], [1], [0, 0, 1, 1], [], []>} : vector<4x4xf32>, vector<4x128xf32>, vector<4x128xf32> -> vector<4x128xf32>
    %c2_264 = arith.constant 2 : index
    %c0_265 = arith.constant 0 : index
    %c0_266 = arith.constant 0 : index
    %329 = vector.load %arg28[%c2_264, %c0_265, %c0_266] : memref<3x128x128xf32, #tpu.memory_space<vmem>>, vector<1x128x128xf32>
    %330 = vector.shape_cast %329 : vector<1x128x128xf32> to vector<128x128xf32>
    %cst_267 = arith.constant dense<0.000000e+00> : vector<4x128xf32>
    %331 = tpu.matmul %328, %330, %cst_267 {dimension_numbers = #tpu.dot_dimension_numbers<[1], [0], [0], [1], [0, 0, 1, 1], [], []>} : vector<4x128xf32>, vector<128x128xf32>, vector<4x128xf32> -> vector<4x128xf32>
    %332 = arith.addf %325, %331 : vector<4x128xf32>
    %333 = vector.broadcast %310 : vector<1x128xf32> to vector<4x128xf32>
    %334 = arith.addf %332, %333 : vector<4x128xf32>
    %335 = vector.shape_cast %334 : vector<4x128xf32> to vector<1x4x128xf32>
    %cst_268 = arith.constant dense<0.000000e+00> : vector<1xf32>
    %336 = vector.multi_reduction <add>, %335, %cst_268 [1, 2] : vector<1x4x128xf32> to vector<1xf32>
    %337 = vector.shape_cast %336 : vector<1xf32> to vector<1x1x1xf32>
    %338 = vector.extract %337[0, 0, 0] : f32 from vector<1x1x1xf32>
    %339 = vector.broadcast %338 : f32 to vector<1x1xf32>
    %340 = arith.mulf %334, %334 : vector<4x128xf32>
    %341 = vector.shape_cast %340 : vector<4x128xf32> to vector<1x4x128xf32>
    %cst_269 = arith.constant dense<0.000000e+00> : vector<1xf32>
    %342 = vector.multi_reduction <add>, %341, %cst_269 [1, 2] : vector<1x4x128xf32> to vector<1xf32>
    %343 = vector.shape_cast %342 : vector<1xf32> to vector<1x1x1xf32>
    %344 = vector.extract %343[0, 0, 0] : f32 from vector<1x1x1xf32>
    %345 = vector.broadcast %344 : f32 to vector<1x1xf32>
    %cst_270 = arith.constant 5.120000e+02 : f32
    %346 = vector.broadcast %cst_270 : f32 to vector<1x1xf32>
    %347 = arith.divf %339, %346 : vector<1x1xf32>
    %cst_271 = arith.constant 5.120000e+02 : f32
    %348 = vector.broadcast %cst_271 : f32 to vector<1x1xf32>
    %349 = arith.mulf %348, %347 : vector<1x1xf32>
    %350 = arith.mulf %349, %347 : vector<1x1xf32>
    %351 = arith.subf %345, %350 : vector<1x1xf32>
    %cst_272 = arith.constant 0.000000e+00 : f32
    %352 = vector.broadcast %cst_272 : f32 to vector<1x1xf32>
    %353 = arith.maximumf %351, %352 : vector<1x1xf32>
    %cst_273 = arith.constant 5.110000e+02 : f32
    %354 = vector.broadcast %cst_273 : f32 to vector<1x1xf32>
    %355 = arith.divf %353, %354 : vector<1x1xf32>
    %356 = math.sqrt %355 : vector<1x1xf32>
    %357 = vector.broadcast %347 : vector<1x1xf32> to vector<4x128xf32>
    %358 = arith.subf %334, %357 : vector<4x128xf32>
    %cst_274 = arith.constant 9.99999974E-6 : f32
    %359 = vector.broadcast %cst_274 : f32 to vector<1x1xf32>
    %360 = arith.addf %356, %359 : vector<1x1xf32>
    %361 = tpu.reciprocal %360 : vector<1x1xf32> -> vector<1x1xf32>
    %362 = vector.broadcast %361 : vector<1x1xf32> to vector<4x128xf32>
    %363 = arith.mulf %358, %362 : vector<4x128xf32>
    %364 = vector.broadcast %311 : vector<1x128xf32> to vector<4x128xf32>
    %365 = arith.mulf %363, %364 : vector<4x128xf32>
    %366 = vector.broadcast %312 : vector<1x128xf32> to vector<4x128xf32>
    %367 = arith.addf %365, %366 : vector<4x128xf32>
    %cst_275 = arith.constant 0.000000e+00 : f32
    %368 = vector.broadcast %cst_275 : f32 to vector<4x128xf32>
    %369 = arith.maximumf %367, %368 : vector<4x128xf32>
    %c0_276 = arith.constant 0 : index
    %c0_277 = arith.constant 0 : index
    %370 = vector.load %arg34[%c0_276, %c0_277] : memref<1x128xf32, #tpu.memory_space<vmem>>, vector<1x128xf32>
    %c0_278 = arith.constant 0 : index
    %c0_279 = arith.constant 0 : index
    %371 = vector.load %arg35[%c0_278, %c0_279] : memref<1x128xf32, #tpu.memory_space<vmem>>, vector<1x128xf32>
    %c0_280 = arith.constant 0 : index
    %c0_281 = arith.constant 0 : index
    %372 = vector.load %arg36[%c0_280, %c0_281] : memref<1x128xf32, #tpu.memory_space<vmem>>, vector<1x128xf32>
    %c0_282 = arith.constant 0 : index
    %c0_283 = arith.constant 0 : index
    %c0_284 = arith.constant 0 : index
    %373 = vector.load %arg32[%c0_282, %c0_283, %c0_284] : memref<3x4x4xf32, #tpu.memory_space<vmem>>, vector<1x4x4xf32>
    %374 = vector.shape_cast %373 : vector<1x4x4xf32> to vector<4x4xf32>
    %cst_285 = arith.constant dense<0.000000e+00> : vector<4x128xf32>
    %375 = tpu.matmul %374, %369, %cst_285 {dimension_numbers = #tpu.dot_dimension_numbers<[1], [0], [0], [1], [0, 0, 1, 1], [], []>} : vector<4x4xf32>, vector<4x128xf32>, vector<4x128xf32> -> vector<4x128xf32>
    %c0_286 = arith.constant 0 : index
    %c0_287 = arith.constant 0 : index
    %c0_288 = arith.constant 0 : index
    %376 = vector.load %arg33[%c0_286, %c0_287, %c0_288] : memref<3x128x128xf32, #tpu.memory_space<vmem>>, vector<1x128x128xf32>
    %377 = vector.shape_cast %376 : vector<1x128x128xf32> to vector<128x128xf32>
    %cst_289 = arith.constant dense<0.000000e+00> : vector<4x128xf32>
    %378 = tpu.matmul %375, %377, %cst_289 {dimension_numbers = #tpu.dot_dimension_numbers<[1], [0], [0], [1], [0, 0, 1, 1], [], []>} : vector<4x128xf32>, vector<128x128xf32>, vector<4x128xf32> -> vector<4x128xf32>
    %c1_290 = arith.constant 1 : index
    %c0_291 = arith.constant 0 : index
    %c0_292 = arith.constant 0 : index
    %379 = vector.load %arg32[%c1_290, %c0_291, %c0_292] : memref<3x4x4xf32, #tpu.memory_space<vmem>>, vector<1x4x4xf32>
    %380 = vector.shape_cast %379 : vector<1x4x4xf32> to vector<4x4xf32>
    %cst_293 = arith.constant dense<0.000000e+00> : vector<4x128xf32>
    %381 = tpu.matmul %380, %369, %cst_293 {dimension_numbers = #tpu.dot_dimension_numbers<[1], [0], [0], [1], [0, 0, 1, 1], [], []>} : vector<4x4xf32>, vector<4x128xf32>, vector<4x128xf32> -> vector<4x128xf32>
    %c1_294 = arith.constant 1 : index
    %c0_295 = arith.constant 0 : index
    %c0_296 = arith.constant 0 : index
    %382 = vector.load %arg33[%c1_294, %c0_295, %c0_296] : memref<3x128x128xf32, #tpu.memory_space<vmem>>, vector<1x128x128xf32>
    %383 = vector.shape_cast %382 : vector<1x128x128xf32> to vector<128x128xf32>
    %cst_297 = arith.constant dense<0.000000e+00> : vector<4x128xf32>
    %384 = tpu.matmul %381, %383, %cst_297 {dimension_numbers = #tpu.dot_dimension_numbers<[1], [0], [0], [1], [0, 0, 1, 1], [], []>} : vector<4x128xf32>, vector<128x128xf32>, vector<4x128xf32> -> vector<4x128xf32>
    %385 = arith.addf %378, %384 : vector<4x128xf32>
    %c2_298 = arith.constant 2 : index
    %c0_299 = arith.constant 0 : index
    %c0_300 = arith.constant 0 : index
    %386 = vector.load %arg32[%c2_298, %c0_299, %c0_300] : memref<3x4x4xf32, #tpu.memory_space<vmem>>, vector<1x4x4xf32>
    %387 = vector.shape_cast %386 : vector<1x4x4xf32> to vector<4x4xf32>
    %cst_301 = arith.constant dense<0.000000e+00> : vector<4x128xf32>
    %388 = tpu.matmul %387, %369, %cst_301 {dimension_numbers = #tpu.dot_dimension_numbers<[1], [0], [0], [1], [0, 0, 1, 1], [], []>} : vector<4x4xf32>, vector<4x128xf32>, vector<4x128xf32> -> vector<4x128xf32>
    %c2_302 = arith.constant 2 : index
    %c0_303 = arith.constant 0 : index
    %c0_304 = arith.constant 0 : index
    %389 = vector.load %arg33[%c2_302, %c0_303, %c0_304] : memref<3x128x128xf32, #tpu.memory_space<vmem>>, vector<1x128x128xf32>
    %390 = vector.shape_cast %389 : vector<1x128x128xf32> to vector<128x128xf32>
    %cst_305 = arith.constant dense<0.000000e+00> : vector<4x128xf32>
    %391 = tpu.matmul %388, %390, %cst_305 {dimension_numbers = #tpu.dot_dimension_numbers<[1], [0], [0], [1], [0, 0, 1, 1], [], []>} : vector<4x128xf32>, vector<128x128xf32>, vector<4x128xf32> -> vector<4x128xf32>
    %392 = arith.addf %385, %391 : vector<4x128xf32>
    %393 = vector.broadcast %370 : vector<1x128xf32> to vector<4x128xf32>
    %394 = arith.addf %392, %393 : vector<4x128xf32>
    %395 = vector.shape_cast %394 : vector<4x128xf32> to vector<1x4x128xf32>
    %cst_306 = arith.constant dense<0.000000e+00> : vector<1xf32>
    %396 = vector.multi_reduction <add>, %395, %cst_306 [1, 2] : vector<1x4x128xf32> to vector<1xf32>
    %397 = vector.shape_cast %396 : vector<1xf32> to vector<1x1x1xf32>
    %398 = vector.extract %397[0, 0, 0] : f32 from vector<1x1x1xf32>
    %399 = vector.broadcast %398 : f32 to vector<1x1xf32>
    %400 = arith.mulf %394, %394 : vector<4x128xf32>
    %401 = vector.shape_cast %400 : vector<4x128xf32> to vector<1x4x128xf32>
    %cst_307 = arith.constant dense<0.000000e+00> : vector<1xf32>
    %402 = vector.multi_reduction <add>, %401, %cst_307 [1, 2] : vector<1x4x128xf32> to vector<1xf32>
    %403 = vector.shape_cast %402 : vector<1xf32> to vector<1x1x1xf32>
    %404 = vector.extract %403[0, 0, 0] : f32 from vector<1x1x1xf32>
    %405 = vector.broadcast %404 : f32 to vector<1x1xf32>
    %cst_308 = arith.constant 5.120000e+02 : f32
    %406 = vector.broadcast %cst_308 : f32 to vector<1x1xf32>
    %407 = arith.divf %399, %406 : vector<1x1xf32>
    %cst_309 = arith.constant 5.120000e+02 : f32
    %408 = vector.broadcast %cst_309 : f32 to vector<1x1xf32>
    %409 = arith.mulf %408, %407 : vector<1x1xf32>
    %410 = arith.mulf %409, %407 : vector<1x1xf32>
    %411 = arith.subf %405, %410 : vector<1x1xf32>
    %cst_310 = arith.constant 0.000000e+00 : f32
    %412 = vector.broadcast %cst_310 : f32 to vector<1x1xf32>
    %413 = arith.maximumf %411, %412 : vector<1x1xf32>
    %cst_311 = arith.constant 5.110000e+02 : f32
    %414 = vector.broadcast %cst_311 : f32 to vector<1x1xf32>
    %415 = arith.divf %413, %414 : vector<1x1xf32>
    %416 = math.sqrt %415 : vector<1x1xf32>
    %417 = vector.broadcast %407 : vector<1x1xf32> to vector<4x128xf32>
    %418 = arith.subf %394, %417 : vector<4x128xf32>
    %cst_312 = arith.constant 9.99999974E-6 : f32
    %419 = vector.broadcast %cst_312 : f32 to vector<1x1xf32>
    %420 = arith.addf %416, %419 : vector<1x1xf32>
    %421 = tpu.reciprocal %420 : vector<1x1xf32> -> vector<1x1xf32>
    %422 = vector.broadcast %421 : vector<1x1xf32> to vector<4x128xf32>
    %423 = arith.mulf %418, %422 : vector<4x128xf32>
    %424 = vector.broadcast %371 : vector<1x128xf32> to vector<4x128xf32>
    %425 = arith.mulf %423, %424 : vector<4x128xf32>
    %426 = vector.broadcast %372 : vector<1x128xf32> to vector<4x128xf32>
    %427 = arith.addf %425, %426 : vector<4x128xf32>
    %428 = arith.addf %427, %309 : vector<4x128xf32>
    %c0_313 = arith.constant 0 : index
    %c0_314 = arith.constant 0 : index
    %c0_315 = arith.constant 0 : index
    %429 = vector.load %arg37[%c0_313, %c0_314, %c0_315] : memref<1x4x128xf32, #tpu.memory_space<vmem>>, vector<1x4x128xf32>
    %430 = vector.shape_cast %429 : vector<1x4x128xf32> to vector<4x128xf32>
    %431 = vector.shape_cast %428 : vector<4x128xf32> to vector<1x4x128xf32>
    tpu.vector_store %arg37[%c0_313, %c0_314, %c0_315], %431 {strides = array<i32>} : memref<1x4x128xf32, #tpu.memory_space<vmem>>, vector<1x4x128xf32>,
    return
  }
  func.func @transform_0(%arg0: i32) -> (i32, i32, i32) {
    %c0_i32 = arith.constant 0 : i32
    %c0_i32_0 = arith.constant 0 : i32
    %c0_i32_1 = arith.constant 0 : i32
    return %arg0, %c0_i32, %c0_i32_0 : i32, i32, i32
  }
  func.func @transform_1(%arg0: i32) -> (i32, i32, i32) {
    %c0_i32 = arith.constant 0 : i32
    %c0_i32_0 = arith.constant 0 : i32
    %c0_i32_1 = arith.constant 0 : i32
    %c0_i32_2 = arith.constant 0 : i32
    return %c0_i32, %c0_i32_0, %c0_i32_1 : i32, i32, i32
  }
  func.func @transform_2(%arg0: i32) -> (i32, i32, i32) {
    %c0_i32 = arith.constant 0 : i32
    %c0_i32_0 = arith.constant 0 : i32
    %c0_i32_1 = arith.constant 0 : i32
    %c0_i32_2 = arith.constant 0 : i32
    return %c0_i32, %c0_i32_0, %c0_i32_1 : i32, i32, i32
  }
  func.func @transform_3(%arg0: i32) -> (i32, i32) {
    %c0_i32 = arith.constant 0 : i32
    %c0_i32_0 = arith.constant 0 : i32
    %c0_i32_1 = arith.constant 0 : i32
    return %c0_i32, %c0_i32_0 : i32, i32
  }
  func.func @transform_4(%arg0: i32) -> (i32, i32) {
    %c0_i32 = arith.constant 0 : i32
    %c0_i32_0 = arith.constant 0 : i32
    %c0_i32_1 = arith.constant 0 : i32
    return %c0_i32, %c0_i32_0 : i32, i32
  }
  func.func @transform_5(%arg0: i32) -> (i32, i32) {
    %c0_i32 = arith.constant 0 : i32
    %c0_i32_0 = arith.constant 0 : i32
    %c0_i32_1 = arith.constant 0 : i32
    return %c0_i32, %c0_i32_0 : i32, i32
  }
  func.func @transform_6(%arg0: i32) -> (i32, i32, i32) {
    %c0_i32 = arith.constant 0 : i32
    %c0_i32_0 = arith.constant 0 : i32
    %c0_i32_1 = arith.constant 0 : i32
    %c0_i32_2 = arith.constant 0 : i32
    return %c0_i32, %c0_i32_0, %c0_i32_1 : i32, i32, i32
  }
  func.func @transform_7(%arg0: i32) -> (i32, i32, i32) {
    %c0_i32 = arith.constant 0 : i32
    %c0_i32_0 = arith.constant 0 : i32
    %c0_i32_1 = arith.constant 0 : i32
    %c0_i32_2 = arith.constant 0 : i32
    return %c0_i32, %c0_i32_0, %c0_i32_1 : i32, i32, i32
  }
  func.func @transform_8(%arg0: i32) -> (i32, i32) {
    %c0_i32 = arith.constant 0 : i32
    %c0_i32_0 = arith.constant 0 : i32
    %c0_i32_1 = arith.constant 0 : i32
    return %c0_i32, %c0_i32_0 : i32, i32
  }
  func.func @transform_9(%arg0: i32) -> (i32, i32) {
    %c0_i32 = arith.constant 0 : i32
    %c0_i32_0 = arith.constant 0 : i32
    %c0_i32_1 = arith.constant 0 : i32
    return %c0_i32, %c0_i32_0 : i32, i32
  }
  func.func @transform_10(%arg0: i32) -> (i32, i32) {
    %c0_i32 = arith.constant 0 : i32
    %c0_i32_0 = arith.constant 0 : i32
    %c0_i32_1 = arith.constant 0 : i32
    return %c0_i32, %c0_i32_0 : i32, i32
  }
  func.func @transform_11(%arg0: i32) -> (i32, i32, i32) {
    %c0_i32 = arith.constant 0 : i32
    %c0_i32_0 = arith.constant 0 : i32
    %c0_i32_1 = arith.constant 0 : i32
    %c0_i32_2 = arith.constant 0 : i32
    return %c0_i32, %c0_i32_0, %c0_i32_1 : i32, i32, i32
  }
  func.func @transform_12(%arg0: i32) -> (i32, i32, i32) {
    %c0_i32 = arith.constant 0 : i32
    %c0_i32_0 = arith.constant 0 : i32
    %c0_i32_1 = arith.constant 0 : i32
    %c0_i32_2 = arith.constant 0 : i32
    return %c0_i32, %c0_i32_0, %c0_i32_1 : i32, i32, i32
  }
  func.func @transform_13(%arg0: i32) -> (i32, i32) {
    %c0_i32 = arith.constant 0 : i32
    %c0_i32_0 = arith.constant 0 : i32
    %c0_i32_1 = arith.constant 0 : i32
    return %c0_i32, %c0_i32_0 : i32, i32
  }
  func.func @transform_14(%arg0: i32) -> (i32, i32) {
    %c0_i32 = arith.constant 0 : i32
    %c0_i32_0 = arith.constant 0 : i32
    %c0_i32_1 = arith.constant 0 : i32
    return %c0_i32, %c0_i32_0 : i32, i32
  }
  func.func @transform_15(%arg0: i32) -> (i32, i32) {
    %c0_i32 = arith.constant 0 : i32
    %c0_i32_0 = arith.constant 0 : i32
    %c0_i32_1 = arith.constant 0 : i32
    return %c0_i32, %c0_i32_0 : i32, i32
  }
  func.func @transform_16(%arg0: i32) -> (i32, i32, i32) {
    %c0_i32 = arith.constant 0 : i32
    %c0_i32_0 = arith.constant 0 : i32
    %c0_i32_1 = arith.constant 0 : i32
    %c0_i32_2 = arith.constant 0 : i32
    return %c0_i32, %c0_i32_0, %c0_i32_1 : i32, i32, i32
  }
  func.func @transform_17(%arg0: i32) -> (i32, i32, i32) {
    %c0_i32 = arith.constant 0 : i32
    %c0_i32_0 = arith.constant 0 : i32
    %c0_i32_1 = arith.constant 0 : i32
    %c0_i32_2 = arith.constant 0 : i32
    return %c0_i32, %c0_i32_0, %c0_i32_1 : i32, i32, i32
  }
  func.func @transform_18(%arg0: i32) -> (i32, i32) {
    %c0_i32 = arith.constant 0 : i32
    %c0_i32_0 = arith.constant 0 : i32
    %c0_i32_1 = arith.constant 0 : i32
    return %c0_i32, %c0_i32_0 : i32, i32
  }
  func.func @transform_19(%arg0: i32) -> (i32, i32) {
    %c0_i32 = arith.constant 0 : i32
    %c0_i32_0 = arith.constant 0 : i32
    %c0_i32_1 = arith.constant 0 : i32
    return %c0_i32, %c0_i32_0 : i32, i32
  }
  func.func @transform_20(%arg0: i32) -> (i32, i32) {
    %c0_i32 = arith.constant 0 : i32
    %c0_i32_0 = arith.constant 0 : i32
    %c0_i32_1 = arith.constant 0 : i32
    return %c0_i32, %c0_i32_0 : i32, i32
  }
  func.func @transform_21(%arg0: i32) -> (i32, i32, i32) {
    %c0_i32 = arith.constant 0 : i32
    %c0_i32_0 = arith.constant 0 : i32
    %c0_i32_1 = arith.constant 0 : i32
    %c0_i32_2 = arith.constant 0 : i32
    return %c0_i32, %c0_i32_0, %c0_i32_1 : i32, i32, i32
  }
  func.func @transform_22(%arg0: i32) -> (i32, i32, i32) {
    %c0_i32 = arith.constant 0 : i32
    %c0_i32_0 = arith.constant 0 : i32
    %c0_i32_1 = arith.constant 0 : i32
    %c0_i32_2 = arith.constant 0 : i32
    return %c0_i32, %c0_i32_0, %c0_i32_1 : i32, i32, i32
  }
  func.func @transform_23(%arg0: i32) -> (i32, i32) {
    %c0_i32 = arith.constant 0 : i32
    %c0_i32_0 = arith.constant 0 : i32
    %c0_i32_1 = arith.constant 0 : i32
    return %c0_i32, %c0_i32_0 : i32, i32
  }
  func.func @transform_24(%arg0: i32) -> (i32, i32) {
    %c0_i32 = arith.constant 0 : i32
    %c0_i32_0 = arith.constant 0 : i32
    %c0_i32_1 = arith.constant 0 : i32
    return %c0_i32, %c0_i32_0 : i32, i32
  }
  func.func @transform_25(%arg0: i32) -> (i32, i32) {
    %c0_i32 = arith.constant 0 : i32
    %c0_i32_0 = arith.constant 0 : i32
    %c0_i32_1 = arith.constant 0 : i32
    return %c0_i32, %c0_i32_0 : i32, i32
  }
  func.func @transform_26(%arg0: i32) -> (i32, i32, i32) {
    %c0_i32 = arith.constant 0 : i32
    %c0_i32_0 = arith.constant 0 : i32
    %c0_i32_1 = arith.constant 0 : i32
    %c0_i32_2 = arith.constant 0 : i32
    return %c0_i32, %c0_i32_0, %c0_i32_1 : i32, i32, i32
  }
  func.func @transform_27(%arg0: i32) -> (i32, i32, i32) {
    %c0_i32 = arith.constant 0 : i32
    %c0_i32_0 = arith.constant 0 : i32
    %c0_i32_1 = arith.constant 0 : i32
    %c0_i32_2 = arith.constant 0 : i32
    return %c0_i32, %c0_i32_0, %c0_i32_1 : i32, i32, i32
  }
  func.func @transform_28(%arg0: i32) -> (i32, i32) {
    %c0_i32 = arith.constant 0 : i32
    %c0_i32_0 = arith.constant 0 : i32
    %c0_i32_1 = arith.constant 0 : i32
    return %c0_i32, %c0_i32_0 : i32, i32
  }
  func.func @transform_29(%arg0: i32) -> (i32, i32) {
    %c0_i32 = arith.constant 0 : i32
    %c0_i32_0 = arith.constant 0 : i32
    %c0_i32_1 = arith.constant 0 : i32
    return %c0_i32, %c0_i32_0 : i32, i32
  }
  func.func @transform_30(%arg0: i32) -> (i32, i32) {
    %c0_i32 = arith.constant 0 : i32
    %c0_i32_0 = arith.constant 0 : i32
    %c0_i32_1 = arith.constant 0 : i32
    return %c0_i32, %c0_i32_0 : i32, i32
  }
  func.func @transform_31(%arg0: i32) -> (i32, i32, i32) {
    %c0_i32 = arith.constant 0 : i32
    %c0_i32_0 = arith.constant 0 : i32
    %c0_i32_1 = arith.constant 0 : i32
    %c0_i32_2 = arith.constant 0 : i32
    return %c0_i32, %c0_i32_0, %c0_i32_1 : i32, i32, i32
  }
  func.func @transform_32(%arg0: i32) -> (i32, i32, i32) {
    %c0_i32 = arith.constant 0 : i32
    %c0_i32_0 = arith.constant 0 : i32
    %c0_i32_1 = arith.constant 0 : i32
    %c0_i32_2 = arith.constant 0 : i32
    return %c0_i32, %c0_i32_0, %c0_i32_1 : i32, i32, i32
  }
  func.func @transform_33(%arg0: i32) -> (i32, i32) {
    %c0_i32 = arith.constant 0 : i32
    %c0_i32_0 = arith.constant 0 : i32
    %c0_i32_1 = arith.constant 0 : i32
    return %c0_i32, %c0_i32_0 : i32, i32
  }
  func.func @transform_34(%arg0: i32) -> (i32, i32) {
    %c0_i32 = arith.constant 0 : i32
    %c0_i32_0 = arith.constant 0 : i32
    %c0_i32_1 = arith.constant 0 : i32
    return %c0_i32, %c0_i32_0 : i32, i32
  }
  func.func @transform_35(%arg0: i32) -> (i32, i32) {
    %c0_i32 = arith.constant 0 : i32
    %c0_i32_0 = arith.constant 0 : i32
    %c0_i32_1 = arith.constant 0 : i32
    return %c0_i32, %c0_i32_0 : i32, i32
  }
  func.func @transform_36(%arg0: i32) -> (i32, i32, i32) {
    %c0_i32 = arith.constant 0 : i32
    %c0_i32_0 = arith.constant 0 : i32
    %c0_i32_1 = arith.constant 0 : i32
    return %arg0, %c0_i32, %c0_i32_0 : i32, i32, i32
  }
}

</mosaic_0001>

<bundles_post_ra>
// kernel: tile.78
= control target key start
LH: loop header
LB: loop body
LE: loop exit
PB: predicated region body
PF: predicated region fallthrough
CT: control target
= control target key end

     0   :  { %s28_s0 = inlined_call_operand.vmem [shape: f32[8], index: 0, kind: input, shape index: {}]   ;;  %s29_s1 = inlined_call_operand.vmem [shape: f32[16,8], index: 1, kind: output, shape index: {}]  }
   0x1   :  { %v4_v0 = vld [vmem:[%s28_s0] ss:$0 sm:$0xff] }
   0x2   :  { %5 = vst [vmem:[%s29_s1] sm:$0xff] %v4_v0 }
   0x3   :  { %8 = vst [vmem:[%s29_s1 + $0x8] sm:$0xff] %v4_v0 }

// kernel: tile.79
= control target key start
LH: loop header
LB: loop body
LE: loop exit
PB: predicated region body
PF: predicated region fallthrough
CT: control target
= control target key end

     0   :  { %s131_s10 = smov 120   ;;  %s132_s11 = smov 104   ;;  %vm3_vm0 = vcmask 64512   ;;  %vm9_vm1 = vcmask 1048512   ;;  %vm15_vm2 = vcmask 982912   ;;  %vm21_vm3 = vcmask 917312   ;;  %s207_s0 = inlined_call_operand.vmem [shape: f32[16,8], index: 0, kind: input, shape index: {}]   ;;  %s208_s1 = inlined_call_operand.vmem [shape: f32[1,128], index: 1, kind: output, shape index: {}]  }
   0x1   :  { %v101_v0 = vld [vmem:[%s207_s0 + $0xf] sm:$0x1]   ;;  %v103_v1 = vld [vmem:[%s207_s0 + $0xd] sm:$0x1]   ;;  %v105_v2 = vld [vmem:[%s207_s0 + $0xb] sm:$0x1]  }
   0x2   :  { %7 = vrot.lane.b32.xlu0 %v101_v0, %s131_s10  ;;  %19 = vrot.lane.b32.xlu1 %v103_v1, %s132_s11  ;;  %s133_s14 = smov 88   ;;  %v102_v3 = vld [vmem:[%s207_s0 + $0xe] sm:$0x1]   ;;  %v104_v4 = vld [vmem:[%s207_s0 + $0xc] sm:$0x1]   ;;  %s134_s19 = smov 112  }
   0x3   :  { %31 = vrot.lane.b32.xlu2 %v105_v2, %s133_s14  ;;  %s135_s20 = smov 96   ;;  %v106_v5 = vld [vmem:[%s207_s0 + $0xa] sm:$0x1]   ;;  %s136_s23 = smov 80   ;;  %v107_v6 = vld [vmem:[%s207_s0 + $0x9] sm:$0x1]  }
   0x4   :  { %v108_v7 = vld [vmem:[%s207_s0 + $0x8] sm:$0x1]   ;;  %s137_s28 = smov 72   ;;  %s138_s29 = smov 64   ;;  %v109_v8 = vld [vmem:[%s207_s0 + $0x7] sm:$0x1]  }
   0x5   :  { %s139_s3 = smov 56   ;;  %v110_v9 = vld [vmem:[%s207_s0 + $0x6] sm:$0x1]   ;;  %v111_v10 = vld [vmem:[%s207_s0 + $0x5] sm:$0x1]   ;;  %s140_s8 = smov 48  }
   0x6   :  { %s141_s9 = smov 40   ;;  %v112_v11 = vld [vmem:[%s207_s0 + $0x4] sm:$0x1]   ;;  %s142_s12 = smov 32   ;;  %v113_v12 = vld [vmem:[%s207_s0 + $0x3] sm:$0x1]  }
   0x7   :  { %v114_v13 = vld [vmem:[%s207_s0 + $0x2] sm:$0x1]   ;;  %s143_s17 = smov 24   ;;  %s144_s18 = smov 16   ;;  %v115_v14 = vld [vmem:[%s207_s0 + $0x1] sm:$0x1]  }
   0x8   :  { %s145_s21 = smov 8   ;;  %v2_v15 = vld [vmem:[%s207_s0] sm:$0x1]   ;;  %vm27_vm4 = vcmask 851712   ;;  %vm33_vm5 = vcmask 786112   ;;  %vm39_vm6 = vcmask 720512  }
   0x9   :  { %4 = vst.msk [vmem:[#allocation0] sm:$0x1] %vm3_vm0, %v2_v15   ;;  %vm45_vm7 = vcmask 654912   ;;  %vm51_vm8 = vcmask 589312   ;;  %vm57_vm9 = vcmask 523712   ;;  %vm63_vm10 = vcmask 458112  }
   0xa   :  { %13 = vrot.lane.b32.xlu0 %v102_v3, %s134_s19  ;;  %25 = vrot.lane.b32.xlu1 %v104_v4, %s135_s20  ;;  %vm69_vm11 = vcmask 392512   ;;  %vm75_vm12 = vcmask 326912   ;;  %vm81_vm13 = vcmask 261312   ;;  %vm87_vm14 = vcmask 195712  }
   0xb   :  { %37 = vrot.lane.b32.xlu2 %v106_v5, %s136_s23  ;;  %vm93_vm15 = vcmask 130112  }
  0x12   :  { %43 = vrot.lane.b32.xlu0 %v107_v6, %s137_s28  ;;  %49 = vrot.lane.b32.xlu1 %v108_v7, %s138_s29 }
  0x13   :  { %55 = vrot.lane.b32.xlu2 %v109_v8, %s139_s3 }
  0x1a   :  { %61 = vrot.lane.b32.xlu0 %v110_v9, %s140_s8  ;;  %67 = vrot.lane.b32.xlu1 %v111_v10, %s141_s9 }
  0x1b   :  { %73 = vrot.lane.b32.xlu2 %v112_v11, %s142_s12 }
  0x22   :  { %79 = vrot.lane.b32.xlu0 %v113_v12, %s143_s17  ;;  %85 = vrot.lane.b32.xlu1 %v114_v13, %s144_s18 }
  0x23   :  { %91 = vrot.lane.b32.xlu2 %v115_v14, %s145_s21 }
  0x5d   :  { %v32_v16 = vpop.permute.xlu2 %31  }
  0x65   :  { %v38_v17 = vpop.permute.xlu2 %37  }
  0x6d   :  { %v56_v18 = vpop.permute.xlu2 %55  }
  0x74   :  { %v8_v19 = vpop.permute.xlu0 %7   ;;  %v20_v20 = vpop.permute.xlu1 %19  }
  0x75   :  { %10 = vst.msk [vmem:[#allocation0] sm:$0x1] %vm9_vm1, %v8_v19   ;;  %v74_v21 = vpop.permute.xlu2 %73  }
  0x7c   :  { %v14_v22 = vpop.permute.xlu0 %13   ;;  %v26_v23 = vpop.permute.xlu1 %25  }
  0x7d   :  { %16 = vst.msk [vmem:[#allocation0] sm:$0x1] %vm15_vm2, %v14_v22   ;;  %v92_v24 = vpop.permute.xlu2 %91  }
  0x7e   :  { %22 = vst.msk [vmem:[#allocation0] sm:$0x1] %vm21_vm3, %v20_v20  }
  0x7f   :  { %28 = vst.msk [vmem:[#allocation0] sm:$0x1] %vm27_vm4, %v26_v23  }
  0x80   :  { %34 = vst.msk [vmem:[#allocation0] sm:$0x1] %vm33_vm5, %v32_v16  }
  0x81   :  { %40 = vst.msk [vmem:[#allocation0] sm:$0x1] %vm39_vm6, %v38_v17  }
  0x84   :  { %v44_v25 = vpop.permute.xlu0 %43   ;;  %v50_v26 = vpop.permute.xlu1 %49  }
  0x85   :  { %46 = vst.msk [vmem:[#allocation0] sm:$0x1] %vm45_vm7, %v44_v25  }
  0x86   :  { %52 = vst.msk [vmem:[#allocation0] sm:$0x1] %vm51_vm8, %v50_v26  }
  0x87   :  { %58 = vst.msk [vmem:[#allocation0] sm:$0x1] %vm57_vm9, %v56_v18  }
  0x8c   :  { %v62_v27 = vpop.permute.xlu0 %61   ;;  %v68_v28 = vpop.permute.xlu1 %67  }
  0x8d   :  { %64 = vst.msk [vmem:[#allocation0] sm:$0x1] %vm63_vm10, %v62_v27  }
  0x8e   :  { %70 = vst.msk [vmem:[#allocation0] sm:$0x1] %vm69_vm11, %v68_v28  }
  0x8f   :  { %76 = vst.msk [vmem:[#allocation0] sm:$0x1] %vm75_vm12, %v74_v21  }
  0x94   :  { %v80_v29 = vpop.permute.xlu0 %79   ;;  %v86_v30 = vpop.permute.xlu1 %85  }
  0x95   :  { %82 = vst.msk [vmem:[#allocation0] sm:$0x1] %vm81_vm13, %v80_v29  }
  0x96   :  { %88 = vst.msk [vmem:[#allocation0] sm:$0x1] %vm87_vm14, %v86_v30  }
  0x97   :  { %94 = vst.msk [vmem:[#allocation0] sm:$0x1] %vm93_vm15, %v92_v24  }
  0x9e   :  { %v97_v31 = vld [vmem:[#allocation0] sm:$0x1] }
  0x9f   :  { %100 = vst [vmem:[%s208_s1] sm:$0x1] %v97_v31 }

// kernel: tile.83
= control target key start
LH: loop header
LB: loop body
LE: loop exit
PB: predicated region body
PF: predicated region fallthrough
CT: control target
= control target key end

     0   :  { %s22_s0 = inlined_call_operand.vmem [shape: f32[16], index: 0, kind: input, shape index: {}]   ;;  %s23_s1 = inlined_call_operand.vmem [shape: f32[8,16], index: 1, kind: output, shape index: {}]  }
   0x1   :  { %v4_v0 = vld [vmem:[%s22_s0] ss:$0 sm:$0xff] }
   0x2   :  { %5 = vst [vmem:[%s23_s1] sm:$0xff] %v4_v0 }

// kernel: tile.84
= control target key start
LH: loop header
LB: loop body
LE: loop exit
PB: predicated region body
PF: predicated region fallthrough
CT: control target
= control target key end

     0   :  { %s67_s10 = smov 112   ;;  %s68_s11 = smov 80   ;;  %vm3_vm0 = vcmask 130048   ;;  %vm9_vm1 = vcmask 1048448   ;;  %vm15_vm2 = vcmask 917248   ;;  %vm21_vm3 = vcmask 786048   ;;  %s111_s0 = inlined_call_operand.vmem [shape: f32[8,16], index: 0, kind: input, shape index: {}]   ;;  %s112_s1 = inlined_call_operand.vmem [shape: f32[1,128], index: 1, kind: output, shape index: {}]  }
   0x1   :  { %v53_v0 = vld [vmem:[%s111_s0 + $0x7] sm:$0x1]   ;;  %v55_v1 = vld [vmem:[%s111_s0 + $0x5] sm:$0x1]   ;;  %v57_v2 = vld [vmem:[%s111_s0 + $0x3] sm:$0x1]  }
   0x2   :  { %7 = vrot.lane.b32.xlu0 %v53_v0, %s67_s10  ;;  %19 = vrot.lane.b32.xlu1 %v55_v1, %s68_s11  ;;  %s69_s14 = smov 48   ;;  %v54_v3 = vld [vmem:[%s111_s0 + $0x6] sm:$0x1]   ;;  %v56_v4 = vld [vmem:[%s111_s0 + $0x4] sm:$0x1]   ;;  %s70_s21 = smov 96  }
   0x3   :  { %31 = vrot.lane.b32.xlu2 %v57_v2, %s69_s14  ;;  %v58_v5 = vld [vmem:[%s111_s0 + $0x2] sm:$0x1]   ;;  %s71_s22 = smov 64   ;;  %s72_s23 = smov 32   ;;  %v59_v6 = vld [vmem:[%s111_s0 + $0x1] sm:$0x1]  }
   0x4   :  { %s73_s26 = smov 16   ;;  %v2_v7 = vld [vmem:[%s111_s0] sm:$0x1]   ;;  %vm27_vm4 = vcmask 654848   ;;  %vm33_vm5 = vcmask 523648   ;;  %vm39_vm6 = vcmask 392448  }
   0x5   :  { %4 = vst.msk [vmem:[#allocation0] sm:$0x1] %vm3_vm0, %v2_v7   ;;  %vm45_vm7 = vcmask 261248  }
   0xa   :  { %13 = vrot.lane.b32.xlu0 %v54_v3, %s70_s21  ;;  %25 = vrot.lane.b32.xlu1 %v56_v4, %s71_s22 }
   0xb   :  { %37 = vrot.lane.b32.xlu2 %v58_v5, %s72_s23 }
  0x12   :  { %43 = vrot.lane.b32.xlu0 %v59_v6, %s73_s26 }
  0x5d   :  { %v32_v8 = vpop.permute.xlu2 %31  }
  0x65   :  { %v38_v9 = vpop.permute.xlu2 %37  }
  0x74   :  { %v8_v10 = vpop.permute.xlu0 %7   ;;  %v20_v11 = vpop.permute.xlu1 %19  }
  0x75   :  { %10 = vst.msk [vmem:[#allocation0] sm:$0x1] %vm9_vm1, %v8_v10  }
  0x7c   :  { %v14_v12 = vpop.permute.xlu0 %13   ;;  %v26_v13 = vpop.permute.xlu1 %25  }
  0x7d   :  { %16 = vst.msk [vmem:[#allocation0] sm:$0x1] %vm15_vm2, %v14_v12  }
  0x7e   :  { %22 = vst.msk [vmem:[#allocation0] sm:$0x1] %vm21_vm3, %v20_v11  }
  0x7f   :  { %28 = vst.msk [vmem:[#allocation0] sm:$0x1] %vm27_vm4, %v26_v13  }
  0x80   :  { %34 = vst.msk [vmem:[#allocation0] sm:$0x1] %vm33_vm5, %v32_v8  }
  0x81   :  { %40 = vst.msk [vmem:[#allocation0] sm:$0x1] %vm39_vm6, %v38_v9  }
  0x84   :  { %v44_v14 = vpop.permute.xlu0 %43  }
  0x85   :  { %46 = vst.msk [vmem:[#allocation0] sm:$0x1] %vm45_vm7, %v44_v14  }
  0x8c   :  { %v49_v15 = vld [vmem:[#allocation0] sm:$0x1] }
  0x8d   :  { %52 = vst [vmem:[%s112_s1] sm:$0x1] %v49_v15 }

// kernel: tile.88
= control target key start
LH: loop header
LB: loop body
LE: loop exit
PB: predicated region body
PF: predicated region fallthrough
CT: control target
= control target key end

     0   :  { %s22_s0 = inlined_call_operand.vmem [shape: f32[32], index: 0, kind: input, shape index: {}]   ;;  %s23_s1 = inlined_call_operand.vmem [shape: f32[4,32], index: 1, kind: output, shape index: {}]  }
   0x1   :  { %v4_v0 = vld [vmem:[%s22_s0] ss:$0 sm:$0xff] }
   0x2   :  { %5 = vst [vmem:[%s23_s1] sm:$0xf] %v4_v0 }

// kernel: tile.89
= control target key start
LH: loop header
LB: loop body
LE: loop exit
PB: predicated region body
PF: predicated region fallthrough
CT: control target
= control target key end

     0   :  { %s37_s8 = smov 32   ;;  %s38_s9 = smov 64   ;;  %vm7_vm0 = vcmask 261120   ;;  %vm13_vm1 = vcmask 1048320   ;;  %vm19_vm2 = vcmask 785920   ;;  %vm25_vm3 = vcmask 523520   ;;  %s55_s0 = inlined_call_operand.vmem [shape: f32[4,32], index: 0, kind: input, shape index: {}]   ;;  %s56_s1 = inlined_call_operand.vmem [shape: f32[1,128], index: 1, kind: output, shape index: {}]  }
   0x1   :  { %v4_v0 = vld [vmem:[%s55_s0] sm:$0xf]  ;;  %s36_s0 = smov 96  }
   0x2   :  { %5 = vst [vmem:[#allocation1] sm:$0xf] %v4_v0 }
   0x9   :  { %v10_v1 = vld [vmem:[#allocation1 + $0x3] sm:$0x1]   ;;  %v22_v2 = vld [vmem:[#allocation1 + $0x1] sm:$0x1]   ;;  %v16_v3 = vld [vmem:[#allocation1 + $0x2] sm:$0x1]  }
   0xa   :  { %11 = vrot.lane.b32.xlu0 %v10_v1, %s36_s0  ;;  %23 = vrot.lane.b32.xlu1 %v22_v2, %s37_s8  ;;  %v6_v4 = vld [vmem:[#allocation1] sm:$0x1]  }
   0xb   :  { %8 = vst.msk [vmem:[#allocation0] sm:$0x1] %vm7_vm0, %v6_v4  }
  0x12   :  { %17 = vrot.lane.b32.xlu0 %v16_v3, %s38_s9 }
  0x7c   :  { %v12_v5 = vpop.permute.xlu0 %11   ;;  %v24_v6 = vpop.permute.xlu1 %23  }
  0x7d   :  { %14 = vst.msk [vmem:[#allocation0] sm:$0x1] %vm13_vm1, %v12_v5  }
  0x84   :  { %v18_v7 = vpop.permute.xlu0 %17  }
  0x85   :  { %20 = vst.msk [vmem:[#allocation0] sm:$0x1] %vm19_vm2, %v18_v7  }
  0x86   :  { %26 = vst.msk [vmem:[#allocation0] sm:$0x1] %vm25_vm3, %v24_v6  }
  0x8d   :  { %v29_v8 = vld [vmem:[#allocation0] sm:$0x1] }
  0x8e   :  { %32 = vst [vmem:[%s56_s1] sm:$0x1] %v29_v8 }

// kernel: content_encoder_forward.1
= control target key start
LH: loop header
LB: loop body
LE: loop exit
PB: predicated region body
PF: predicated region fallthrough
CT: control target
= control target key end

     0   :  { %s4175_s6 = smov 1   ;;  %s4176_s10 = smov 2   ;;  %s5046_s0 = inlined_call_operand.smem [shape: u32[37], index: -1, kind: input, shape index: {}] }
   0x1   :  { %s4221_s5 = sld [smem:[%s5046_s0]]   ;;  %s4177_s14 = smov 3  }
   0x2   :  { %s4226_s9 = sld [smem:[%s5046_s0 + %s4175_s6]]   ;;  %s4178_s18 = smov 4  }
   0x3   :  { %s4231_s13 = sld [smem:[%s5046_s0 + %s4176_s10]]   ;;  %s4179_s22 = smov 5  }
   0x4   :  { %s4236_s17 = sld [smem:[%s5046_s0 + %s4177_s14]]   ;;  %s4180_s26 = smov 6  }
   0x5   :  { %s4241_s21 = sld [smem:[%s5046_s0 + %s4178_s18]]   ;;  %s4181_s30 = smov 7  }
   0x6   :  { %s4246_s25 = sld [smem:[%s5046_s0 + %s4179_s22]]   ;;  %s4182_s4 = smov 8  }
   0x7   :  { %s4251_s29 = sld [smem:[%s5046_s0 + %s4180_s26]]   ;;  %s4183_s10 = smov 9  }
   0x8   :  { %s4256_s3 = sld [smem:[%s5046_s0 + %s4181_s30]]   ;;  %s4184_s15 = smov 10  }
   0x9   :  { %s4261_s8 = sld [smem:[%s5046_s0 + %s4182_s4]]   ;;  %s4185_s20 = smov 11  }
   0xa   :  { %s4266_s14 = sld [smem:[%s5046_s0 + %s4183_s10]]   ;;  %s4186_s26 = smov 12  }
   0xb   :  { %s4271_s19 = sld [smem:[%s5046_s0 + %s4184_s15]]   ;;  %s4187_s1 = smov 13  }
   0xc   :  { %s4276_s24 = sld [smem:[%s5046_s0 + %s4185_s20]]   ;;  %s4188_s7 = smov 14  }
   0xd   :  { %s4281_s30 = sld [smem:[%s5046_s0 + %s4186_s26]]   ;;  %s4189_s15 = smov 15  }
   0xe   :  { %s4286_s6 = sld [smem:[%s5046_s0 + %s4187_s1]]   ;;  %s4190_s22 = smov 16  }
   0xf   :  { %s4291_s12 = sld [smem:[%s5046_s0 + %s4188_s7]]   ;;  %s4191_s28 = smov 17  }
  0x10   :  { %s4296_s20 = sld [smem:[%s5046_s0 + %s4189_s15]]   ;;  %s4192_s7 = smov 18  }
  0x11   :  { %s4301_s27 = sld [smem:[%s5046_s0 + %s4190_s22]]   ;;  %s4193_s15 = smov 19  }
  0x12   :  { %s4306_s4 = sld [smem:[%s5046_s0 + %s4191_s28]]   ;;  %s4194_s22 = smov 20  }
  0x13   :  { %s4195_s28 = smov 21  }
  0x14   :  { %5056 = sst [smem:[#allocation2_spill]] %s4286_s6 }
  0x15   :  { %s4311_s6 = sld [smem:[%s5046_s0 + %s4192_s7]]   ;;  %s4196_s7 = smov 22  }
  0x16   :  { %5057 = sst [smem:[#allocation3_spill]] %s4296_s20 }
  0x17   :  { %5058 = sst [smem:[#allocation4_spill]] %s4301_s27 }
  0x18   :  { %5059 = sst [smem:[#allocation5_spill]] %s4306_s4 }
  0x19   :  { %s4316_s20 = sld [smem:[%s5046_s0 + %s4193_s15]]   ;;  %s4197_s15 = smov 23  }
  0x1a   :  { %s4321_s27 = sld [smem:[%s5046_s0 + %s4194_s22]]   ;;  %s4198_s22 = smov 24  }
  0x1b   :  { %5060 = sst [smem:[#allocation6_spill]] %s4311_s6 }
  0x1c   :  { %s4326_s4 = sld [smem:[%s5046_s0 + %s4195_s28]]   ;;  %s4199_s28 = smov 25  }
  0x1d   :  { %s4331_s6 = sld [smem:[%s5046_s0 + %s4196_s7]]   ;;  %s4200_s7 = smov 26  }
  0x1f   :  { %5061 = sst [smem:[#allocation7_spill]] %s4316_s20 }
  0x20   :  { %5062 = sst [smem:[#allocation8_spill]] %s4321_s27 }
  0x21   :  { %s4336_s20 = sld [smem:[%s5046_s0 + %s4197_s15]]   ;;  %s4201_s15 = smov 27  }
  0x22   :  { %5063 = sst [smem:[#allocation9_spill]] %s4326_s4 }
  0x23   :  { %5064 = sst [smem:[#allocation10_spill]] %s4331_s6 }
  0x24   :  { %s4341_s27 = sld [smem:[%s5046_s0 + %s4198_s22]]   ;;  %s4202_s22 = smov 28  }
  0x25   :  { %s4346_s4 = sld [smem:[%s5046_s0 + %s4199_s28]]   ;;  %s4203_s28 = smov 29  }
  0x26   :  { %s4351_s6 = sld [smem:[%s5046_s0 + %s4200_s7]]   ;;  %s4204_s7 = smov 30  }
  0x27   :  { %5065 = sst [smem:[#allocation11_spill]] %s4336_s20 }
  0x28   :  { %s4356_s20 = sld [smem:[%s5046_s0 + %s4201_s15]]   ;;  %s4205_s15 = smov 31  }
  0x2a   :  { %5066 = sst [smem:[#allocation12_spill]] %s4341_s27 }
  0x2b   :  { %5067 = sst [smem:[#allocation13_spill]] %s4346_s4 }
  0x2c   :  { %5068 = sst [smem:[#allocation14_spill]] %s4351_s6 }
  0x2d   :  { %s4361_s27 = sld [smem:[%s5046_s0 + %s4202_s22]]   ;;  %s4206_s22 = smov 32  }
  0x2e   :  { %5069 = sst [smem:[#allocation15_spill]] %s4356_s20 }
  0x2f   :  { %s4366_s4 = sld [smem:[%s5046_s0 + %s4203_s28]]   ;;  %s4207_s28 = smov 33  }
  0x30   :  { %s4371_s6 = sld [smem:[%s5046_s0 + %s4204_s7]]   ;;  %s4208_s7 = smov 34  }
  0x31   :  { %s4376_s20 = sld [smem:[%s5046_s0 + %s4205_s15]]   ;;  %s4209_s15 = smov 35  }
  0x33   :  { %5070 = sst [smem:[#allocation16_spill]] %s4361_s27 }
  0x34   :  { %s4381_s27 = sld [smem:[%s5046_s0 + %s4206_s22]]   ;;  %s4210_s22 = smov 36  }
  0x35   :  { %5071 = sst [smem:[#allocation17_spill]] %s4366_s4 }
  0x36   :  { %5072 = sst [smem:[#allocation18_spill]] %s4371_s6 }
  0x37   :  { %5073 = sst [smem:[#allocation19_spill]] %s4376_s20 }
  0x38   :  { %s4386_s4 = sld [smem:[%s5046_s0 + %s4207_s28]]   ;;  %s4403_s28 = smov 0  }
  0x39   :  { %s4391_s6 = sld [smem:[%s5046_s0 + %s4208_s7]]  }
  0x3a   :  { %5074 = sst [smem:[#allocation20_spill]] %s4381_s27 }
  0x3b   :  { %s4396_s20 = sld [smem:[%s5046_s0 + %s4209_s15]]  }
  0x3c   :  { %s4401_s27 = sld [smem:[%s5046_s0 + %s4210_s22]]  }
  0x3d LB: > { %s3687_s1 = sadd.s32 4294967295, %s4173_s28   ;;  %p3691_p0 = scmp.ge.s32.totalorder %s4173_s28, 1  ;;  %s4173_s28 = sphi %s4403_s28, %s83_s28  }
  0x3e   : > { %p999_p1 = scmp.lt.s32.totalorder %s4173_s28, 3 }
  0x40   : > { %p1000_p2 = pnand %p3691_p0, %p999_p1 }
  0x41   : > { %p1088_p3 = scmp.lt.s32.totalorder (!%p1000_p2), %s3687_s1, 1  ;;  %s5075_s7 = sld [smem:[#allocation3_spill]] (!%p1000_p2) }
  0x42   : > { %1003 = sbr.rel (%p1000_p2) target bundleno = 3913 (0xf49), region = 164  ;;  %s5076_s10 = sld [smem:[#allocation2_spill]] (!%p1000_p2) }
  0x43   : > { %s5077_s11 = sld [smem:[#allocation5_spill]] (!%p1000_p2) }
  0x44   : > { %s5078_s15 = sld [smem:[#allocation4_spill]] (!%p1000_p2) }
  0x45   : > { %s5079_s16 = sld [smem:[#allocation6_spill]] (!%p1000_p2) }
  0x46   : > { %s5080_s23 = sld [smem:[#allocation10_spill]] (!%p1000_p2) }
  0x47   : > { %s5095_s1 = smov (!%p1088_p3, %s3687_s1), 1  ;;  %v3697_v0 = vld [vmem:[%s4226_s9 + $0x10] sm:$0xff]  ;;  %v1117_v1 = vld [vmem:[%s4226_s9] sm:$0xff]  ;;  %vm1119_vm0 = vcmask 130048   ;;  %v1118_v4 = vld [vmem:[%s4226_s9 + $0x8] sm:$0xff]  ;;  %vm1198_vm1 = vcmask 523264  }
  0x48   : > { %s4061_s0 = sshll.u32 %s5095_s1, 4  ;;  %v3698_v5 = vld [vmem:[%s4226_s9 + $0x18] sm:$0xff]  ;;  %v3713_v6 = vld [vmem:[%s4226_s9 + $0x20] sm:$0xff]  ;;  %v3727_v7 = vld [vmem:[%s4226_s9 + $0x30] sm:$0xff]  ;;  %vm1693_vm2 = vcmask 64512   ;;  %vm2411_vm9 = vcmask 1043456  }
  0x49   : > { %s1092_s2 = scalar_lea.vmem %s4221_s5, %s4061_s0  ;;  %v3714_v8 = vld [vmem:[%s4226_s9 + $0x28] sm:$0xff]  ;;  %v3728_v9 = vld [vmem:[%s4226_s9 + $0x38] sm:$0xff]  ;;  %v3707_v11 = vld [vmem:[%s4231_s13 + $0x70] sm:$0xff]  ;;  %vm2482_vm10 = vcmask 261120   ;;  %vm2538_vm14 = vcmask 31744   ;;  %s5081_s26 = sld [smem:[#allocation7_spill]] }
  0x4a   : > { %v1098_v2 = vld [vmem:[%s1092_s2 + $0x8] sm:$0xff]  ;;  %v1097_v3 = vld [vmem:[%s1092_s2] sm:$0xff]  ;;  %v3708_v10 = vld [vmem:[%s4231_s13 + $0x78] sm:$0xff]  ;;  %s5082_s0 = sld [smem:[#allocation8_spill]] }
  0x4b   : > { %1180 = vmatpush.msra.mxu1 %v1098_v2  ;;  %1140 = vmatpush.msra.mxu0 %v1098_v2  ;;  %v3706_v12 = vld [vmem:[%s4231_s13 + $0x68] sm:$0xff]  ;;  %v3705_v13 = vld [vmem:[%s4231_s13 + $0x60] sm:$0xff]  ;;  %v3704_v15 = vld [vmem:[%s4231_s13 + $0x58] sm:$0xff]  ;;  %s5083_s2 = sld [smem:[#allocation9_spill]] }
  0x4c   : > { %4062 = vmatpush.msra.mxu2 %v1098_v2  ;;  %1213 = vmatpush.msra.mxu3 %v3708_v10  ;;  %v3741_v14 = vld [vmem:[%s4226_s9 + $0x40] sm:$0xff]  ;;  %v3755_v16 = vld [vmem:[%s4226_s9 + $0x50] sm:$0xff]  ;;  %v3702_v18 = vld [vmem:[%s4231_s13 + $0x48] sm:$0xff] }
  0x4d   : > { %1181 = vmatpush.msra.mxu1 %v1097_v3  ;;  %1141 = vmatpush.msra.mxu0 %v1097_v3  ;;  %v3703_v17 = vld [vmem:[%s4231_s13 + $0x50] sm:$0xff]  ;;  %v3742_v19 = vld [vmem:[%s4226_s9 + $0x48] sm:$0xff]  ;;  %v3756_v20 = vld [vmem:[%s4226_s9 + $0x58] sm:$0xff] }
  0x4e   : > { %3699 = vmatmul.msk.f32.vlgmr.msra.gmra.mxu1 %vm1119_vm0, %v3697_v0  ;;  %3695 = vmatmul.msk.f32.vlgmr.msra.gmra.mxu0 %vm1119_vm0, %v1117_v1  ;;  %v3769_v21 = vld [vmem:[%s4226_s9 + $0x60] sm:$0xff]  ;;  %v3770_v22 = vld [vmem:[%s4226_s9 + $0x68] sm:$0xff]  ;;  %v1156_v24 = vld [vmem:[%s4231_s13 + $0x38] sm:$0xff] }
  0x4f   : > { %4063 = vmatpush.msra.mxu2 %v1097_v3  ;;  %1280 = vmatpush.msrb.mxu0 %v1098_v2  ;;  %v3701_v23 = vld [vmem:[%s4231_s13 + $0x40] sm:$0xff]  ;;  %v1155_v25 = vld [vmem:[%s4231_s13 + $0x30] sm:$0xff]  ;;  %v1154_v26 = vld [vmem:[%s4231_s13 + $0x28] sm:$0xff] }
  0x50   : > { %3696 = vmatmul.msk.f32.vlgmr.msra.gmra.mxu2 %vm1119_vm0, %v1118_v4  ;;  %1214 = vmatpush.msra.mxu3 %v3707_v11  ;;  %v1153_v27 = vld [vmem:[%s4231_s13 + $0x20] sm:$0xff]  ;;  %v1152_v28 = vld [vmem:[%s4231_s13 + $0x18] sm:$0xff]  ;;  %v1151_v30 = vld [vmem:[%s4231_s13 + $0x10] sm:$0xff] }
  0x51   : > { %1281 = vmatpush.msrb.mxu0 %v1097_v3  ;;  %1352 = vmatpush.msrb.mxu2 %v1098_v2  ;;  %v3724_v29 = vld [vmem:[%s4231_s13 + $0xb8] sm:$0xff]  ;;  %v3723_v31 = vld [vmem:[%s4231_s13 + $0xb0] sm:$0xff]  ;;  %v1150_v32 = vld [vmem:[%s4231_s13 + $0x8] sm:$0xff] }
  0x52   : > { %1215 = vmatpush.msra.mxu3 %v3706_v12  ;;  %1312 = vmatpush.msrb.mxu1 %v3724_v29  ;;  %v3722_v33 = vld [vmem:[%s4231_s13 + $0xa8] sm:$0xff]  ;;  %v1149_v34 = vld [vmem:[%s4231_s13] sm:$0xff]  ;;  %v3720_v36 = vld [vmem:[%s4231_s13 + $0x98] sm:$0xff] }
  0x53   : > { %1424 = vmatpush.msra.mxu0 %v1098_v2  ;;  %1353 = vmatpush.msrb.mxu2 %v1097_v3  ;;  %v3721_v35 = vld [vmem:[%s4231_s13 + $0xa0] sm:$0xff]  ;;  %v3719_v37 = vld [vmem:[%s4231_s13 + $0x90] sm:$0xff]  ;;  %v3718_v38 = vld [vmem:[%s4231_s13 + $0x88] sm:$0xff] }
  0x54   : > { %1216 = vmatpush.msra.mxu3 %v3705_v13  ;;  %1313 = vmatpush.msrb.mxu1 %v3723_v31  ;;  %v3717_v39 = vld [vmem:[%s4231_s13 + $0x80] sm:$0xff]  ;;  %v3752_v40 = vld [vmem:[%s4231_s13 + $0x138] sm:$0xff]  ;;  %v3751_v41 = vld [vmem:[%s4231_s13 + $0x130] sm:$0xff] }
  0x55   : > { %1496 = vmatpush.msra.mxu2 %v1098_v2  ;;  %1425 = vmatpush.msra.mxu0 %v1097_v3  ;;  %v3750_v42 = vld [vmem:[%s4231_s13 + $0x128] sm:$0xff]  ;;  %v3749_v43 = vld [vmem:[%s4231_s13 + $0x120] sm:$0xff]  ;;  %v3738_v44 = vld [vmem:[%s4231_s13 + $0xf8] sm:$0xff] }
  0x56   : > { %3700 = vmatmul.msk.f32.gmra.mxu1 %vm1119_vm0, %v3698_v5  ;;  %3715 = vmatmul.msk.f32.vlgmr.msrb.gmra.mxu0 %vm1119_vm0, %v3713_v6  ;;  %v3737_v47 = vld [vmem:[%s4231_s13 + $0xf0] sm:$0xff]  ;;  %v3748_v48 = vld [vmem:[%s4231_s13 + $0x118] sm:$0xff]  ;;  %v3736_v50 = vld [vmem:[%s4231_s13 + $0xe8] sm:$0xff] }
  0x57   : > { %1497 = vmatpush.msra.mxu2 %v1097_v3  ;;  %1568 = vmatpush.msrb.mxu0 %v1098_v2  ;;  %v3747_v49 = vld [vmem:[%s4231_s13 + $0x110] sm:$0xff]  ;;  %v3746_v51 = vld [vmem:[%s4231_s13 + $0x108] sm:$0xff]  ;;  %v3735_v52 = vld [vmem:[%s4231_s13 + $0xe0] sm:$0xff] }
  0x58   : > { %3729 = vmatmul.msk.f32.vlgmr.msrb.gmra.mxu2 %vm1119_vm0, %v3727_v7  ;;  %1217 = vmatpush.msra.mxu3 %v3704_v15  ;;  %v3745_v53 = vld [vmem:[%s4231_s13 + $0x100] sm:$0xff]  ;;  %v3734_v54 = vld [vmem:[%s4231_s13 + $0xd8] sm:$0xff]  ;;  %v3733_v57 = vld [vmem:[%s4231_s13 + $0xd0] sm:$0xff] }
  0x59   : > { %1569 = vmatpush.msrb.mxu0 %v1097_v3  ;;  %1314 = vmatpush.msrb.mxu1 %v3722_v33  ;;  %v3780_v58 = vld [vmem:[%s4231_s13 + $0x1b8] sm:$0xff]  ;;  %v3779_v59 = vld [vmem:[%s4231_s13 + $0x1b0] sm:$0xff]  ;;  %v3732_v60 = vld [vmem:[%s4231_s13 + $0xc8] sm:$0xff] }
  0x5a   : > { %1218 = vmatpush.msra.mxu3 %v3703_v17  ;;  %v3778_v61 = vld [vmem:[%s4231_s13 + $0x1a8] sm:$0xff]  ;;  %v3731_v62 = vld [vmem:[%s4231_s13 + $0xc0] sm:$0xff]  ;;  %v3766_v1 = vld [vmem:[%s4231_s13 + $0x178] sm:$0xff] }
  0x5b   : > { %1315 = vmatpush.msrb.mxu1 %v3721_v35  ;;  %v3777_v0 = vld [vmem:[%s4231_s13 + $0x1a0] sm:$0xff]  ;;  %v3765_v3 = vld [vmem:[%s4231_s13 + $0x170] sm:$0xff]  ;;  %v3776_v4 = vld [vmem:[%s4231_s13 + $0x198] sm:$0xff] }
  0x5c   : > { %1219 = vmatpush.msra.mxu3 %v3702_v18  ;;  %v3775_v5 = vld [vmem:[%s4231_s13 + $0x190] sm:$0xff]  ;;  %v3764_v6 = vld [vmem:[%s4231_s13 + $0x168] sm:$0xff]  ;;  %v3762_v10 = vld [vmem:[%s4231_s13 + $0x158] sm:$0xff] }
  0x5d   : > { %1316 = vmatpush.msrb.mxu1 %v3720_v36  ;;  %v3774_v7 = vld [vmem:[%s4231_s13 + $0x188] sm:$0xff]  ;;  %v3761_v13 = vld [vmem:[%s4231_s13 + $0x150] sm:$0xff]  ;;  %v3759_v15 = vld [vmem:[%s4231_s13 + $0x140] sm:$0xff] }
  0x5e   : > { %3716 = vmatmul.msk.f32.gmra.mxu0 %vm1119_vm0, %v3714_v8  ;;  %1220 = vmatpush.msra.mxu3 %v3701_v23  ;;  %v3763_v8 = vld [vmem:[%s4231_s13 + $0x160] sm:$0xff]  ;;  %v1113_v29 = vld [vmem:[%s4241_s21 + $0x68] sm:$0xff]  ;;  %v1111_v31 = vld [vmem:[%s4241_s21 + $0x58] sm:$0xff] }
  0x5f   : > { %1317 = vmatpush.msrb.mxu1 %v3719_v37  ;;  %v1108_v36 = vld [vmem:[%s4241_s21 + $0x40] sm:$0xff]  ;;  %v1107_v37 = vld [vmem:[%s4241_s21 + $0x38] sm:$0xff] }
  0x60   : > { %3730 = vmatmul.msk.f32.gmra.mxu2 %vm1119_vm0, %v3728_v9  ;;  %1242 = vmatpush.msrb.mxu3 %v1156_v24  ;;  %v3773_v9 = vld [vmem:[%s4231_s13 + $0x180] sm:$0xff] }
  0x61   : > { %1318 = vmatpush.msrb.mxu1 %v3718_v38  ;;  %v1106_v38 = vld [vmem:[%s4241_s21 + $0x30] sm:$0xff] }
  0x62   : > { %1243 = vmatpush.msrb.mxu3 %v1155_v25  ;;  %v1115_v25 = vld [vmem:[%s4241_s21 + $0x78] sm:$0xff] }
  0x63   : > { %1319 = vmatpush.msrb.mxu1 %v3717_v39  ;;  %1629 = vmatpush.msrb.mxu2 %v1115_v25 }
  0x64   : > { %1244 = vmatpush.msrb.mxu3 %v1154_v26  ;;  %v1114_v26 = vld [vmem:[%s4241_s21 + $0x70] sm:$0xff] }
  0x65   : > { %1456 = vmatpush.msra.mxu1 %v3752_v40  ;;  %1630 = vmatpush.msrb.mxu2 %v1114_v26  ;;  %v1105_v40 = vld [vmem:[%s4241_s21 + $0x28] sm:$0xff] }
  0x66   : > { %3743 = vmatmul.msk.f32.vlgmr.msra.gmra.mxu0 %vm1119_vm0, %v3741_v14  ;;  %1245 = vmatpush.msrb.mxu3 %v1153_v27  ;;  %v3760_v14 = vld [vmem:[%s4231_s13 + $0x148] sm:$0xff] }
  0x67   : > { %1457 = vmatpush.msra.mxu1 %v3751_v41  ;;  %1631 = vmatpush.msrb.mxu2 %v1113_v29  ;;  %v1104_v41 = vld [vmem:[%s4241_s21 + $0x20] sm:$0xff] }
  0x68   : > { %3757 = vmatmul.msk.f32.vlgmr.msra.gmra.mxu2 %vm1119_vm0, %v3755_v16  ;;  %1246 = vmatpush.msrb.mxu3 %v1152_v28 }
  0x69   : > { %1458 = vmatpush.msra.mxu1 %v3750_v42 }
  0x6a   : > { %1247 = vmatpush.msrb.mxu3 %v1151_v30  ;;  %v1112_v30 = vld [vmem:[%s4241_s21 + $0x60] sm:$0xff] }
  0x6b   : > { %1459 = vmatpush.msra.mxu1 %v3749_v43  ;;  %1632 = vmatpush.msrb.mxu2 %v1112_v30  ;;  %v1103_v43 = vld [vmem:[%s4241_s21 + $0x18] sm:$0xff] }
  0x6c   : > { %1248 = vmatpush.msrb.mxu3 %v1150_v32  ;;  %v1110_v32 = vld [vmem:[%s4241_s21 + $0x50] sm:$0xff] }
  0x6d   : > { %1460 = vmatpush.msra.mxu1 %v3748_v48  ;;  %1633 = vmatpush.msrb.mxu2 %v1111_v31  ;;  %v1100_v48 = vld [vmem:[%s4241_s21] sm:$0xff] }
  0x6e   : > { %3744 = vmatmul.msk.f32.gmra.mxu0 %vm1119_vm0, %v3742_v19  ;;  %1249 = vmatpush.msrb.mxu3 %v1149_v34  ;;  %v1109_v34 = vld [vmem:[%s4241_s21 + $0x48] sm:$0xff] }
  0x6f   : > { %1461 = vmatpush.msra.mxu1 %v3747_v49  ;;  %1634 = vmatpush.msrb.mxu2 %v1110_v32 }
  0x70   : > { %3758 = vmatmul.msk.f32.gmra.mxu2 %vm1119_vm0, %v3756_v20 }
  0x71   : > { %1462 = vmatpush.msra.mxu1 %v3746_v51  ;;  %1635 = vmatpush.msrb.mxu2 %v1109_v34 }
  0x73   : > { %1463 = vmatpush.msra.mxu1 %v3745_v53  ;;  %1636 = vmatpush.msrb.mxu2 %v1108_v36 }
  0x75   : > { %1637 = vmatpush.msrb.mxu2 %v1107_v37 }
  0x76   : > { %3771 = vmatmul.msk.f32.vlgmr.msrb.gmra.mxu0 %vm1119_vm0, %v3769_v21 }
  0x77   : > { %1638 = vmatpush.msrb.mxu2 %v1106_v38 }
  0x79   : > { %1639 = vmatpush.msrb.mxu2 %v1105_v40 }
  0x7b   : > { %1640 = vmatpush.msrb.mxu2 %v1104_v41 }
  0x7d   : > { %1641 = vmatpush.msrb.mxu2 %v1103_v43 }
  0x7e   : > { %3772 = vmatmul.msk.f32.gmra.mxu0 %vm1119_vm0, %v3770_v22 }
  0xcb   : > { %v1183_v45 = vpop.f32.mrf.mxu1  ;;  %v1143_v46 = vpop.f32.mrf.mxu0 }
  0xcc   : > { %3709 = vmatmul.msk.f32.vlgmr.msra.gmra.mxu3 %vm1198_vm1, %v1183_v45 }
  0xcd   : > { %1384 = vmatpush.msra.mxu3 %v3738_v44  ;;  %v1102_v44 = vld [vmem:[%s4241_s21 + $0x10] sm:$0xff] }
  0xce   : > { %1642 = vmatpush.msrb.mxu2 %v1102_v44 }
  0xcf   : > { %1385 = vmatpush.msra.mxu3 %v3737_v47 }
  0xd1   : > { %1386 = vmatpush.msra.mxu3 %v3736_v50 }
  0xd3   : > { %v1186_v55 = vpop.f32.mrf.mxu1  ;;  %1387 = vmatpush.msra.mxu3 %v3735_v52  ;;  %v1283_v56 = vpop.f32.mrf.mxu0 }
  0xd4   : > { %3710 = vmatmul.msk.f32.gmra.mxu3 %vm1198_vm1, %v1186_v55  ;;  %3725 = vmatmul.msk.f32.vlgmr.msrb.gmra.mxu1 %vm1198_vm1, %v1283_v56  ;;  %v1146_v63 = vpop.f32.mrf.mxu2 }
  0xd5   : > { %1388 = vmatpush.msra.mxu3 %v3734_v54  ;;  %1600 = vmatpush.msrb.mxu1 %v3780_v58 }
  0xd7   : > { %1389 = vmatpush.msra.mxu3 %v3733_v57  ;;  %1601 = vmatpush.msrb.mxu1 %v3779_v59 }
  0xd9   : > { %1390 = vmatpush.msra.mxu3 %v3732_v60  ;;  %1602 = vmatpush.msrb.mxu1 %v3778_v61  ;;  %v4126_v60 = vld [vmem:[%s4236_s17] ss:$0 sm:$0xff] }
  0xdb   : > { %1391 = vmatpush.msra.mxu3 %v3731_v62  ;;  %v1286_v2 = vpop.f32.mrf.mxu0  ;;  %1603 = vmatpush.msrb.mxu1 %v3777_v0 }
  0xdc   : > { %3711 = vmatmul.msk.f32.vlgmr.msrb.gmra.mxu3 %vm1198_vm1, %v1143_v46  ;;  %3726 = vmatmul.msk.f32.gmra.mxu1 %vm1198_vm1, %v1286_v2  ;;  %v1355_v11 = vpop.f32.mrf.mxu2  ;;  %v1101_v46 = vld [vmem:[%s4241_s21 + $0x8] sm:$0xff] }
  0xdd   : > { %1528 = vmatpush.msrb.mxu3 %v3766_v1  ;;  %1604 = vmatpush.msrb.mxu1 %v3776_v4 }
  0xde   : > { %1643 = vmatpush.msrb.mxu2 %v1101_v46 }
  0xdf   : > { %1529 = vmatpush.msrb.mxu3 %v3765_v3  ;;  %1605 = vmatpush.msrb.mxu1 %v3775_v5 }
  0xe0   : > { %1644 = vmatpush.msrb.mxu2 %v1100_v48 }
  0xe1   : > { %1530 = vmatpush.msrb.mxu3 %v3764_v6  ;;  %1606 = vmatpush.msrb.mxu1 %v3774_v7 }
  0xe3   : > { %1531 = vmatpush.msrb.mxu3 %v3763_v8  ;;  %v1427_v12 = vpop.f32.mrf.mxu0  ;;  %1607 = vmatpush.msrb.mxu1 %v3773_v9 }
  0xe4   : > { %3712 = vmatmul.msk.f32.gmra.mxu3 %vm1198_vm1, %v1146_v63  ;;  %3753 = vmatmul.msk.f32.vlgmr.msra.gmra.mxu1 %vm1198_vm1, %v1427_v12  ;;  %v1358_v17 = vpop.f32.mrf.mxu2 }
  0xe5   : > { %1532 = vmatpush.msrb.mxu3 %v3762_v10 }
  0xe7   : > { %1533 = vmatpush.msrb.mxu3 %v3761_v13 }
  0xe9   : > { %1534 = vmatpush.msrb.mxu3 %v3760_v14 }
  0xeb   : > { %1535 = vmatpush.msrb.mxu3 %v3759_v15  ;;  %v1430_v16 = vpop.f32.mrf.mxu0 }
  0xec   : > { %3739 = vmatmul.msk.f32.vlgmr.msra.gmra.mxu3 %vm1198_vm1, %v1355_v11  ;;  %3754 = vmatmul.msk.f32.gmra.mxu1 %vm1198_vm1, %v1430_v16  ;;  %v1499_v19 = vpop.f32.mrf.mxu2 }
  0xed   : > { %1658 = vmatpush.msra.mxu3 %v1115_v25 }
  0xef   : > { %1659 = vmatpush.msra.mxu3 %v1114_v26 }
  0xf1   : > { %1660 = vmatpush.msra.mxu3 %v1113_v29 }
  0xf3   : > { %v1571_v18 = vpop.f32.mrf.mxu0  ;;  %1661 = vmatpush.msra.mxu3 %v1112_v30 }
  0xf4   : > { %3740 = vmatmul.msk.f32.gmra.mxu3 %vm1198_vm1, %v1358_v17  ;;  %3781 = vmatmul.msk.f32.vlgmr.msrb.gmra.mxu1 %vm1198_vm1, %v1571_v18  ;;  %v1502_v21 = vpop.f32.mrf.mxu2 }
  0xf5   : > { %1662 = vmatpush.msra.mxu3 %v1111_v31 }
  0xf7   : > { %1663 = vmatpush.msra.mxu3 %v1110_v32 }
  0xf9   : > { %1664 = vmatpush.msra.mxu3 %v1109_v34  ;;  %v3821_v34 = vld [vmem:[%s4256_s3 + $0x178] sm:$0xff] }
  0xfb   : > { %v1574_v20 = vpop.f32.mrf.mxu0  ;;  %1665 = vmatpush.msra.mxu3 %v1108_v36  ;;  %v3819_v36 = vld [vmem:[%s4256_s3 + $0x168] sm:$0xff] }
  0xfc   : > { %3767 = vmatmul.msk.f32.vlgmr.msrb.gmra.mxu3 %vm1198_vm1, %v1499_v19  ;;  %3782 = vmatmul.msk.f32.gmra.mxu1 %vm1198_vm1, %v1574_v20  ;;  %v1116_v19 = vld [vmem:[%s4246_s25] sm:$0xff] }
  0xfd   : > { %1666 = vmatpush.msra.mxu3 %v1107_v37  ;;  %1712 = vmatpush.msra.mxu0 %v1116_v19  ;;  %v3818_v37 = vld [vmem:[%s4256_s3 + $0x160] sm:$0xff] }
  0xfe   : > { %1735 = vmatpush.msra.mxu1 %v1116_v19  ;;  %v3834_v19 = vld [vmem:[%s4256_s3 + $0x1d0] sm:$0xff] }
  0xff   : > { %1667 = vmatpush.msra.mxu3 %v1106_v38  ;;  %v3817_v38 = vld [vmem:[%s4256_s3 + $0x158] sm:$0xff] }
 0x101   : > { %1668 = vmatpush.msra.mxu3 %v1105_v40  ;;  %v3816_v40 = vld [vmem:[%s4256_s3 + $0x150] sm:$0xff] }
 0x103   : > { %1669 = vmatpush.msra.mxu3 %v1104_v41 }
 0x104   : > { %3768 = vmatmul.msk.f32.gmra.mxu3 %vm1198_vm1, %v1502_v21 }
 0x105   : > { %1670 = vmatpush.msra.mxu3 %v1103_v43  ;;  %v3814_v43 = vld [vmem:[%s4256_s3 + $0x140] sm:$0xff] }
 0x107   : > { %1671 = vmatpush.msra.mxu3 %v1102_v44 }
 0x109   : > { %1672 = vmatpush.msra.mxu3 %v1101_v46 }
 0x10b   : > { %1673 = vmatpush.msra.mxu3 %v1100_v48  ;;  %v3813_v48 = vld [vmem:[%s4256_s3 + $0x138] sm:$0xff] }
 0x10d   : > { %1931 = vmatpush.msrb.mxu3 %v3821_v34  ;;  %v3829_v34 = vld [vmem:[%s4256_s3 + $0x1a8] sm:$0xff] }
 0x14f   : > { %v1222_v22 = vpop.f32.mrf.mxu3 }
 0x151   : > { %v1321_v23 = vpop.f32.mrf.mxu1 }
 0x157   : > { %v1225_v24 = vpop.f32.mrf.mxu3 }
 0x159   : > { %v1324_v28 = vpop.f32.mrf.mxu1 }
 0x15f   : > { %v1251_v27 = vpop.f32.mrf.mxu3 }
 0x160   : > { %v1252_v45 = vadd.f32 %v1251_v27, %v1222_v22 }
 0x161   : > { %v1465_v35 = vpop.f32.mrf.mxu1 }
 0x162   : > { %v1327_v49 = vadd.f32 %v1321_v23, %v1252_v45 }
 0x167   : > { %v1254_v33 = vpop.f32.mrf.mxu3 }
 0x168   : > { %v1255_v50 = vadd.f32 %v1254_v33, %v1225_v24 }
 0x169   : > { %v1468_v42 = vpop.f32.mrf.mxu1 }
 0x16a   : > { %v1328_v54 = vadd.f32 %v1324_v28, %v1255_v50 }
 0x16f   : > { %v1393_v39 = vpop.f32.mrf.mxu3 }
 0x170   : > { %v1399_v51 = vadd.f32 %v1393_v39, %v1327_v49 }
 0x171   : > { %v1609_v52 = vpop.f32.mrf.mxu1 }
 0x172   : > { %v1471_v55 = vadd.f32 %v1465_v35, %v1399_v51  ;;  %v3820_v35 = vld [vmem:[%s4256_s3 + $0x170] sm:$0xff] }
 0x173   : > { %1932 = vmatpush.msrb.mxu3 %v3820_v35  ;;  %v3812_v51 = vld [vmem:[%s4256_s3 + $0x130] sm:$0xff]  ;;  %v1794_v35 = vld [vmem:[%s4256_s3 + $0x18] sm:$0xff] }
 0x175   : > { %1933 = vmatpush.msrb.mxu3 %v3819_v36  ;;  %v3790_v36 = vld [vmem:[%s4256_s3 + $0x90] sm:$0xff] }
 0x177   : > { %v1396_v47 = vpop.f32.mrf.mxu3  ;;  %1934 = vmatpush.msrb.mxu3 %v3818_v37  ;;  %v1793_v37 = vld [vmem:[%s4256_s3 + $0x10] sm:$0xff] }
 0x178   : > { %v1400_v56 = vadd.f32 %v1396_v47, %v1328_v54 }
 0x179   : > { %v1612_v62 = vpop.f32.mrf.mxu1  ;;  %1935 = vmatpush.msrb.mxu3 %v3817_v38  ;;  %v3806_v38 = vld [vmem:[%s4256_s3 + $0x100] sm:$0xff] }
 0x17a   : > { %v1472_v58 = vadd.f32 %v1468_v42, %v1400_v56  ;;  %v3815_v42 = vld [vmem:[%s4256_s3 + $0x148] sm:$0xff]  ;;  %v3804_v56 = vld [vmem:[%s4251_s29 + $0x10] sm:$0xff] }
 0x17b   : > { %1936 = vmatpush.msrb.mxu3 %v3816_v40  ;;  %v3789_v40 = vld [vmem:[%s4256_s3 + $0x88] sm:$0xff] }
 0x17d   : > { %1937 = vmatpush.msrb.mxu3 %v3815_v42  ;;  %v3827_v42 = vld [vmem:[%s4256_s3 + $0x198] sm:$0xff] }
 0x17f   : > { %v1537_v53 = vpop.f32.mrf.mxu3  ;;  %1938 = vmatpush.msrb.mxu3 %v3814_v43  ;;  %v3788_v43 = vld [vmem:[%s4256_s3 + $0x80] sm:$0xff] }
 0x180   : > { %v1543_v57 = vadd.f32 %v1537_v53, %v1471_v55  ;;  %v3811_v53 = vld [vmem:[%s4256_s3 + $0x128] sm:$0xff]  ;;  %v1767_v55 = vld [vmem:[%s4251_s29] sm:$0xff] }
 0x181   : > { %1939 = vmatpush.msrb.mxu3 %v3813_v48  ;;  %v1764_v48 = vld [vmem:[%s4266_s14 + $0x78] sm:$0xff] }
 0x182   : > { %v1615_v59 = vadd.f32 %v1609_v52, %v1543_v57  ;;  %v3786_v57 = vld [vmem:[%s4251_s29 + $0x8] sm:$0xff] }
 0x183   : > { %1940 = vmatpush.msrb.mxu3 %v3812_v51 }
 0x184   : > { %v4530_v0 = vadd.f32 %v4126_v60, %v1615_v59  ;;  %v1806_v59 = vld [vmem:[%s4256_s3 + $0x78] sm:$0xff] }
 0x185   : > { %1941 = vmatpush.msrb.mxu3 %v3811_v53 }
 0x186   : > { %v1649_v3 = vmul.f32 %v4530_v0, %v4530_v0 }
 0x187   : > { %v1540_v61 = vpop.f32.mrf.mxu3 }
 0x188   : > { %v1544_v63 = vadd.f32 %v1540_v61, %v1472_v58  ;;  %v3803_v58 = vld [vmem:[%s4256_s3 + $0xf8] sm:$0xff]  ;;  %v3802_v61 = vld [vmem:[%s4256_s3 + $0xf0] sm:$0xff] }
 0x18a   : > { %v1616_v1 = vadd.f32 %v1612_v62, %v1544_v63  ;;  %v1805_v62 = vld [vmem:[%s4256_s3 + $0x70] sm:$0xff]  ;;  %v3839_v63 = vld [vmem:[%s4256_s3 + $0x1f8] sm:$0xff] }
 0x18c   : > { %v1621_v2 = vadd.f32 %v4126_v60, %v1616_v1  ;;  %v3810_v60 = vld [vmem:[%s4256_s3 + $0x120] sm:$0xff]  ;;  %v3809_v1 = vld [vmem:[%s4256_s3 + $0x118] sm:$0xff] }
 0x18d   : > { %1942 = vmatpush.msrb.mxu3 %v3810_v60  ;;  %v1756_v60 = vld [vmem:[%s4266_s14 + $0x38] sm:$0xff] }
 0x18e   : > { %v1622_v4 = vadd.f32 %v1621_v2, %v4530_v0  ;;  %v1650_v5 = vmul.f32 %v1621_v2, %v1621_v2 }
 0x18f   : > { %1943 = vmatpush.msrb.mxu3 %v3809_v1  ;;  %v1751_v1 = vld [vmem:[%s4266_s14 + $0x10] sm:$0xff] }
 0x190   : > { %v1623_v6 = vrot.slane %v1622_v4, 4  ;;  %v1651_v7 = vadd.f32 %v1650_v5, %v1649_v3  ;;  %v3838_v3 = vld [vmem:[%s4256_s3 + $0x1f0] sm:$0xff] }
 0x191   : > { %v3808_v5 = vld [vmem:[%s4256_s3 + $0x110] sm:$0xff] }
 0x192   : > { %v1624_v8 = vadd.f32 %v1623_v6, %v1622_v4  ;;  %v1652_v9 = vrot.slane %v1651_v7, 4  ;;  %v3800_v4 = vld [vmem:[%s4256_s3 + $0xe0] sm:$0xff]  ;;  %v3822_v6 = vld [vmem:[%s4251_s29 + $0x18] sm:$0xff]  ;;  %1944 = vmatpush.msrb.mxu3 %v3808_v5 }
 0x194   : > { %v1625_v10 = vrot.slane %v1624_v8, 2  ;;  %v1653_v11 = vadd.f32 %v1652_v9, %v1651_v7  ;;  %v1803_v7 = vld [vmem:[%s4256_s3 + $0x60] sm:$0xff]  ;;  %v3837_v9 = vld [vmem:[%s4256_s3 + $0x1e8] sm:$0xff] }
 0x196   : > { %v1626_v12 = vadd.f32 %v1625_v10, %v1624_v8  ;;  %v1654_v13 = vrot.slane %v1653_v11, 2  ;;  %v3799_v8 = vld [vmem:[%s4256_s3 + $0xd8] sm:$0xff] }
 0x197   : > { %v1802_v10 = vld [vmem:[%s4256_s3 + $0x58] sm:$0xff] }
 0x198   : > { %v1627_v14 = vrot.slane %v1626_v12, 1  ;;  %v1655_v15 = vadd.f32 %v1654_v13, %v1653_v11  ;;  %v3807_v11 = vld [vmem:[%s4256_s3 + $0x108] sm:$0xff]  ;;  %v3836_v13 = vld [vmem:[%s4256_s3 + $0x1e0] sm:$0xff] }
 0x199   : > { %1945 = vmatpush.msrb.mxu3 %v3807_v11 }
 0x19a   : > { %v1628_v16 = vadd.f32 %v1627_v14, %v1626_v12  ;;  %v1656_v17 = vrot.slane %v1655_v15, 1  ;;  %v3798_v12 = vld [vmem:[%s4256_s3 + $0xd0] sm:$0xff] }
 0x19b   : > { %v1801_v14 = vld [vmem:[%s4256_s3 + $0x50] sm:$0xff]  ;;  %1946 = vmatpush.msrb.mxu3 %v3806_v38 }
 0x19c   : > { %1645 = vmatmul.f32.vlgmr.msrb.gmra.mxu2 %v1628_v16  ;;  %v1657_v18 = vadd.f32 %v1656_v17, %v1655_v15  ;;  %v3797_v15 = vld [vmem:[%s4256_s3 + $0xc8] sm:$0xff]  ;;  %v3835_v16 = vld [vmem:[%s4256_s3 + $0x1d8] sm:$0xff] }
 0x19d   : > { %v1800_v17 = vld [vmem:[%s4256_s3 + $0x48] sm:$0xff] }
 0x19e   : > { %1674 = vmatmul.f32.vlgmr.msra.gmra.mxu3 %v1657_v18  ;;  %v3796_v18 = vld [vmem:[%s4256_s3 + $0xc0] sm:$0xff] }
 0x21f   : > { %v1646_v20 = vpop.f32.mrf.mxu2 }
 0x220   : > { %v1678_v21 = vmul.f32 0.00390625, %v1646_v20  ;;  %v1799_v20 = vld [vmem:[%s4256_s3 + $0x40] sm:$0xff] }
 0x221   : > { %v1675_v22 = vpop.f32.mrf.mxu3 }
 0x222   : > { %v1680_v23 = vmul.f32 %v1678_v21, %v1678_v21  ;;  %v1679_v24 = vmul.f32 0.00390625, %v1675_v22  ;;  %3783 = vmatmul.msk.f32.vlgmr.msra.gmra.mxu0 %vm1693_vm2, %v1678_v21  ;;  %v3795_v21 = vld [vmem:[%s4256_s3 + $0xb8] sm:$0xff]  ;;  %v3833_v22 = vld [vmem:[%s4256_s3 + $0x1c8] sm:$0xff] }
 0x224   : > { %v1681_v25 = vsub.f32 %v1679_v24, %v1680_v23  ;;  %v1798_v23 = vld [vmem:[%s4256_s3 + $0x38] sm:$0xff]  ;;  %v3794_v24 = vld [vmem:[%s4256_s3 + $0xb0] sm:$0xff] }
 0x226   : > { %v1682_v26 = vadd.f32 1e-05, %v1681_v25  ;;  %v3832_v25 = vld [vmem:[%s4256_s3 + $0x1c0] sm:$0xff] }
 0x228   : > { %4141 = vrsqrt.f32 %v1682_v26  ;;  %vm1689_vm4 = vweird.f32 %v1682_v26 }
 0x22e   : > { %v4142_v27 = vpop.eup %4141 }
 0x22f   : > { %v1684_v28 = vmul.f32 %v4142_v27, %v1682_v26  ;;  %vm1690_vm3 = vweird.f32 %v4142_v27  ;;  %v1797_v26 = vld [vmem:[%s4256_s3 + $0x30] sm:$0xff] }
 0x230   : > { %vm1691_vm5 = vmor %vm1689_vm4, %vm1690_vm3 }
 0x231   : > { %v1685_v29 = vmul.f32 %v4142_v27, %v1684_v28  ;;  %v3831_v28 = vld [vmem:[%s4256_s3 + $0x1b8] sm:$0xff] }
 0x233   : > { %v1686_v30 = vmul.f32 0.5, %v1685_v29  ;;  %v1796_v29 = vld [vmem:[%s4256_s3 + $0x28] sm:$0xff] }
 0x235   : > { %v1687_v31 = vsub.f32 1.5, %v1686_v30  ;;  %v3792_v30 = vld [vmem:[%s4256_s3 + $0xa0] sm:$0xff] }
 0x237   : > { %v1688_v32 = vmul.f32 %v4142_v27, %v1687_v31  ;;  %v3830_v31 = vld [vmem:[%s4256_s3 + $0x1b0] sm:$0xff] }
 0x239   : > { %v1692_v33 = vsel %vm1691_vm5, %v4142_v27, %v1688_v32  ;;  %v3793_v27 = vld [vmem:[%s4256_s3 + $0xa8] sm:$0xff]  ;;  %v1795_v32 = vld [vmem:[%s4256_s3 + $0x20] sm:$0xff] }
 0x23a   : > { %3784 = vmatmul.msk.f32.vlgmr.msra.gmra.mxu1 %vm1693_vm2, %v1692_v33  ;;  %v3791_v33 = vld [vmem:[%s4256_s3 + $0x98] sm:$0xff] }
 0x29f   : > { %v1714_v39 = vpop.f32.mrf.mxu0 }
 0x2a0   : > { %v1740_v41 = vperm.slane %v1714_v39, 0  ;;  %v3828_v39 = vld [vmem:[%s4256_s3 + $0x1a0] sm:$0xff] }
 0x2a2   : > { %v1741_v45 = vsub.f32 %v4530_v0, %v1740_v41  ;;  %v1742_v46 = vsub.f32 %v1621_v2, %v1740_v41  ;;  %v3801_v0 = vld [vmem:[%s4256_s3 + $0xe8] sm:$0xff] }
 0x2a3   : > { %v1804_v2 = vld [vmem:[%s4256_s3 + $0x68] sm:$0xff] }
 0x2a4   : > { %v1792_v41 = vld [vmem:[%s4256_s3 + $0x8] sm:$0xff] }
 0x2b7   : > { %v1737_v44 = vpop.f32.mrf.mxu1 }
 0x2b8   : > { %v1743_v47 = vperm.slane %v1737_v44, 0  ;;  %v1791_v44 = vld [vmem:[%s4256_s3] sm:$0xff] }
 0x2ba   : > { %v1744_v49 = vmul.f32 %v1743_v47, %v1741_v45  ;;  %v1745_v50 = vmul.f32 %v1743_v47, %v1742_v46  ;;  %v3826_v45 = vld [vmem:[%s4256_s3 + $0x190] sm:$0xff]  ;;  %v3825_v46 = vld [vmem:[%s4256_s3 + $0x188] sm:$0xff]  ;;  %v3824_v47 = vld [vmem:[%s4256_s3 + $0x180] sm:$0xff] }
 0x2bc   : > { %v1747_v52 = vmax.f32 %v1745_v50, 0.0  ;;  %v1746_v54 = vmax.f32 %v1744_v49, 0.0  ;;  %v1763_v49 = vld [vmem:[%s4266_s14 + $0x70] sm:$0xff] }
 0x2be   : > { %1785 = vmatpush.msrb.mxu0 %v1747_v52  ;;  %1826 = vmatpush.msrb.mxu1 %v1747_v52 }
 0x2bf   : > { %1908 = vmatpush.msra.mxu2 %v1747_v52 }
 0x2c0   : > { %1786 = vmatpush.msrb.mxu0 %v1746_v54  ;;  %1827 = vmatpush.msrb.mxu1 %v1746_v54 }
 0x2c1   : > { %1909 = vmatpush.msra.mxu2 %v1746_v54  ;;  %3785 = vmatmul.msk.f32.vlgmr.msrb.gmra.mxu0 %vm1119_vm0, %v1767_v55  ;;  %v1761_v55 = vld [vmem:[%s4266_s14 + $0x60] sm:$0xff] }
 0x2c2   : > { %3805 = vmatmul.msk.f32.vlgmr.msra.gmra.mxu2 %vm1119_vm0, %v3804_v56  ;;  %3787 = vmatmul.msk.f32.vlgmr.msrb.gmra.mxu1 %vm1119_vm0, %v3786_v57  ;;  %v1760_v56 = vld [vmem:[%s4266_s14 + $0x58] sm:$0xff]  ;;  %v1759_v57 = vld [vmem:[%s4266_s14 + $0x50] sm:$0xff] }
 0x2c3   : > { %1971 = vmatpush.msrb.mxu2 %v1747_v52  ;;  %1849 = vmatpush.msra.mxu0 %v3803_v58  ;;  %v1758_v58 = vld [vmem:[%s4266_s14 + $0x48] sm:$0xff] }
 0x2c4   : > { %1869 = vmatpush.msra.mxu1 %v1806_v59  ;;  %v1757_v59 = vld [vmem:[%s4266_s14 + $0x40] sm:$0xff] }
 0x2c5   : > { %1972 = vmatpush.msrb.mxu2 %v1746_v54  ;;  %1850 = vmatpush.msra.mxu0 %v3802_v61  ;;  %v1762_v54 = vld [vmem:[%s4266_s14 + $0x68] sm:$0xff]  ;;  %v1755_v61 = vld [vmem:[%s4266_s14 + $0x30] sm:$0xff] }
 0x2c6   : > { %1870 = vmatpush.msra.mxu1 %v1805_v62  ;;  %v1754_v62 = vld [vmem:[%s4266_s14 + $0x28] sm:$0xff] }
 0x2c7   : > { %1994 = vmatpush.msra.mxu2 %v3839_v63  ;;  %1851 = vmatpush.msra.mxu0 %v3801_v0  ;;  %v1753_v63 = vld [vmem:[%s4266_s14 + $0x20] sm:$0xff]  ;;  %v1752_v0 = vld [vmem:[%s4266_s14 + $0x18] sm:$0xff] }
 0x2c8   : > { %1871 = vmatpush.msra.mxu1 %v1804_v2  ;;  %v1750_v2 = vld [vmem:[%s4266_s14 + $0x8] sm:$0xff] }
 0x2c9   : > { %1995 = vmatpush.msra.mxu2 %v3838_v3  ;;  %1852 = vmatpush.msra.mxu0 %v3800_v4  ;;  %v1749_v3 = vld [vmem:[%s4266_s14] sm:$0xff] }
 0x2ca   : > { %3823 = vmatmul.msk.f32.vlgmr.msrb.gmra.mxu2 %vm1119_vm0, %v3822_v6  ;;  %1872 = vmatpush.msra.mxu1 %v1803_v7 }
 0x2cb   : > { %1853 = vmatpush.msra.mxu0 %v3799_v8  ;;  %1996 = vmatpush.msra.mxu2 %v3837_v9  ;;  %v4127_v9 = vld [vmem:[%s4261_s8] ss:$0 sm:$0xff] }
 0x2cc   : > { %1873 = vmatpush.msra.mxu1 %v1802_v10 }
 0x2cd   : > { %1854 = vmatpush.msra.mxu0 %v3798_v12  ;;  %1997 = vmatpush.msra.mxu2 %v3836_v13 }
 0x2ce   : > { %1874 = vmatpush.msra.mxu1 %v1801_v14 }
 0x2cf   : > { %1855 = vmatpush.msra.mxu0 %v3797_v15  ;;  %1998 = vmatpush.msra.mxu2 %v3835_v16 }
 0x2d0   : > { %1875 = vmatpush.msra.mxu1 %v1800_v17 }
 0x2d1   : > { %1856 = vmatpush.msra.mxu0 %v3796_v18  ;;  %1999 = vmatpush.msra.mxu2 %v3834_v19 }
 0x2d2   : > { %1876 = vmatpush.msra.mxu1 %v1799_v20 }
 0x2d3   : > { %1857 = vmatpush.msra.mxu0 %v3795_v21  ;;  %2000 = vmatpush.msra.mxu2 %v3833_v22 }
 0x2d4   : > { %1877 = vmatpush.msra.mxu1 %v1798_v23 }
 0x2d5   : > { %1858 = vmatpush.msra.mxu0 %v3794_v24  ;;  %2001 = vmatpush.msra.mxu2 %v3832_v25 }
 0x2d6   : > { %1878 = vmatpush.msra.mxu1 %v1797_v26  ;;  %v1766_v26 = vld [vmem:[%s4271_s19 + $0x8] sm:$0xff] }
 0x2d7   : > { %1859 = vmatpush.msra.mxu0 %v3793_v27  ;;  %2002 = vmatpush.msra.mxu2 %v3831_v28  ;;  %v1765_v27 = vld [vmem:[%s4271_s19] sm:$0xff] }
 0x2d8   : > { %1879 = vmatpush.msra.mxu1 %v1796_v29  ;;  %2104 = vmatpush.msra.mxu3 %v1766_v26 }
 0x2d9   : > { %1860 = vmatpush.msra.mxu0 %v3792_v30  ;;  %2003 = vmatpush.msra.mxu2 %v3830_v31 }
 0x2da   : > { %1880 = vmatpush.msra.mxu1 %v1795_v32  ;;  %2105 = vmatpush.msra.mxu3 %v1765_v27 }
 0x2db   : > { %1861 = vmatpush.msra.mxu0 %v3791_v33  ;;  %2004 = vmatpush.msra.mxu2 %v3829_v34 }
 0x2dc   : > { %1881 = vmatpush.msra.mxu1 %v1794_v35 }
 0x2dd   : > { %1862 = vmatpush.msra.mxu0 %v3790_v36  ;;  %2005 = vmatpush.msra.mxu2 %v3828_v39 }
 0x2de   : > { %1882 = vmatpush.msra.mxu1 %v1793_v37 }
 0x2df   : > { %1863 = vmatpush.msra.mxu0 %v3789_v40  ;;  %2006 = vmatpush.msra.mxu2 %v3827_v42  ;;  %v3878_v42 = vld [vmem:[%s4281_s30 + $0x178] sm:$0xff] }
 0x2e0   : > { %1883 = vmatpush.msra.mxu1 %v1792_v41 }
 0x2e1   : > { %1864 = vmatpush.msra.mxu0 %v3788_v43  ;;  %2007 = vmatpush.msra.mxu2 %v3826_v45  ;;  %v3877_v43 = vld [vmem:[%s4281_s30 + $0x170] sm:$0xff]  ;;  %v3875_v45 = vld [vmem:[%s4281_s30 + $0x160] sm:$0xff] }
 0x2e2   : > { %1884 = vmatpush.msra.mxu1 %v1791_v44  ;;  %v3876_v44 = vld [vmem:[%s4281_s30 + $0x168] sm:$0xff] }
 0x2e3   : > { %2008 = vmatpush.msra.mxu2 %v3825_v46  ;;  %2025 = vmatpush.msrb.mxu0 %v1764_v48 }
 0x2e4   : > { %2052 = vmatpush.msrb.mxu1 %v1764_v48  ;;  %v3873_v48 = vld [vmem:[%s4281_s30 + $0x150] sm:$0xff] }
 0x2e5   : > { %2009 = vmatpush.msra.mxu2 %v3824_v47  ;;  %2026 = vmatpush.msrb.mxu0 %v1763_v49  ;;  %v3874_v47 = vld [vmem:[%s4281_s30 + $0x158] sm:$0xff] }
 0x2e6   : > { %2053 = vmatpush.msrb.mxu1 %v1763_v49 }
 0x2e7   : > { %2027 = vmatpush.msrb.mxu0 %v1762_v54 }
 0x2e8   : > { %2054 = vmatpush.msrb.mxu1 %v1762_v54 }
 0x2e9   : > { %2028 = vmatpush.msrb.mxu0 %v1761_v55 }
 0x2ea   : > { %2055 = vmatpush.msrb.mxu1 %v1761_v55  ;;  %v3870_v55 = vld [vmem:[%s4281_s30 + $0x138] sm:$0xff] }
 0x2eb   : > { %2029 = vmatpush.msrb.mxu0 %v1760_v56 }
 0x2ec   : > { %2056 = vmatpush.msrb.mxu1 %v1760_v56 }
 0x2ed   : > { %2030 = vmatpush.msrb.mxu0 %v1759_v57 }
 0x2ee   : > { %2057 = vmatpush.msrb.mxu1 %v1759_v57  ;;  %v3869_v57 = vld [vmem:[%s4281_s30 + $0x130] sm:$0xff] }
 0x2ef   : > { %2031 = vmatpush.msrb.mxu0 %v1758_v58 }
 0x2f0   : > { %2058 = vmatpush.msrb.mxu1 %v1758_v58 }
 0x2f1   : > { %2032 = vmatpush.msrb.mxu0 %v1757_v59 }
 0x2f2   : > { %2059 = vmatpush.msrb.mxu1 %v1757_v59  ;;  %v2159_v59 = vld [vmem:[%s4276_s24] sm:$0xf] }
 0x2f3   : > { %2033 = vmatpush.msrb.mxu0 %v1756_v60 }
 0x2f4   : > { %2060 = vmatpush.msrb.mxu1 %v1756_v60  ;;  %v3843_v60 = vld [vmem:[%s4276_s24 + $0x4] sm:$0xf] }
 0x2f5   : > { %2034 = vmatpush.msrb.mxu0 %v1755_v61 }
 0x2f6   : > { %2061 = vmatpush.msrb.mxu1 %v1755_v61  ;;  %v3861_v61 = vld [vmem:[%s4276_s24 + $0x8] sm:$0xf] }
 0x2f7   : > { %2035 = vmatpush.msrb.mxu0 %v1754_v62 }
 0x2f8   : > { %2062 = vmatpush.msrb.mxu1 %v1754_v62  ;;  %v3860_v62 = vld [vmem:[%s4281_s30 + $0xf8] sm:$0xff] }
 0x2f9   : > { %2036 = vmatpush.msrb.mxu0 %v1753_v63 }
 0x2fa   : > { %2063 = vmatpush.msrb.mxu1 %v1753_v63  ;;  %v2198_v63 = vld [vmem:[%s4281_s30 + $0x78] sm:$0xff] }
 0x2fb   : > { %2037 = vmatpush.msrb.mxu0 %v1752_v0 }
 0x2fc   : > { %2064 = vmatpush.msrb.mxu1 %v1752_v0  ;;  %v3896_v0 = vld [vmem:[%s4281_s30 + $0x1f8] sm:$0xff] }
 0x2fd   : > { %2038 = vmatpush.msrb.mxu0 %v1751_v1 }
 0x2fe   : > { %2065 = vmatpush.msrb.mxu1 %v1751_v1  ;;  %v3859_v1 = vld [vmem:[%s4281_s30 + $0xf0] sm:$0xff] }
 0x2ff   : > { %2039 = vmatpush.msrb.mxu0 %v1750_v2 }
 0x300   : > { %2066 = vmatpush.msrb.mxu1 %v1750_v2  ;;  %v3868_v2 = vld [vmem:[%s4281_s30 + $0x128] sm:$0xff] }
 0x301   : > { %2040 = vmatpush.msrb.mxu0 %v1749_v3 }
 0x302   : > { %2067 = vmatpush.msrb.mxu1 %v1749_v3  ;;  %v2197_v3 = vld [vmem:[%s4281_s30 + $0x70] sm:$0xff] }
 0x33e   : > { %v1788_v50 = vpop.f32.mrf.mxu0 }
 0x33f   : > { %v1829_v51 = vpop.f32.mrf.mxu1  ;;  %1885 = vmatmul.f32.vlgmr.msra.gmra.mxu1 %v1788_v50  ;;  %v3872_v50 = vld [vmem:[%s4281_s30 + $0x148] sm:$0xff] }
 0x340   : > { %1865 = vmatmul.f32.vlgmr.msra.gmra.mxu0 %v1829_v51  ;;  %2323 = vmatpush.msra.mxu1 %v3878_v42  ;;  %v3871_v51 = vld [vmem:[%s4281_s30 + $0x140] sm:$0xff]  ;;  %v2184_v42 = vld [vmem:[%s4281_s30 + $0x8] sm:$0xff] }
 0x342   : > { %2324 = vmatpush.msra.mxu1 %v3877_v43  ;;  %v3845_v43 = vld [vmem:[%s4281_s30 + $0x80] sm:$0xff] }
 0x344   : > { %2325 = vmatpush.msra.mxu1 %v3876_v44  ;;  %v2183_v44 = vld [vmem:[%s4281_s30] sm:$0xff] }
 0x345   : > { %v1911_v52 = vpop.f32.mrf.mxu2 }
 0x346   : > { %1947 = vmatmul.f32.vlgmr.msrb.gmra.mxu3 %v1911_v52  ;;  %2326 = vmatpush.msra.mxu1 %v3875_v45  ;;  %v3864_v45 = vld [vmem:[%s4281_s30 + $0x108] sm:$0xff] }
 0x347   : > { %2127 = vmatpush.msrb.mxu3 %v1766_v26  ;;  %v3889_v26 = vld [vmem:[%s4281_s30 + $0x1c0] sm:$0xff] }
 0x348   : > { %2327 = vmatpush.msra.mxu1 %v3874_v47  ;;  %v3863_v47 = vld [vmem:[%s4281_s30 + $0x100] sm:$0xff] }
 0x349   : > { %2128 = vmatpush.msrb.mxu3 %v1765_v27  ;;  %v3852_v27 = vld [vmem:[%s4281_s30 + $0xb8] sm:$0xff] }
 0x34a   : > { %2328 = vmatpush.msra.mxu1 %v3873_v48  ;;  %v3885_v48 = vld [vmem:[%s4281_s30 + $0x1a0] sm:$0xff] }
 0x34c   : > { %2329 = vmatpush.msra.mxu1 %v3872_v50  ;;  %v3883_v50 = vld [vmem:[%s4281_s30 + $0x190] sm:$0xff] }
 0x34d   : > { %v1974_v53 = vpop.f32.mrf.mxu2 }
 0x34e   : > { %2010 = vmatmul.f32.vlgmr.msra.gmra.mxu2 %v1974_v53  ;;  %2330 = vmatpush.msra.mxu1 %v3871_v51  ;;  %v2154_v51 = vld [vmem:[%s4291_s12 + $0x78] sm:$0xff] }
 0x350   : > { %2331 = vmatpush.msra.mxu1 %v3870_v55  ;;  %v3881_v55 = vld [vmem:[%s4281_s30 + $0x180] sm:$0xff] }
 0x352   : > { %2332 = vmatpush.msra.mxu1 %v3869_v57 }
 0x354   : > { %2333 = vmatpush.msra.mxu1 %v3868_v2  ;;  %v2145_v2 = vld [vmem:[%s4291_s12 + $0x30] sm:$0xff] }
 0x3bc   : > { %v1886_v5 = vpop.f32.mrf.mxu1 }
 0x3bd   : > { %v1866_v4 = vpop.f32.mrf.mxu0 }
 0x3be   : > { %v1887_v6 = vadd.f32 %v1886_v5, %v1866_v4  ;;  %v3895_v4 = vld [vmem:[%s4281_s30 + $0x1f0] sm:$0xff]  ;;  %v3858_v5 = vld [vmem:[%s4281_s30 + $0xe8] sm:$0xff] }
 0x3c9   : > { %v1948_v7 = vpop.f32.mrf.mxu3 }
 0x3ca   : > { %v1951_v8 = vadd.f32 %v1948_v7, %v1887_v6  ;;  %v3867_v6 = vld [vmem:[%s4281_s30 + $0x120] sm:$0xff]  ;;  %v2196_v7 = vld [vmem:[%s4281_s30 + $0x68] sm:$0xff] }
 0x3cb   : > { %2334 = vmatpush.msra.mxu1 %v3867_v6  ;;  %v2141_v6 = vld [vmem:[%s4291_s12 + $0x10] sm:$0xff] }
 0x3d1   : > { %v2011_v10 = vpop.f32.mrf.mxu2 }
 0x3d2   : > { %v2014_v11 = vadd.f32 %v2011_v10, %v1951_v8  ;;  %v3894_v8 = vld [vmem:[%s4281_s30 + $0x1e8] sm:$0xff]  ;;  %v3866_v10 = vld [vmem:[%s4281_s30 + $0x118] sm:$0xff] }
 0x3d3   : > { %2335 = vmatpush.msra.mxu1 %v3866_v10  ;;  %v2157_v10 = vld [vmem:[%s5075_s7 + $0x10] sm:$0xff] }
 0x3d4   : > { %v2018_v12 = vadd.f32 %v4127_v9, %v2014_v11  ;;  %v3857_v9 = vld [vmem:[%s4281_s30 + $0xe0] sm:$0xff] }
 0x3d5   : > { %v2195_v11 = vld [vmem:[%s4281_s30 + $0x60] sm:$0xff] }
 0x3d6   : > { %v2019_v13 = vrot.slane %v2018_v12, 4  ;;  %v2045_v14 = vmul.f32 %v2018_v12, %v2018_v12 }
 0x3d8   : > { %v2020_v15 = vadd.f32 %v2019_v13, %v2018_v12  ;;  %v2046_v16 = vrot.slane %v2045_v14, 4  ;;  %v3879_v13 = vld [vmem:[%s4276_s24 + $0xc] sm:$0xf] }
 0x3da   : > { %v2021_v17 = vrot.slane %v2020_v15, 2  ;;  %v2047_v18 = vadd.f32 %v2046_v16, %v2045_v14  ;;  %v3856_v14 = vld [vmem:[%s4281_s30 + $0xd8] sm:$0xff] }
 0x3db   : > { %v3892_v16 = vld [vmem:[%s4281_s30 + $0x1d8] sm:$0xff] }
 0x3dc   : > { %v2022_v19 = vadd.f32 %v2021_v17, %v2020_v15  ;;  %v2048_v20 = vrot.slane %v2047_v18, 2  ;;  %v2194_v15 = vld [vmem:[%s4281_s30 + $0x58] sm:$0xff]  ;;  %v3855_v17 = vld [vmem:[%s4281_s30 + $0xd0] sm:$0xff] }
 0x3de   : > { %v2023_v21 = vrot.slane %v2022_v19, 1  ;;  %v2049_v22 = vadd.f32 %v2048_v20, %v2047_v18  ;;  %v3865_v18 = vld [vmem:[%s4281_s30 + $0x110] sm:$0xff] }
 0x3df   : > { %v3891_v20 = vld [vmem:[%s4281_s30 + $0x1d0] sm:$0xff]  ;;  %2336 = vmatpush.msra.mxu1 %v3865_v18 }
 0x3e0   : > { %v2024_v23 = vadd.f32 %v2023_v21, %v2022_v19  ;;  %v2050_v24 = vrot.slane %v2049_v22, 1  ;;  %v2193_v19 = vld [vmem:[%s4281_s30 + $0x50] sm:$0xff]  ;;  %v3854_v21 = vld [vmem:[%s4281_s30 + $0xc8] sm:$0xff] }
 0x3e1   : > { %2337 = vmatpush.msra.mxu1 %v3864_v45 }
 0x3e2   : > { %2041 = vmatmul.f32.vlgmr.msrb.gmra.mxu0 %v2024_v23  ;;  %v2051_v25 = vadd.f32 %v2050_v24, %v2049_v22  ;;  %v2192_v22 = vld [vmem:[%s4281_s30 + $0x48] sm:$0xff]  ;;  %v3853_v24 = vld [vmem:[%s4281_s30 + $0xc0] sm:$0xff] }
 0x3e3   : > { %v3890_v23 = vld [vmem:[%s4281_s30 + $0x1c8] sm:$0xff]  ;;  %2338 = vmatpush.msra.mxu1 %v3863_v47 }
 0x3e4   : > { %2068 = vmatmul.f32.vlgmr.msrb.gmra.mxu1 %v2051_v25  ;;  %v2191_v25 = vld [vmem:[%s4281_s30 + $0x40] sm:$0xff] }
 0x45f   : > { %v2042_v28 = vpop.f32.mrf.mxu0 }
 0x460   : > { %v2072_v29 = vmul.f32 0.015625, %v2042_v28  ;;  %v2190_v28 = vld [vmem:[%s4281_s30 + $0x38] sm:$0xff] }
 0x461   : > { %v2069_v30 = vpop.f32.mrf.mxu1 }
 0x462   : > { %v2074_v31 = vmul.f32 %v2072_v29, %v2072_v29  ;;  %v2073_v32 = vmul.f32 0.015625, %v2069_v30  ;;  %3840 = vmatmul.msk.f32.vlgmr.msra.gmra.mxu3 %vm1119_vm0, %v2072_v29  ;;  %v3888_v29 = vld [vmem:[%s4281_s30 + $0x1b8] sm:$0xff]  ;;  %v3851_v30 = vld [vmem:[%s4281_s30 + $0xb0] sm:$0xff] }
 0x464   : > { %v2075_v33 = vsub.f32 %v2073_v32, %v2074_v31  ;;  %v2189_v31 = vld [vmem:[%s4281_s30 + $0x30] sm:$0xff] }
 0x465   : > { %v3887_v32 = vld [vmem:[%s4281_s30 + $0x1b0] sm:$0xff] }
 0x466   : > { %v2076_v34 = vadd.f32 1e-05, %v2075_v33  ;;  %v3850_v33 = vld [vmem:[%s4281_s30 + $0xa8] sm:$0xff] }
 0x468   : > { %4143 = vrsqrt.f32 %v2076_v34  ;;  %vm2083_vm7 = vweird.f32 %v2076_v34 }
 0x46e   : > { %v4144_v35 = vpop.eup %4143 }
 0x46f   : > { %v2078_v36 = vmul.f32 %v4144_v35, %v2076_v34  ;;  %vm2084_vm6 = vweird.f32 %v4144_v35  ;;  %v2188_v34 = vld [vmem:[%s4281_s30 + $0x28] sm:$0xff] }
 0x470   : > { %vm2085_vm8 = vmor %vm2083_vm7, %vm2084_vm6 }
 0x471   : > { %v2079_v37 = vmul.f32 %v4144_v35, %v2078_v36  ;;  %v2187_v36 = vld [vmem:[%s4281_s30 + $0x20] sm:$0xff] }
 0x473   : > { %v2080_v38 = vmul.f32 0.5, %v2079_v37  ;;  %v3848_v37 = vld [vmem:[%s4281_s30 + $0x98] sm:$0xff] }
 0x475   : > { %v2081_v39 = vsub.f32 1.5, %v2080_v38  ;;  %v2186_v38 = vld [vmem:[%s4281_s30 + $0x18] sm:$0xff] }
 0x477   : > { %v2082_v40 = vmul.f32 %v4144_v35, %v2081_v39  ;;  %v3847_v39 = vld [vmem:[%s4281_s30 + $0x90] sm:$0xff] }
 0x479   : > { %v2086_v41 = vsel %vm2085_vm8, %v4144_v35, %v2082_v40  ;;  %v3849_v35 = vld [vmem:[%s4281_s30 + $0xa0] sm:$0xff]  ;;  %v2185_v40 = vld [vmem:[%s4281_s30 + $0x10] sm:$0xff] }
 0x47a   : > { %3841 = vmatmul.msk.f32.vlgmr.msrb.gmra.mxu3 %vm1119_vm0, %v2086_v41  ;;  %v3846_v41 = vld [vmem:[%s4281_s30 + $0x88] sm:$0xff] }
 0x4e5   : > { %v2107_v46 = vpop.f32.mrf.mxu3 }
 0x4e6   : > { %v2133_v49 = vperm.slane %v2107_v46, 0  ;;  %v3886_v46 = vld [vmem:[%s4281_s30 + $0x1a8] sm:$0xff] }
 0x4e8   : > { %v2134_v53 = vsub.f32 %v2018_v12, %v2133_v49  ;;  %v3893_v12 = vld [vmem:[%s4281_s30 + $0x1e0] sm:$0xff]  ;;  %v3884_v49 = vld [vmem:[%s4281_s30 + $0x198] sm:$0xff] }
 0x4fd   : > { %v2130_v52 = vpop.f32.mrf.mxu3 }
 0x4fe   : > { %v2135_v54 = vperm.slane %v2130_v52, 0  ;;  %v2153_v52 = vld [vmem:[%s4291_s12 + $0x70] sm:$0xff] }
 0x500   : > { %v2136_v56 = vmul.f32 %v2135_v54, %v2134_v53  ;;  %v3882_v53 = vld [vmem:[%s4281_s30 + $0x188] sm:$0xff] }
 0x501   : > { %v2152_v54 = vld [vmem:[%s4291_s12 + $0x68] sm:$0xff] }
 0x502   : > { %v2137_v58 = vmax.f32 %v2136_v56, 0.0 }
 0x504   : > { %2178 = vmatpush.msrb.mxu2 %v2137_v58  ;;  %2219 = vmatpush.msra.mxu3 %v2137_v58 }
 0x505   : > { %2301 = vmatpush.msra.mxu0 %v2137_v58  ;;  %3842 = vmatmul.msk.f32.vlgmr.msrb.gmra.mxu2 %vm1693_vm2, %v2159_v59 }
 0x506   : > { %3844 = vmatmul.msk.f32.vlgmr.msra.gmra.mxu3 %vm1693_vm2, %v3843_v60  ;;  %3862 = vmatmul.msk.f32.vlgmr.msra.gmra.mxu0 %vm1693_vm2, %v3861_v61  ;;  %v2151_v60 = vld [vmem:[%s4291_s12 + $0x60] sm:$0xff]  ;;  %v2150_v61 = vld [vmem:[%s4291_s12 + $0x58] sm:$0xff] }
 0x507   : > { %2364 = vmatpush.msrb.mxu0 %v2137_v58  ;;  %2241 = vmatpush.msra.mxu2 %v3860_v62  ;;  %v2149_v62 = vld [vmem:[%s4291_s12 + $0x50] sm:$0xff] }
 0x508   : > { %2261 = vmatpush.msrb.mxu3 %v2198_v63  ;;  %v2148_v63 = vld [vmem:[%s4291_s12 + $0x48] sm:$0xff] }
 0x509   : > { %2386 = vmatpush.msra.mxu0 %v3896_v0  ;;  %2242 = vmatpush.msra.mxu2 %v3859_v1  ;;  %v2147_v0 = vld [vmem:[%s4291_s12 + $0x40] sm:$0xff]  ;;  %v2146_v1 = vld [vmem:[%s4291_s12 + $0x38] sm:$0xff] }
 0x50a   : > { %2262 = vmatpush.msrb.mxu3 %v2197_v3  ;;  %v2144_v3 = vld [vmem:[%s4291_s12 + $0x28] sm:$0xff] }
 0x50b   : > { %2387 = vmatpush.msra.mxu0 %v3895_v4  ;;  %2243 = vmatpush.msra.mxu2 %v3858_v5  ;;  %v2143_v4 = vld [vmem:[%s4291_s12 + $0x20] sm:$0xff]  ;;  %v2142_v5 = vld [vmem:[%s4291_s12 + $0x18] sm:$0xff] }
 0x50c   : > { %2263 = vmatpush.msrb.mxu3 %v2196_v7  ;;  %v2140_v7 = vld [vmem:[%s4291_s12 + $0x8] sm:$0xff] }
 0x50d   : > { %2388 = vmatpush.msra.mxu0 %v3894_v8  ;;  %2244 = vmatpush.msra.mxu2 %v3857_v9  ;;  %v2139_v8 = vld [vmem:[%s4291_s12] sm:$0xff]  ;;  %v2158_v9 = vld [vmem:[%s5075_s7 + $0x18] sm:$0xff] }
 0x50e   : > { %2264 = vmatpush.msrb.mxu3 %v2195_v11  ;;  %3880 = vmatmul.msk.f32.vlgmr.msrb.gmra.mxu0 %vm1693_vm2, %v3879_v13 }
 0x50f   : > { %2389 = vmatpush.msra.mxu0 %v3893_v12  ;;  %2245 = vmatpush.msra.mxu2 %v3856_v14 }
 0x510   : > { %2265 = vmatpush.msrb.mxu3 %v2194_v15  ;;  %2498 = vmatpush.msrb.mxu1 %v2158_v9 }
 0x511   : > { %2390 = vmatpush.msra.mxu0 %v3892_v16  ;;  %2246 = vmatpush.msra.mxu2 %v3855_v17  ;;  %v4128_v17 = vld [vmem:[%s5076_s10] ss:$0 sm:$0xff]  ;;  %s5084_s10 = sld [smem:[#allocation11_spill]] }
 0x512   : > { %2266 = vmatpush.msrb.mxu3 %v2193_v19  ;;  %2499 = vmatpush.msrb.mxu1 %v2157_v10 }
 0x513   : > { %2391 = vmatpush.msra.mxu0 %v3891_v20  ;;  %2247 = vmatpush.msra.mxu2 %v3854_v21 }
 0x514   : > { %2267 = vmatpush.msrb.mxu3 %v2192_v22 }
 0x515   : > { %2392 = vmatpush.msra.mxu0 %v3890_v23  ;;  %2248 = vmatpush.msra.mxu2 %v3853_v24 }
 0x516   : > { %2268 = vmatpush.msrb.mxu3 %v2191_v25 }
 0x517   : > { %2393 = vmatpush.msra.mxu0 %v3889_v26  ;;  %2249 = vmatpush.msra.mxu2 %v3852_v27 }
 0x518   : > { %2269 = vmatpush.msrb.mxu3 %v2190_v28 }
 0x519   : > { %2394 = vmatpush.msra.mxu0 %v3888_v29  ;;  %2250 = vmatpush.msra.mxu2 %v3851_v30 }
 0x51a   : > { %2270 = vmatpush.msrb.mxu3 %v2189_v31 }
 0x51b   : > { %2395 = vmatpush.msra.mxu0 %v3887_v32  ;;  %2251 = vmatpush.msra.mxu2 %v3850_v33 }
 0x51c   : > { %2271 = vmatpush.msrb.mxu3 %v2188_v34 }
 0x51d   : > { %2252 = vmatpush.msra.mxu2 %v3849_v35  ;;  %2396 = vmatpush.msra.mxu0 %v3886_v46  ;;  %v2156_v35 = vld [vmem:[%s5075_s7 + $0x8] sm:$0xff] }
 0x51e   : > { %2272 = vmatpush.msrb.mxu3 %v2187_v36  ;;  %2500 = vmatpush.msrb.mxu1 %v2156_v35  ;;  %v2155_v36 = vld [vmem:[%s5075_s7] sm:$0xff] }
 0x51f   : > { %2253 = vmatpush.msra.mxu2 %v3848_v37  ;;  %2397 = vmatpush.msra.mxu0 %v3885_v48 }
 0x520   : > { %2273 = vmatpush.msrb.mxu3 %v2186_v38  ;;  %2501 = vmatpush.msrb.mxu1 %v2155_v36 }
 0x521   : > { %2254 = vmatpush.msra.mxu2 %v3847_v39  ;;  %2398 = vmatpush.msra.mxu0 %v3884_v49 }
 0x522   : > { %2274 = vmatpush.msrb.mxu3 %v2185_v40 }
 0x523   : > { %2255 = vmatpush.msra.mxu2 %v3846_v41  ;;  %2399 = vmatpush.msra.mxu0 %v3883_v50 }
 0x524   : > { %2275 = vmatpush.msrb.mxu3 %v2184_v42 }
 0x525   : > { %2256 = vmatpush.msra.mxu2 %v3845_v43  ;;  %2400 = vmatpush.msra.mxu0 %v3882_v53  ;;  %v3936_v53 = vld [vmem:[%s5077_s11 + $0x168] sm:$0xff] }
 0x526   : > { %2276 = vmatpush.msrb.mxu3 %v2183_v44 }
 0x527   : > { %2419 = vmatpush.msrb.mxu2 %v2154_v51  ;;  %2401 = vmatpush.msra.mxu0 %v3881_v55  ;;  %v3934_v55 = vld [vmem:[%s5077_s11 + $0x158] sm:$0xff] }
 0x528   : > { %2447 = vmatpush.msra.mxu3 %v2154_v51  ;;  %v3938_v51 = vld [vmem:[%s5077_s11 + $0x178] sm:$0xff] }
 0x529   : > { %2420 = vmatpush.msrb.mxu2 %v2153_v52 }
 0x52a   : > { %2448 = vmatpush.msra.mxu3 %v2153_v52  ;;  %v3937_v52 = vld [vmem:[%s5077_s11 + $0x170] sm:$0xff] }
 0x52b   : > { %2421 = vmatpush.msrb.mxu2 %v2152_v54 }
 0x52c   : > { %2449 = vmatpush.msra.mxu3 %v2152_v54  ;;  %v3935_v54 = vld [vmem:[%s5077_s11 + $0x160] sm:$0xff] }
 0x52d   : > { %2422 = vmatpush.msrb.mxu2 %v2151_v60 }
 0x52e   : > { %2450 = vmatpush.msra.mxu3 %v2151_v60 }
 0x52f   : > { %2423 = vmatpush.msrb.mxu2 %v2150_v61 }
 0x530   : > { %2451 = vmatpush.msra.mxu3 %v2150_v61  ;;  %v3929_v61 = vld [vmem:[%s5077_s11 + $0x130] sm:$0xff] }
 0x531   : > { %2424 = vmatpush.msrb.mxu2 %v2149_v62 }
 0x532   : > { %2452 = vmatpush.msra.mxu3 %v2149_v62  ;;  %v3928_v62 = vld [vmem:[%s5077_s11 + $0x128] sm:$0xff] }
 0x533   : > { %2425 = vmatpush.msrb.mxu2 %v2148_v63 }
 0x534   : > { %2453 = vmatpush.msra.mxu3 %v2148_v63 }
 0x535   : > { %2426 = vmatpush.msrb.mxu2 %v2147_v0 }
 0x536   : > { %2454 = vmatpush.msra.mxu3 %v2147_v0  ;;  %v3927_v0 = vld [vmem:[%s5077_s11 + $0x120] sm:$0xff] }
 0x537   : > { %2427 = vmatpush.msrb.mxu2 %v2146_v1 }
 0x538   : > { %2455 = vmatpush.msra.mxu3 %v2146_v1  ;;  %v3926_v1 = vld [vmem:[%s5077_s11 + $0x118] sm:$0xff] }
 0x539   : > { %2428 = vmatpush.msrb.mxu2 %v2145_v2 }
 0x53a   : > { %2456 = vmatpush.msra.mxu3 %v2145_v2 }
 0x53b   : > { %2429 = vmatpush.msrb.mxu2 %v2144_v3 }
 0x53c   : > { %2457 = vmatpush.msra.mxu3 %v2144_v3 }
 0x53d   : > { %2430 = vmatpush.msrb.mxu2 %v2143_v4 }
 0x53e   : > { %2458 = vmatpush.msra.mxu3 %v2143_v4 }
 0x53f   : > { %2431 = vmatpush.msrb.mxu2 %v2142_v5 }
 0x540   : > { %2459 = vmatpush.msra.mxu3 %v2142_v5  ;;  %v3925_v5 = vld [vmem:[%s5077_s11 + $0x110] sm:$0xff] }
 0x541   : > { %2432 = vmatpush.msrb.mxu2 %v2141_v6 }
 0x542   : > { %2460 = vmatpush.msra.mxu3 %v2141_v6 }
 0x543   : > { %2433 = vmatpush.msrb.mxu2 %v2140_v7 }
 0x544   : > { %2461 = vmatpush.msra.mxu3 %v2140_v7  ;;  %v3924_v7 = vld [vmem:[%s5077_s11 + $0x108] sm:$0xff] }
 0x545   : > { %2434 = vmatpush.msrb.mxu2 %v2139_v8 }
 0x546   : > { %2462 = vmatpush.msra.mxu3 %v2139_v8 }
 0x583   : > { %v2303_v56 = vpop.f32.mrf.mxu0 }
 0x584   : > { %2339 = vmatmul.f32.vlgmr.msra.gmra.mxu1 %v2303_v56  ;;  %v3933_v56 = vld [vmem:[%s5077_s11 + $0x150] sm:$0xff] }
 0x585   : > { %2521 = vmatpush.msra.mxu1 %v2158_v9  ;;  %v2537_v9 = vld [vmem:[%s5078_s15] sm:$0xf] }
 0x587   : > { %2522 = vmatpush.msra.mxu1 %v2157_v10  ;;  %v3920_v10 = vld [vmem:[%s5078_s15 + $0x8] sm:$0xf] }
 0x588   : > { %v2180_v57 = vpop.f32.mrf.mxu2 }
 0x589   : > { %v2221_v58 = vpop.f32.mrf.mxu3  ;;  %2277 = vmatmul.f32.vlgmr.msrb.gmra.mxu3 %v2180_v57  ;;  %2523 = vmatpush.msra.mxu1 %v2156_v35  ;;  %v3932_v57 = vld [vmem:[%s5077_s11 + $0x148] sm:$0xff]  ;;  %v2569_v35 = vld [vmem:[%s5077_s11 + $0x20] sm:$0xff] }
 0x58a   : > { %2257 = vmatmul.f32.vlgmr.msra.gmra.mxu2 %v2221_v58  ;;  %2705 = vmatpush.msrb.mxu3 %v3938_v51  ;;  %v3931_v58 = vld [vmem:[%s5077_s11 + $0x140] sm:$0xff] }
 0x58b   : > { %v2366_v59 = vpop.f32.mrf.mxu0  ;;  %2524 = vmatpush.msra.mxu1 %v2155_v36  ;;  %v3907_v36 = vld [vmem:[%s5077_s11 + $0x98] sm:$0xff]  ;;  %v4129_v51 = vld [vmem:[%s5079_s16] ss:$0 sm:$0xff] }
 0x58c   : > { %2402 = vmatmul.f32.vlgmr.msra.gmra.mxu0 %v2366_v59  ;;  %2706 = vmatpush.msrb.mxu3 %v3937_v52  ;;  %v3930_v59 = vld [vmem:[%s5077_s11 + $0x138] sm:$0xff] }
 0x58e   : > { %2707 = vmatpush.msrb.mxu3 %v3936_v53 }
 0x590   : > { %2708 = vmatpush.msrb.mxu3 %v3935_v54 }
 0x592   : > { %2709 = vmatpush.msrb.mxu3 %v3934_v55 }
 0x594   : > { %2710 = vmatpush.msrb.mxu3 %v3933_v56 }
 0x596   : > { %2711 = vmatpush.msrb.mxu3 %v3932_v57 }
 0x598   : > { %2712 = vmatpush.msrb.mxu3 %v3931_v58 }
 0x59a   : > { %2713 = vmatpush.msrb.mxu3 %v3930_v59 }
 0x59c   : > { %2714 = vmatpush.msrb.mxu3 %v3929_v61 }
 0x59e   : > { %2715 = vmatpush.msrb.mxu3 %v3928_v62 }
 0x5a0   : > { %2716 = vmatpush.msrb.mxu3 %v3927_v0 }
 0x5a2   : > { %2717 = vmatpush.msrb.mxu3 %v3926_v1 }
 0x5a4   : > { %2718 = vmatpush.msrb.mxu3 %v3925_v5 }
 0x5a6   : > { %2719 = vmatpush.msrb.mxu3 %v3924_v7 }
 0x601   : > { %v2340_v14 = vpop.f32.mrf.mxu1 }
 0x609   : > { %v2403_v15 = vpop.f32.mrf.mxu0 }
 0x60c   : > { %v2278_v11 = vpop.f32.mrf.mxu3 }
 0x60d   : > { %v2258_v12 = vpop.f32.mrf.mxu2 }
 0x60e   : > { %v2279_v13 = vadd.f32 %v2278_v11, %v2258_v12  ;;  %v3901_v11 = vld [vmem:[%s5078_s15 + $0x4] sm:$0xf]  ;;  %v3919_v12 = vld [vmem:[%s5077_s11 + $0xf8] sm:$0xff] }
 0x610   : > { %v2343_v16 = vadd.f32 %v2340_v14, %v2279_v13  ;;  %v2580_v13 = vld [vmem:[%s5077_s11 + $0x78] sm:$0xff]  ;;  %v3918_v14 = vld [vmem:[%s5077_s11 + $0xf0] sm:$0xff] }
 0x612   : > { %v2406_v18 = vadd.f32 %v2403_v15, %v2343_v16  ;;  %v2579_v15 = vld [vmem:[%s5077_s11 + $0x70] sm:$0xff]  ;;  %v3917_v16 = vld [vmem:[%s5077_s11 + $0xe8] sm:$0xff] }
 0x614   : > { %v4723_v19 = vadd.f32 %v4128_v17, %v2406_v18  ;;  %v2578_v17 = vld [vmem:[%s5077_s11 + $0x68] sm:$0xff]  ;;  %v3916_v18 = vld [vmem:[%s5077_s11 + $0xe0] sm:$0xff] }
 0x616   : > { %v2412_v20 = vsel %vm2411_vm9, %v4723_v19, 0.0  ;;  %v2439_v21 = vmul.f32 %v4723_v19, %v4723_v19 }
 0x617   : > { %v2413_v22 = vrot.slane %v2412_v20, 4 }
 0x618   : > { %v2440_v23 = vsel %vm2411_vm9, %v2439_v21, 0.0  ;;  %v2576_v21 = vld [vmem:[%s5077_s11 + $0x58] sm:$0xff] }
 0x619   : > { %v2414_v24 = vadd.f32 %v2413_v22, %v2412_v20  ;;  %v2441_v25 = vrot.slane %v2440_v23, 4  ;;  %v3915_v20 = vld [vmem:[%s5077_s11 + $0xd8] sm:$0xff]  ;;  %v3914_v22 = vld [vmem:[%s5077_s11 + $0xd0] sm:$0xff] }
 0x61b   : > { %v2415_v26 = vrot.slane %v2414_v24, 2  ;;  %v2442_v27 = vadd.f32 %v2441_v25, %v2440_v23  ;;  %v2575_v23 = vld [vmem:[%s5077_s11 + $0x50] sm:$0xff]  ;;  %v2574_v25 = vld [vmem:[%s5077_s11 + $0x48] sm:$0xff] }
 0x61d   : > { %v2416_v28 = vadd.f32 %v2415_v26, %v2414_v24  ;;  %v2443_v29 = vrot.slane %v2442_v27, 2  ;;  %v3913_v24 = vld [vmem:[%s5077_s11 + $0xc8] sm:$0xff]  ;;  %v3912_v26 = vld [vmem:[%s5077_s11 + $0xc0] sm:$0xff] }
 0x61f   : > { %v2417_v30 = vrot.slane %v2416_v28, 1  ;;  %v2444_v31 = vadd.f32 %v2443_v29, %v2442_v27  ;;  %v2573_v27 = vld [vmem:[%s5077_s11 + $0x40] sm:$0xff]  ;;  %v2572_v29 = vld [vmem:[%s5077_s11 + $0x38] sm:$0xff] }
 0x621   : > { %v2418_v32 = vadd.f32 %v2417_v30, %v2416_v28  ;;  %v2445_v33 = vrot.slane %v2444_v31, 1  ;;  %v3911_v28 = vld [vmem:[%s5077_s11 + $0xb8] sm:$0xff]  ;;  %v3910_v30 = vld [vmem:[%s5077_s11 + $0xb0] sm:$0xff] }
 0x623   : > { %2435 = vmatmul.f32.vlgmr.msrb.gmra.mxu2 %v2418_v32  ;;  %v2446_v34 = vadd.f32 %v2445_v33, %v2444_v31  ;;  %v2571_v31 = vld [vmem:[%s5077_s11 + $0x30] sm:$0xff]  ;;  %v3909_v32 = vld [vmem:[%s5077_s11 + $0xa8] sm:$0xff] }
 0x624   : > { %v2570_v33 = vld [vmem:[%s5077_s11 + $0x28] sm:$0xff] }
 0x625   : > { %2463 = vmatmul.f32.vlgmr.msra.gmra.mxu3 %v2446_v34  ;;  %v3908_v34 = vld [vmem:[%s5077_s11 + $0xa0] sm:$0xff] }
 0x6a6   : > { %v2436_v37 = vpop.f32.mrf.mxu2 }
 0x6a7   : > { %v2467_v38 = vmul.f32 0.0625, %v2436_v37  ;;  %v2568_v37 = vld [vmem:[%s5077_s11 + $0x18] sm:$0xff] }
 0x6a8   : > { %v2464_v39 = vpop.f32.mrf.mxu3 }
 0x6a9   : > { %v2469_v40 = vmul.f32 %v2467_v38, %v2467_v38  ;;  %v2468_v41 = vmul.f32 0.0625, %v2464_v39  ;;  %3897 = vmatmul.msk.f32.vlgmr.msrb.gmra.mxu1 %vm2482_vm10, %v2467_v38  ;;  %v3906_v38 = vld [vmem:[%s5077_s11 + $0x90] sm:$0xff] }
 0x6aa   : > { %v2567_v39 = vld [vmem:[%s5077_s11 + $0x10] sm:$0xff] }
 0x6ab   : > { %v2470_v42 = vsub.f32 %v2468_v41, %v2469_v40  ;;  %v3923_v40 = vld [vmem:[%s5077_s11 + $0x100] sm:$0xff]  ;;  %v3905_v41 = vld [vmem:[%s5077_s11 + $0x88] sm:$0xff] }
 0x6ac   : > { %2720 = vmatpush.msrb.mxu3 %v3923_v40 }
 0x6ad   : > { %v2471_v43 = vadd.f32 1e-05, %v2470_v42  ;;  %v2566_v42 = vld [vmem:[%s5077_s11 + $0x8] sm:$0xff] }
 0x6af   : > { %4145 = vrsqrt.f32 %v2471_v43  ;;  %vm2478_vm12 = vweird.f32 %v2471_v43 }
 0x6b5   : > { %v4146_v44 = vpop.eup %4145 }
 0x6b6   : > { %v2473_v45 = vmul.f32 %v4146_v44, %v2471_v43  ;;  %vm2479_vm11 = vweird.f32 %v4146_v44  ;;  %v3904_v43 = vld [vmem:[%s5077_s11 + $0x80] sm:$0xff] }
 0x6b7   : > { %vm2480_vm13 = vmor %vm2478_vm12, %vm2479_vm11 }
 0x6b8   : > { %v2474_v46 = vmul.f32 %v4146_v44, %v2473_v45 }
 0x6ba   : > { %v2475_v47 = vmul.f32 0.5, %v2474_v46 }
 0x6bc   : > { %v2476_v48 = vsub.f32 1.5, %v2475_v47 }
 0x6be   : > { %v2477_v49 = vmul.f32 %v4146_v44, %v2476_v48 }
 0x6c0   : > { %v2481_v50 = vsel %vm2480_vm13, %v4146_v44, %v2477_v49  ;;  %v2565_v44 = vld [vmem:[%s5077_s11] sm:$0xff] }
 0x6c1   : > { %3898 = vmatmul.msk.f32.vlgmr.msra.gmra.mxu1 %vm2482_vm10, %v2481_v50 }
 0x726   : > { %v2503_v60 = vpop.f32.mrf.mxu1 }
 0x727   : > { %v2529_v63 = vperm.slane %v2503_v60, 0 }
 0x729   : > { %v2530_v3 = vsub.f32 %v4723_v19, %v2529_v63  ;;  %v2577_v19 = vld [vmem:[%s5077_s11 + $0x60] sm:$0xff] }
 0x73e   : > { %v2526_v2 = vpop.f32.mrf.mxu1 }
 0x73f   : > { %v2531_v4 = vperm.slane %v2526_v2, 0 }
 0x741   : > { %v2532_v6 = vmul.f32 %v2531_v4, %v2530_v3 }
 0x743   : > { %v4750_v8 = vmax.f32 %v2532_v6, 0.0 }
 0x745   : > { %3899 = vmatpush.msk.msrb.mxu0 %vm2411_vm9, %v4750_v8  ;;  %3902 = vmatpush.msk.msrb.mxu1 %vm2411_vm9, %v4750_v8 }
 0x746   : > { %3921 = vmatpush.msk.msra.mxu2 %vm2411_vm9, %v4750_v8  ;;  %3900 = vmatmul.msk.f32.vlgmr.msrb.gmra.mxu0 %vm2538_vm14, %v2537_v9  ;;  %v4211_v9 = vmov 512.0  }
 0x747   : > { %3922 = vmatmul.msk.f32.vlgmr.msra.gmra.mxu2 %vm2538_vm14, %v3920_v10  ;;  %3903 = vmatmul.msk.f32.vlgmr.msrb.gmra.mxu1 %vm2538_vm14, %v3901_v11  ;;  %4147 = vrcp.f32 %v4211_v9  ;;  %v4131_v9 = vld [vmem:[%s5082_s0] ss:$0 sm:$0xff]  ;;  %s5087_s0 = sld [smem:[#allocation13_spill]] }
 0x748   : > { %2623 = vmatpush.msra.mxu0 %v3919_v12  ;;  %2643 = vmatpush.msra.mxu1 %v2580_v13  ;;  %v4212_v12 = vmov 511.0  }
 0x749   : > { %4149 = vrcp.f32 %v4212_v12  ;;  %v3970_v12 = vld [vmem:[%s5080_s23 + $0x138] sm:$0xff] }
 0x74a   : > { %2624 = vmatpush.msra.mxu0 %v3918_v14  ;;  %2644 = vmatpush.msra.mxu1 %v2579_v15 }
 0x74c   : > { %2625 = vmatpush.msra.mxu0 %v3917_v16  ;;  %2645 = vmatpush.msra.mxu1 %v2578_v17 }
 0x74d   : > { %v4148_v10 = vpop.eup %4147 }
 0x74e   : > { %2626 = vmatpush.msra.mxu0 %v3916_v18  ;;  %2646 = vmatpush.msra.mxu1 %v2577_v19  ;;  %v2754_v11 = vmul.f32 512.0, %v4148_v10  ;;  %vm2758_vm15 = vweird.f32 %v4148_v10 }
 0x74f   : > { %v4150_v15 = vpop.eup %4149 }
 0x750   : > { %2627 = vmatpush.msra.mxu0 %v3915_v20  ;;  %2647 = vmatpush.msra.mxu1 %v2576_v21  ;;  %v2755_v13 = vsub.f32 1.0, %v2754_v11  ;;  %v2766_v17 = vmul.f32 511.0, %v4150_v15  ;;  %vm2770_vm0 = vweird.f32 %v4150_v15  ;;  %v2847_v11 = vld [vmem:[%s5080_s23 + $0x30] sm:$0xff] }
 0x752   : > { %2628 = vmatpush.msra.mxu0 %v3914_v22  ;;  %2648 = vmatpush.msra.mxu1 %v2575_v23  ;;  %v2756_v14 = vmul.f32 %v4148_v10, %v2755_v13  ;;  %v2767_v19 = vsub.f32 1.0, %v2766_v17  ;;  %v2846_v13 = vld [vmem:[%s5080_s23 + $0x28] sm:$0xff]  ;;  %v2814_v17 = vld [vmem:[%s5083_s2] sm:$0xf] }
 0x754   : > { %2629 = vmatpush.msra.mxu0 %v3913_v24  ;;  %2649 = vmatpush.msra.mxu1 %v2574_v25  ;;  %v2757_v16 = vadd.f32 %v4148_v10, %v2756_v14  ;;  %v2768_v22 = vmul.f32 %v4150_v15, %v2767_v19  ;;  %v3960_v19 = vld [vmem:[%s5083_s2 + $0x8] sm:$0xf] }
 0x756   : > { %2630 = vmatpush.msra.mxu0 %v3912_v26  ;;  %2650 = vmatpush.msra.mxu1 %v2573_v27  ;;  %v4805_v18 = vsel %vm2758_vm15, %v4148_v10, %v2757_v16  ;;  %v2769_v24 = vadd.f32 %v4150_v15, %v2768_v22  ;;  %v3971_v10 = vld [vmem:[%s5080_s23 + $0x140] sm:$0xff]  ;;  %v2844_v22 = vld [vmem:[%s5080_s23 + $0x18] sm:$0xff] }
 0x758   : > { %2631 = vmatpush.msra.mxu0 %v3911_v28  ;;  %2651 = vmatpush.msra.mxu1 %v2572_v29  ;;  %v4812_v28 = vsel %vm2770_vm0, %v4150_v15, %v2769_v24  ;;  %v3969_v15 = vld [vmem:[%s5080_s23 + $0x130] sm:$0xff] }
 0x759   : > { %v2843_v24 = vld [vmem:[%s5080_s23 + $0x10] sm:$0xff] }
 0x75a   : > { %2632 = vmatpush.msra.mxu0 %v3910_v30  ;;  %2652 = vmatpush.msra.mxu1 %v2571_v31 }
 0x75c   : > { %2633 = vmatpush.msra.mxu0 %v3909_v32  ;;  %2653 = vmatpush.msra.mxu1 %v2570_v33 }
 0x75e   : > { %2634 = vmatpush.msra.mxu0 %v3908_v34  ;;  %2654 = vmatpush.msra.mxu1 %v2569_v35 }
 0x760   : > { %2635 = vmatpush.msra.mxu0 %v3907_v36  ;;  %2655 = vmatpush.msra.mxu1 %v2568_v37 }
 0x762   : > { %2636 = vmatpush.msra.mxu0 %v3906_v38  ;;  %2656 = vmatpush.msra.mxu1 %v2567_v39 }
 0x764   : > { %2637 = vmatpush.msra.mxu0 %v3905_v41  ;;  %2657 = vmatpush.msra.mxu1 %v2566_v42  ;;  %v2856_v42 = vld [vmem:[%s5080_s23 + $0x78] sm:$0xff] }
 0x766   : > { %2638 = vmatpush.msra.mxu0 %v3904_v43  ;;  %2658 = vmatpush.msra.mxu1 %v2565_v44  ;;  %v2855_v43 = vld [vmem:[%s5080_s23 + $0x70] sm:$0xff]  ;;  %v2854_v44 = vld [vmem:[%s5080_s23 + $0x68] sm:$0xff] }
 0x768   : > { %2919 = vmatpush.msrb.mxu0 %v2856_v42  ;;  %v3946_v42 = vld [vmem:[%s5080_s23 + $0x90] sm:$0xff] }
 0x76a   : > { %2920 = vmatpush.msrb.mxu0 %v2855_v43  ;;  %v3966_v43 = vld [vmem:[%s5080_s23 + $0x118] sm:$0xff] }
 0x76c   : > { %2921 = vmatpush.msrb.mxu0 %v2854_v44  ;;  %v3945_v44 = vld [vmem:[%s5080_s23 + $0x88] sm:$0xff] }
 0x7c3   : > { %v2562_v45 = vpop.f32.mrf.mxu0 }
 0x7c4   : > { %v2603_v46 = vpop.f32.mrf.mxu1  ;;  %2659 = vmatmul.f32.vlgmr.msra.gmra.mxu1 %v2562_v45  ;;  %v3978_v45 = vld [vmem:[%s5080_s23 + $0x178] sm:$0xff] }
 0x7c5   : > { %2639 = vmatmul.f32.vlgmr.msra.gmra.mxu0 %v2603_v46  ;;  %2981 = vmatpush.msra.mxu3 %v3978_v45  ;;  %v3965_v45 = vld [vmem:[%s5080_s23 + $0x110] sm:$0xff] }
 0x7ca   : > { %v2685_v47 = vpop.f32.mrf.mxu2 }
 0x7cb   : > { %2721 = vmatmul.f32.vlgmr.msrb.gmra.mxu3 %v2685_v47  ;;  %v2853_v47 = vld [vmem:[%s5080_s23 + $0x60] sm:$0xff] }
 0x7cc   : > { %2922 = vmatpush.msrb.mxu0 %v2853_v47  ;;  %v3964_v47 = vld [vmem:[%s5080_s23 + $0x108] sm:$0xff] }
 0x841   : > { %v2660_v49 = vpop.f32.mrf.mxu1 }
 0x842   : > { %v2640_v48 = vpop.f32.mrf.mxu0 }
 0x843   : > { %v2661_v50 = vadd.f32 %v2660_v49, %v2640_v48  ;;  %v3977_v48 = vld [vmem:[%s5080_s23 + $0x170] sm:$0xff] }
 0x844   : > { %2982 = vmatpush.msra.mxu3 %v3977_v48  ;;  %v3963_v48 = vld [vmem:[%s5080_s23 + $0x100] sm:$0xff] }
 0x84e   : > { %v2722_v52 = vpop.f32.mrf.mxu3 }
 0x84f   : > { %v2725_v53 = vadd.f32 %v2722_v52, %v2661_v50  ;;  %v3976_v50 = vld [vmem:[%s5080_s23 + $0x168] sm:$0xff] }
 0x850   : > { %2983 = vmatpush.msra.mxu3 %v3976_v50 }
 0x851   : > { %v4798_v54 = vadd.f32 %v4129_v51, %v2725_v53  ;;  %v2852_v51 = vld [vmem:[%s5080_s23 + $0x58] sm:$0xff]  ;;  %v3975_v53 = vld [vmem:[%s5080_s23 + $0x160] sm:$0xff] }
 0x852   : > { %2923 = vmatpush.msrb.mxu0 %v2852_v51  ;;  %2984 = vmatpush.msra.mxu3 %v3975_v53 }
 0x853   : > { %v2730_v55 = vsel %vm2411_vm9, %v4798_v54, 0.0  ;;  %v2741_v56 = vmul.f32 %v4798_v54, %v4798_v54 }
 0x854   : > { %2731 = vadd.xlane.f32.xlu0 %v2730_v55 }
 0x855   : > { %v2742_v57 = vsel %vm2411_vm9, %v2741_v56, 0.0  ;;  %v2851_v56 = vld [vmem:[%s5080_s23 + $0x50] sm:$0xff] }
 0x856   : > { %2924 = vmatpush.msrb.mxu0 %v2851_v56 }
 0x85c   : > { %2743 = vadd.xlane.f32.xlu0 %v2742_v57 }
 0x8c7   : > { %v2732_v58 = vpop.xlane.xlu0 %2731 }
 0x8c8   : > { %v2733_v59 = vrot.slane %v2732_v58, 4 }
 0x8ca   : > { %v2734_v60 = vadd.f32 %v2733_v59, %v2732_v58  ;;  %v3974_v59 = vld [vmem:[%s5080_s23 + $0x158] sm:$0xff] }
 0x8cb   : > { %2985 = vmatpush.msra.mxu3 %v3974_v59 }
 0x8cc   : > { %v2735_v61 = vrot.slane %v2734_v60, 2 }
 0x8ce   : > { %v2736_v62 = vadd.f32 %v2735_v61, %v2734_v60  ;;  %v2850_v60 = vld [vmem:[%s5080_s23 + $0x48] sm:$0xff] }
 0x8cf   : > { %v2744_v63 = vpop.xlane.xlu0 %2743  ;;  %2925 = vmatpush.msrb.mxu0 %v2850_v60 }
 0x8d0   : > { %v2745_v0 = vrot.slane %v2744_v63, 4  ;;  %v2737_v1 = vrot.slane %v2736_v62, 1 }
 0x8d2   : > { %v2746_v2 = vadd.f32 %v2745_v0, %v2744_v63  ;;  %v2738_v3 = vadd.f32 %v2737_v1, %v2736_v62  ;;  %v3973_v62 = vld [vmem:[%s5080_s23 + $0x150] sm:$0xff]  ;;  %v2849_v0 = vld [vmem:[%s5080_s23 + $0x40] sm:$0xff] }
 0x8d3   : > { %2986 = vmatpush.msra.mxu3 %v3973_v62  ;;  %2926 = vmatpush.msrb.mxu0 %v2849_v0 }
 0x8d4   : > { %v2747_v4 = vrot.slane %v2746_v2, 2  ;;  %4064 = vpush %v2738_v3  ;;  %v4130_v3 = vld [vmem:[%s5081_s26] ss:$0 sm:$0xff]  ;;  %s5086_s26 = sld [smem:[#allocation12_spill]] }
 0x8d6   : > { %v2748_v5 = vadd.f32 %v2747_v4, %v2746_v2  ;;  %v3972_v4 = vld [vmem:[%s5080_s23 + $0x148] sm:$0xff] }
 0x8d7   : > { %2987 = vmatpush.msra.mxu3 %v3972_v4 }
 0x8d8   : > { %v2749_v6 = vrot.slane %v2748_v5, 1 }
 0x8d9   : > { %2988 = vmatpush.msra.mxu3 %v3971_v10 }
 0x8da   : > { %v2750_v7 = vadd.f32 %v2749_v6, %v2748_v5  ;;  %v2848_v6 = vld [vmem:[%s5080_s23 + $0x38] sm:$0xff] }
 0x8db   : > { %2927 = vmatpush.msrb.mxu0 %v2848_v6  ;;  %2989 = vmatpush.msra.mxu3 %v3970_v12 }
 0x8dc   : > { %4066 = vpush %v2750_v7 }
 0x8dd   : > { %2928 = vmatpush.msrb.mxu0 %v2847_v11  ;;  %2990 = vmatpush.msra.mxu3 %v3969_v15 }
 0x8df   : > { %2929 = vmatpush.msrb.mxu0 %v2846_v13 }
 0x905   : > { %s4065_s18 = spop %4064 }
 0x906   : > { %v2740_v20 = vstv %s4065_s18 }
 0x907   : > { %v4808_v21 = vmul.f32 %v4805_v18, %v2740_v20  ;;  %v2845_v20 = vld [vmem:[%s5080_s23 + $0x20] sm:$0xff] }
 0x908   : > { %2930 = vmatpush.msrb.mxu0 %v2845_v20 }
 0x909   : > { %v2761_v23 = vmul.f32 512.0, %v4808_v21  ;;  %v2785_v1 = vsub.f32 %v4798_v54, %v4808_v21 }
 0x90a   : > { %2931 = vmatpush.msrb.mxu0 %v2844_v22 }
 0x90b   : > { %v2762_v25 = vmul.f32 %v2761_v23, %v4808_v21  ;;  %v3959_v21 = vld [vmem:[%s5080_s23 + $0xf8] sm:$0xff]  ;;  %v3958_v23 = vld [vmem:[%s5080_s23 + $0xf0] sm:$0xff] }
 0x90c   : > { %2932 = vmatpush.msrb.mxu0 %v2843_v24 }
 0x90d   : > { %s4067_s22 = spop %4066 }
 0x90e   : > { %v2752_v26 = vstv %s4067_s22  ;;  %s5085_s22 = sld [smem:[#allocation15_spill]] }
 0x90f   : > { %v2763_v27 = vsub.f32 %v2752_v26, %v2762_v25  ;;  %v3957_v25 = vld [vmem:[%s5080_s23 + $0xe8] sm:$0xff] }
 0x910   : > { %v2842_v26 = vld [vmem:[%s5080_s23 + $0x8] sm:$0xff] }
 0x911   : > { %v2764_v29 = vmax.f32 %v2763_v27, 0.0  ;;  %v3941_v27 = vld [vmem:[%s5083_s2 + $0x4] sm:$0xf]  ;;  %2933 = vmatpush.msrb.mxu0 %v2842_v26 }
 0x913   : > { %v2772_v30 = vmul.f32 %v4812_v28, %v2764_v29  ;;  %v3956_v29 = vld [vmem:[%s5080_s23 + $0xe0] sm:$0xff] }
 0x915   : > { %4151 = vrsqrt.f32 %v2772_v30  ;;  %vm2780_vm1 = vcmp.eq.f32.partialorder %v2772_v30, inf  ;;  %v2783_v38 = vand.u32 2147483648, %v2772_v30  ;;  %vm2782_vm2 = vcmp.eq.f32.partialorder %v2772_v30, 0.0 }
 0x91b   : > { %v4152_v31 = vpop.eup %4151 }
 0x91c   : > { %v2774_v32 = vmul.f32 %v4152_v31, %v2772_v30 }
 0x91e   : > { %v2775_v33 = vmul.f32 %v4152_v31, %v2774_v32  ;;  %v3953_v32 = vld [vmem:[%s5080_s23 + $0xc8] sm:$0xff] }
 0x920   : > { %v2776_v34 = vmul.f32 0.5, %v2775_v33  ;;  %v3952_v33 = vld [vmem:[%s5080_s23 + $0xc0] sm:$0xff] }
 0x922   : > { %v2777_v35 = vsub.f32 1.5, %v2776_v34  ;;  %v3951_v34 = vld [vmem:[%s5080_s23 + $0xb8] sm:$0xff] }
 0x924   : > { %v2778_v36 = vmul.f32 %v4152_v31, %v2777_v35  ;;  %v3954_v31 = vld [vmem:[%s5080_s23 + $0xd0] sm:$0xff] }
 0x925   : > { %v3950_v35 = vld [vmem:[%s5080_s23 + $0xb0] sm:$0xff] }
 0x926   : > { %v2779_v37 = vmul.f32 %v2778_v36, %v2772_v30  ;;  %v3949_v36 = vld [vmem:[%s5080_s23 + $0xa8] sm:$0xff] }
 0x928   : > { %v2781_v39 = vsel %vm2780_vm1, %v2772_v30, %v2779_v37  ;;  %v3955_v30 = vld [vmem:[%s5080_s23 + $0xd8] sm:$0xff]  ;;  %v3948_v37 = vld [vmem:[%s5080_s23 + $0xa0] sm:$0xff] }
 0x929   : > { %v2784_v40 = vsel %vm2782_vm2, %v2783_v38, %v2781_v39  ;;  %v2841_v38 = vld [vmem:[%s5080_s23] sm:$0xff]  ;;  %v3968_v39 = vld [vmem:[%s5080_s23 + $0x128] sm:$0xff] }
 0x92a   : > { %v2786_v41 = vadd.f32 1e-05, %v2784_v40  ;;  %2934 = vmatpush.msrb.mxu0 %v2841_v38  ;;  %v3947_v40 = vld [vmem:[%s5080_s23 + $0x98] sm:$0xff]  ;;  %2991 = vmatpush.msra.mxu3 %v3968_v39  ;;  %v3116_v38 = vld [vmem:[%s5085_s22 + $0x68] sm:$0xff] }
 0x92b   : > { %v4016_v39 = vld [vmem:[%s5085_s22 + $0x168] sm:$0xff] }
 0x92c   : > { %4153 = vrcp.f32 %v2786_v41  ;;  %v2798_v55 = vand.u32 2147483648, %v2786_v41  ;;  %v2796_v58 = vand.u32 2147483647, %v2786_v41  ;;  %vm2792_vm4 = vweird.f32 %v2786_v41 }
 0x92e   : > { %v2799_v63 = vor.u32 1.1754944e-38, %v2798_v55  ;;  %vm2797_vm6 = vcmp.eq.f32.partialorder %v2796_v58, 8.507059e+37 }
 0x932   : > { %v4154_v46 = vpop.eup %4153 }
 0x933   : > { %v2788_v49 = vmul.f32 %v4154_v46, %v2786_v41  ;;  %vm2793_vm3 = vweird.f32 %v4154_v46  ;;  %v3967_v41 = vld [vmem:[%s5080_s23 + $0x120] sm:$0xff] }
 0x934   : > { %vm2794_vm5 = vmor %vm2792_vm4, %vm2793_vm3  ;;  %2992 = vmatpush.msra.mxu3 %v3967_v41  ;;  %v3115_v41 = vld [vmem:[%s5085_s22 + $0x60] sm:$0xff] }
 0x935   : > { %v2789_v52 = vsub.f32 1.0, %v2788_v49 }
 0x936   : > { %2993 = vmatpush.msra.mxu3 %v3966_v43  ;;  %v4015_v43 = vld [vmem:[%s5085_s22 + $0x160] sm:$0xff] }
 0x937   : > { %v2790_v57 = vmul.f32 %v4154_v46, %v2789_v52 }
 0x938   : > { %2994 = vmatpush.msra.mxu3 %v3965_v45 }
 0x939   : > { %v2791_v61 = vadd.f32 %v4154_v46, %v2790_v57  ;;  %v4132_v57 = vld [vmem:[%s5084_s10] ss:$0 sm:$0xff]  ;;  %s5088_s10 = sld [smem:[#allocation14_spill]] }
 0x93a   : > { %2995 = vmatpush.msra.mxu3 %v3964_v47 }
 0x93b   : > { %v2795_v2 = vsel %vm2794_vm5, %v4154_v46, %v2791_v61  ;;  %v3944_v46 = vld [vmem:[%s5080_s23 + $0x80] sm:$0xff] }
 0x93c   : > { %v2800_v5 = vsel %vm2797_vm6, %v2799_v63, %v2795_v2  ;;  %2996 = vmatpush.msra.mxu3 %v3963_v48  ;;  %v3113_v48 = vld [vmem:[%s5085_s22 + $0x50] sm:$0xff] }
 0x93d   : > { %v2801_v7 = vmul.f32 %v2800_v5, %v2785_v1 }
 0x93f   : > { %v2805_v54 = vmul.f32 %v4130_v3, %v2801_v7 }
 0x941   : > { %v2809_v14 = vadd.f32 %v4131_v9, %v2805_v54 }
 0x943   : > { %v2810_v16 = vmax.f32 %v2809_v14, 0.0 }
 0x945   : > { %3939 = vmatpush.msk.msrb.mxu2 %vm2411_vm9, %v2810_v16  ;;  %3961 = vmatpush.msk.msrb.mxu1 %vm2411_vm9, %v2810_v16 }
 0x946   : > { %3940 = vmatmul.msk.f32.vlgmr.msrb.gmra.mxu2 %vm2538_vm14, %v2814_v17  ;;  %3962 = vmatmul.msk.f32.vlgmr.msrb.gmra.mxu1 %vm2538_vm14, %v3960_v19 }
 0x947   : > { %3942 = vmatpush.msk.msra.mxu2 %vm2411_vm9, %v2810_v16 }
 0x949   : > { %2899 = vmatpush.msrb.mxu2 %v3959_v21 }
 0x94b   : > { %2900 = vmatpush.msrb.mxu2 %v3958_v23 }
 0x94d   : > { %2901 = vmatpush.msrb.mxu2 %v3957_v25 }
 0x94e   : > { %3943 = vmatmul.msk.f32.vlgmr.msra.gmra.mxu2 %vm2538_vm14, %v3941_v27 }
 0x94f   : > { %2902 = vmatpush.msrb.mxu2 %v3956_v29 }
 0x951   : > { %2903 = vmatpush.msrb.mxu2 %v3955_v30 }
 0x953   : > { %2904 = vmatpush.msrb.mxu2 %v3954_v31 }
 0x955   : > { %2905 = vmatpush.msrb.mxu2 %v3953_v32 }
 0x957   : > { %2906 = vmatpush.msrb.mxu2 %v3952_v33 }
 0x959   : > { %2907 = vmatpush.msrb.mxu2 %v3951_v34  ;;  %v3118_v34 = vld [vmem:[%s5085_s22 + $0x78] sm:$0xff] }
 0x95b   : > { %2908 = vmatpush.msrb.mxu2 %v3950_v35  ;;  %v3117_v35 = vld [vmem:[%s5085_s22 + $0x70] sm:$0xff] }
 0x95d   : > { %2909 = vmatpush.msrb.mxu2 %v3949_v36  ;;  %v4018_v36 = vld [vmem:[%s5085_s22 + $0x178] sm:$0xff] }
 0x95e   : > { %3243 = vmatpush.msrb.mxu3 %v4018_v36  ;;  %v3986_v36 = vld [vmem:[%s5085_s22 + $0x90] sm:$0xff] }
 0x95f   : > { %2910 = vmatpush.msrb.mxu2 %v3948_v37  ;;  %v4017_v37 = vld [vmem:[%s5085_s22 + $0x170] sm:$0xff] }
 0x960   : > { %3244 = vmatpush.msrb.mxu3 %v4017_v37  ;;  %v4003_v37 = vld [vmem:[%s5085_s22 + $0x100] sm:$0xff] }
 0x961   : > { %2911 = vmatpush.msrb.mxu2 %v3947_v40 }
 0x962   : > { %3245 = vmatpush.msrb.mxu3 %v4016_v39  ;;  %v3984_v39 = vld [vmem:[%s5085_s22 + $0x80] sm:$0xff] }
 0x963   : > { %2912 = vmatpush.msrb.mxu2 %v3946_v42 }
 0x964   : > { %3246 = vmatpush.msrb.mxu3 %v4015_v43 }
 0x965   : > { %2913 = vmatpush.msrb.mxu2 %v3945_v44  ;;  %v3114_v44 = vld [vmem:[%s5085_s22 + $0x58] sm:$0xff] }
 0x967   : > { %2914 = vmatpush.msrb.mxu2 %v3944_v46  ;;  %v4014_v46 = vld [vmem:[%s5085_s22 + $0x158] sm:$0xff] }
 0x968   : > { %3247 = vmatpush.msrb.mxu3 %v4014_v46 }
 0x969   : > { %3181 = vmatpush.msra.mxu2 %v3118_v34  ;;  %v3987_v34 = vld [vmem:[%s5085_s22 + $0x98] sm:$0xff] }
 0x96b   : > { %3182 = vmatpush.msra.mxu2 %v3117_v35  ;;  %v4004_v35 = vld [vmem:[%s5085_s22 + $0x108] sm:$0xff] }
 0x96d   : > { %3183 = vmatpush.msra.mxu2 %v3116_v38  ;;  %v3985_v38 = vld [vmem:[%s5085_s22 + $0x88] sm:$0xff] }
 0x96f   : > { %3184 = vmatpush.msra.mxu2 %v3115_v41 }
 0x971   : > { %3185 = vmatpush.msra.mxu2 %v3114_v44 }
 0x973   : > { %3186 = vmatpush.msra.mxu2 %v3113_v48 }
 0x9c3   : > { %v2961_v49 = vpop.f32.mrf.mxu1 }
 0x9c4   : > { %2997 = vmatmul.f32.vlgmr.msra.gmra.mxu3 %v2961_v49 }
 0x9c9   : > { %v2838_v50 = vpop.f32.mrf.mxu2 }
 0x9ca   : > { %2935 = vmatmul.f32.vlgmr.msrb.gmra.mxu0 %v2838_v50 }
 0x9d1   : > { %v2879_v51 = vpop.f32.mrf.mxu2 }
 0x9d2   : > { %2915 = vmatmul.f32.vlgmr.msrb.gmra.mxu2 %v2879_v51  ;;  %v4013_v51 = vld [vmem:[%s5085_s22 + $0x150] sm:$0xff] }
 0x9d3   : > { %3248 = vmatpush.msrb.mxu3 %v4013_v51 }
 0xa47   : > { %v2936_v52 = vpop.f32.mrf.mxu0  ;;  %v2998_v55 = vpop.f32.mrf.mxu3 }
 0xa55   : > { %v2916_v53 = vpop.f32.mrf.mxu2 }
 0xa56   : > { %v2937_v56 = vadd.f32 %v2936_v52, %v2916_v53  ;;  %v3112_v52 = vld [vmem:[%s5085_s22 + $0x48] sm:$0xff] }
 0xa57   : > { %3187 = vmatpush.msra.mxu2 %v3112_v52 }
 0xa58   : > { %v3001_v58 = vadd.f32 %v2998_v55, %v2937_v56  ;;  %v4012_v55 = vld [vmem:[%s5085_s22 + $0x148] sm:$0xff] }
 0xa59   : > { %3249 = vmatpush.msrb.mxu3 %v4012_v55 }
 0xa5a   : > { %v4877_v59 = vadd.f32 %v4132_v57, %v3001_v58  ;;  %v3111_v57 = vld [vmem:[%s5085_s22 + $0x40] sm:$0xff] }
 0xa5b   : > { %3188 = vmatpush.msra.mxu2 %v3111_v57 }
 0xa5c   : > { %v3006_v60 = vsel %vm2411_vm9, %v4877_v59, 0.0  ;;  %v3017_v61 = vmul.f32 %v4877_v59, %v4877_v59 }
 0xa5d   : > { %3007 = vadd.xlane.f32.xlu1 %v3006_v60 }
 0xa5e   : > { %v3018_v62 = vsel %vm2411_vm9, %v3017_v61, 0.0  ;;  %v4133_v61 = vld [vmem:[%s5086_s26] ss:$0 sm:$0xff] }
 0xa65   : > { %3019 = vadd.xlane.f32.xlu1 %v3018_v62  ;;  %v4011_v62 = vld [vmem:[%s5085_s22 + $0x140] sm:$0xff] }
 0xa66   : > { %3250 = vmatpush.msrb.mxu3 %v4011_v62 }
 0xad0   : > { %v3008_v63 = vpop.xlane.xlu1 %3007 }
 0xad1   : > { %v3009_v0 = vrot.slane %v3008_v63, 4 }
 0xad3   : > { %v3010_v1 = vadd.f32 %v3009_v0, %v3008_v63  ;;  %v3110_v0 = vld [vmem:[%s5085_s22 + $0x38] sm:$0xff] }
 0xad4   : > { %3189 = vmatpush.msra.mxu2 %v3110_v0 }
 0xad5   : > { %v3011_v2 = vrot.slane %v3010_v1, 2 }
 0xad7   : > { %v3012_v3 = vadd.f32 %v3011_v2, %v3010_v1  ;;  %v4134_v2 = vld [vmem:[%s5087_s0] ss:$0 sm:$0xff]  ;;  %s5090_s0 = sld [smem:[#allocation20_spill]] }
 0xad8   : > { %v3020_v4 = vpop.xlane.xlu1 %3019 }
 0xad9   : > { %v3021_v5 = vrot.slane %v3020_v4, 4  ;;  %v3013_v6 = vrot.slane %v3012_v3, 1 }
 0xadb   : > { %v3022_v7 = vadd.f32 %v3021_v5, %v3020_v4  ;;  %v3014_v9 = vadd.f32 %v3013_v6, %v3012_v3  ;;  %v4010_v3 = vld [vmem:[%s5085_s22 + $0x138] sm:$0xff]  ;;  %v3109_v4 = vld [vmem:[%s5085_s22 + $0x30] sm:$0xff]  ;;  %v3108_v6 = vld [vmem:[%s5085_s22 + $0x28] sm:$0xff] }
 0xadc   : > { %v4009_v5 = vld [vmem:[%s5085_s22 + $0x130] sm:$0xff]  ;;  %3251 = vmatpush.msrb.mxu3 %v4010_v3  ;;  %3190 = vmatpush.msra.mxu2 %v3109_v4 }
 0xadd   : > { %v3023_v10 = vrot.slane %v3022_v7, 2  ;;  %4068 = vpush %v3014_v9  ;;  %v4008_v9 = vld [vmem:[%s5085_s22 + $0x128] sm:$0xff] }
 0xade   : > { %3252 = vmatpush.msrb.mxu3 %v4009_v5  ;;  %3191 = vmatpush.msra.mxu2 %v3108_v6 }
 0xadf   : > { %v3024_v11 = vadd.f32 %v3023_v10, %v3022_v7 }
 0xae0   : > { %3253 = vmatpush.msrb.mxu3 %v4008_v9 }
 0xae1   : > { %v3025_v54 = vrot.slane %v3024_v11, 1 }
 0xae3   : > { %v3026_v12 = vadd.f32 %v3025_v54, %v3024_v11  ;;  %v3076_v11 = vld [vmem:[%s5088_s10] sm:$0xf]  ;;  %v4000_v54 = vld [vmem:[%s5088_s10 + $0x8] sm:$0xf] }
 0xae5   : > { %4070 = vpush %v3026_v12  ;;  %v3107_v12 = vld [vmem:[%s5085_s22 + $0x20] sm:$0xff] }
 0xae6   : > { %3192 = vmatpush.msra.mxu2 %v3107_v12 }
 0xb0e   : > { %s4069_s16 = spop %4068 }
 0xb0f   : > { %v3016_v13 = vstv %s4069_s16  ;;  %s5089_s16 = sld [smem:[#allocation16_spill]] }
 0xb10   : > { %v4885_v14 = vmul.f32 %v3016_v13, %v4805_v18  ;;  %v3999_v13 = vld [vmem:[%s5085_s22 + $0xf8] sm:$0xff] }
 0xb12   : > { %v3030_v15 = vmul.f32 512.0, %v4885_v14  ;;  %v3047_v58 = vsub.f32 %v4877_v59, %v4885_v14 }
 0xb14   : > { %v3031_v16 = vmul.f32 %v3030_v15, %v4885_v14  ;;  %v4007_v14 = vld [vmem:[%s5085_s22 + $0x120] sm:$0xff]  ;;  %v3998_v15 = vld [vmem:[%s5085_s22 + $0xf0] sm:$0xff] }
 0xb15   : > { %3254 = vmatpush.msrb.mxu3 %v4007_v14 }
 0xb16   : > { %s4071_s18 = spop %4070 }
 0xb17   : > { %v3028_v17 = vstv %s4071_s18 }
 0xb18   : > { %v3032_v19 = vsub.f32 %v3028_v17, %v3031_v16  ;;  %v4006_v16 = vld [vmem:[%s5085_s22 + $0x118] sm:$0xff]  ;;  %v3105_v17 = vld [vmem:[%s5085_s22 + $0x10] sm:$0xff] }
 0xb19   : > { %3255 = vmatpush.msrb.mxu3 %v4006_v16 }
 0xb1a   : > { %v3033_v20 = vmax.f32 %v3032_v19, 0.0  ;;  %v3997_v19 = vld [vmem:[%s5085_s22 + $0xe8] sm:$0xff] }
 0xb1c   : > { %v3034_v21 = vmul.f32 %v3033_v20, %v4812_v28  ;;  %v3104_v20 = vld [vmem:[%s5085_s22 + $0x8] sm:$0xff] }
 0xb1e   : > { %4155 = vrsqrt.f32 %v3034_v21  ;;  %vm3042_vm7 = vcmp.eq.f32.partialorder %v3034_v21, inf  ;;  %v3045_v30 = vand.u32 2147483648, %v3034_v21  ;;  %vm3044_vm8 = vcmp.eq.f32.partialorder %v3034_v21, 0.0 }
 0xb24   : > { %v4156_v22 = vpop.eup %4155 }
 0xb25   : > { %v3036_v23 = vmul.f32 %v4156_v22, %v3034_v21 }
 0xb27   : > { %v3037_v24 = vmul.f32 %v4156_v22, %v3036_v23  ;;  %v3995_v23 = vld [vmem:[%s5085_s22 + $0xd8] sm:$0xff] }
 0xb29   : > { %v3038_v25 = vmul.f32 0.5, %v3037_v24  ;;  %v3994_v24 = vld [vmem:[%s5085_s22 + $0xd0] sm:$0xff] }
 0xb2b   : > { %v3039_v26 = vsub.f32 1.5, %v3038_v25  ;;  %v3993_v25 = vld [vmem:[%s5085_s22 + $0xc8] sm:$0xff] }
 0xb2d   : > { %v3040_v27 = vmul.f32 %v4156_v22, %v3039_v26  ;;  %v3996_v22 = vld [vmem:[%s5085_s22 + $0xe0] sm:$0xff] }
 0xb2e   : > { %v3992_v26 = vld [vmem:[%s5085_s22 + $0xc0] sm:$0xff] }
 0xb2f   : > { %v3041_v29 = vmul.f32 %v3040_v27, %v3034_v21  ;;  %v3991_v27 = vld [vmem:[%s5085_s22 + $0xb8] sm:$0xff] }
 0xb31   : > { %v3043_v31 = vsel %vm3042_vm7, %v3034_v21, %v3041_v29  ;;  %v3981_v21 = vld [vmem:[%s5088_s10 + $0x4] sm:$0xf]  ;;  %v3990_v29 = vld [vmem:[%s5085_s22 + $0xb0] sm:$0xff] }
 0xb32   : > { %v3046_v32 = vsel %vm3044_vm8, %v3045_v30, %v3043_v31  ;;  %v3989_v30 = vld [vmem:[%s5085_s22 + $0xa8] sm:$0xff]  ;;  %v3988_v31 = vld [vmem:[%s5085_s22 + $0xa0] sm:$0xff] }
 0xb33   : > { %v3048_v33 = vadd.f32 1e-05, %v3046_v32  ;;  %v3103_v32 = vld [vmem:[%s5085_s22] sm:$0xff] }
 0xb35   : > { %4157 = vrcp.f32 %v3048_v33  ;;  %v3060_v47 = vand.u32 2147483648, %v3048_v33  ;;  %v3058_v50 = vand.u32 2147483647, %v3048_v33  ;;  %vm3054_vm11 = vweird.f32 %v3048_v33 }
 0xb37   : > { %v3061_v56 = vor.u32 1.1754944e-38, %v3060_v47  ;;  %vm3059_vm13 = vcmp.eq.f32.partialorder %v3058_v50, 8.507059e+37  ;;  %v4135_v47 = vld [vmem:[%s5089_s16] ss:$0 sm:$0xff]  ;;  %s5091_s16 = sld [smem:[#allocation17_spill]] }
 0xb3b   : > { %v4158_v40 = vpop.eup %4157 }
 0xb3c   : > { %v3050_v42 = vmul.f32 %v4158_v40, %v3048_v33  ;;  %vm3055_vm10 = vweird.f32 %v4158_v40  ;;  %v4005_v33 = vld [vmem:[%s5085_s22 + $0x110] sm:$0xff] }
 0xb3d   : > { %vm3056_vm12 = vmor %vm3054_vm11, %vm3055_vm10  ;;  %3256 = vmatpush.msrb.mxu3 %v4005_v33  ;;  %v3376_v33 = vld [vmem:[%s5090_s0 + $0x58] sm:$0xff] }
 0xb3e   : > { %v3051_v45 = vsub.f32 1.0, %v3050_v42 }
 0xb3f   : > { %3257 = vmatpush.msrb.mxu3 %v4004_v35 }
 0xb40   : > { %v3052_v49 = vmul.f32 %v4158_v40, %v3051_v45 }
 0xb41   : > { %3258 = vmatpush.msrb.mxu3 %v4003_v37 }
 0xb42   : > { %v3053_v53 = vadd.f32 %v4158_v40, %v3052_v49 }
 0xb44   : > { %v3057_v60 = vsel %vm3056_vm12, %v4158_v40, %v3053_v53 }
 0xb45   : > { %v3062_v63 = vsel %vm3059_vm13, %v3061_v56, %v3057_v60 }
 0xb46   : > { %v3063_v1 = vmul.f32 %v3062_v63, %v3047_v58 }
 0xb48   : > { %v3067_v59 = vmul.f32 %v4133_v61, %v3063_v1 }
 0xb4a   : > { %v3071_v7 = vadd.f32 %v4134_v2, %v3067_v59 }
 0xb4c   : > { %v4917_v10 = vadd.f32 %v3071_v7, %v4750_v8  ;;  %v3106_v8 = vld [vmem:[%s5085_s22 + $0x18] sm:$0xff] }
 0xb4d   : > { %3193 = vmatpush.msra.mxu2 %v3106_v8 }
 0xb4e   : > { %3979 = vmatpush.msk.msra.mxu1 %vm2411_vm9, %v4917_v10  ;;  %4001 = vmatpush.msk.msra.mxu0 %vm2411_vm9, %v4917_v10 }
 0xb4f   : > { %3980 = vmatmul.msk.f32.vlgmr.msra.gmra.mxu1 %vm2538_vm14, %v3076_v11  ;;  %4002 = vmatmul.msk.f32.vlgmr.msra.gmra.mxu0 %vm2538_vm14, %v4000_v54 }
 0xb50   : > { %3982 = vmatpush.msk.msrb.mxu1 %vm2411_vm9, %v4917_v10  ;;  %3194 = vmatpush.msra.mxu2 %v3105_v17 }
 0xb52   : > { %3161 = vmatpush.msra.mxu1 %v3999_v13  ;;  %3195 = vmatpush.msra.mxu2 %v3104_v20 }
 0xb54   : > { %3162 = vmatpush.msra.mxu1 %v3998_v15  ;;  %3196 = vmatpush.msra.mxu2 %v3103_v32 }
 0xb56   : > { %3163 = vmatpush.msra.mxu1 %v3997_v19 }
 0xb57   : > { %3983 = vmatmul.msk.f32.vlgmr.msrb.gmra.mxu1 %vm2538_vm14, %v3981_v21 }
 0xb58   : > { %3164 = vmatpush.msra.mxu1 %v3996_v22 }
 0xb5a   : > { %3165 = vmatpush.msra.mxu1 %v3995_v23 }
 0xb5c   : > { %3166 = vmatpush.msra.mxu1 %v3994_v24  ;;  %v3380_v24 = vld [vmem:[%s5090_s0 + $0x78] sm:$0xff] }
 0xb5e   : > { %3167 = vmatpush.msra.mxu1 %v3993_v25  ;;  %v3379_v25 = vld [vmem:[%s5090_s0 + $0x70] sm:$0xff] }
 0xb60   : > { %3168 = vmatpush.msra.mxu1 %v3992_v26 }
 0xb62   : > { %3169 = vmatpush.msra.mxu1 %v3991_v27  ;;  %v3378_v27 = vld [vmem:[%s5090_s0 + $0x68] sm:$0xff] }
 0xb64   : > { %3170 = vmatpush.msra.mxu1 %v3990_v29 }
 0xb66   : > { %3171 = vmatpush.msra.mxu1 %v3989_v30  ;;  %v3377_v30 = vld [vmem:[%s5090_s0 + $0x60] sm:$0xff] }
 0xb68   : > { %3172 = vmatpush.msra.mxu1 %v3988_v31 }
 0xb6a   : > { %3173 = vmatpush.msra.mxu1 %v3987_v34 }
 0xb6c   : > { %3174 = vmatpush.msra.mxu1 %v3986_v36  ;;  %v3375_v36 = vld [vmem:[%s5090_s0 + $0x50] sm:$0xff] }
 0xb6e   : > { %3175 = vmatpush.msra.mxu1 %v3985_v38 }
 0xb70   : > { %3176 = vmatpush.msra.mxu1 %v3984_v39  ;;  %v3374_v39 = vld [vmem:[%s5090_s0 + $0x48] sm:$0xff] }
 0xb72   : > { %3443 = vmatpush.msrb.mxu1 %v3380_v24  ;;  %v4027_v24 = vld [vmem:[%s5090_s0 + $0x98] sm:$0xff] }
 0xb74   : > { %3444 = vmatpush.msrb.mxu1 %v3379_v25  ;;  %v4044_v25 = vld [vmem:[%s5090_s0 + $0x108] sm:$0xff] }
 0xb76   : > { %3445 = vmatpush.msrb.mxu1 %v3378_v27  ;;  %v3365_v27 = vld [vmem:[%s5090_s0] sm:$0xff] }
 0xb78   : > { %3446 = vmatpush.msrb.mxu1 %v3377_v30  ;;  %v4025_v30 = vld [vmem:[%s5090_s0 + $0x88] sm:$0xff] }
 0xb7a   : > { %3447 = vmatpush.msrb.mxu1 %v3376_v33 }
 0xb7c   : > { %3448 = vmatpush.msrb.mxu1 %v3375_v36 }
 0xb7e   : > { %3449 = vmatpush.msrb.mxu1 %v3374_v39 }
 0xbcc   : > { %v3100_v40 = vpop.f32.mrf.mxu1  ;;  %v3223_v41 = vpop.f32.mrf.mxu0 }
 0xbcd   : > { %3197 = vmatmul.f32.vlgmr.msra.gmra.mxu2 %v3100_v40  ;;  %3259 = vmatmul.f32.vlgmr.msrb.gmra.mxu3 %v3223_v41 }
 0xbd4   : > { %v3141_v42 = vpop.f32.mrf.mxu1 }
 0xbd5   : > { %3177 = vmatmul.f32.vlgmr.msra.gmra.mxu1 %v3141_v42  ;;  %v4136_v42 = vld [vmem:[%s5091_s16] ss:$0 sm:$0xff] }
 0xc50   : > { %v3198_v43 = vpop.f32.mrf.mxu2  ;;  %v3260_v45 = vpop.f32.mrf.mxu3 }
 0xc52   : > { %v3178_v44 = vpop.f32.mrf.mxu1 }
 0xc53   : > { %v3199_v46 = vadd.f32 %v3198_v43, %v3178_v44  ;;  %v3373_v44 = vld [vmem:[%s5090_s0 + $0x40] sm:$0xff] }
 0xc54   : > { %3450 = vmatpush.msrb.mxu1 %v3373_v44 }
 0xc55   : > { %v3263_v48 = vadd.f32 %v3260_v45, %v3199_v46 }
 0xc57   : > { %v4958_v49 = vadd.f32 %v4135_v47, %v3263_v48  ;;  %v3372_v47 = vld [vmem:[%s5090_s0 + $0x38] sm:$0xff] }
 0xc58   : > { %3451 = vmatpush.msrb.mxu1 %v3372_v47 }
 0xc59   : > { %v3268_v50 = vsel %vm2411_vm9, %v4958_v49, 0.0  ;;  %v3279_v51 = vmul.f32 %v4958_v49, %v4958_v49 }
 0xc5a   : > { %3269 = vadd.xlane.f32.xlu2 %v3268_v50  ;;  %v3371_v50 = vld [vmem:[%s5090_s0 + $0x30] sm:$0xff] }
 0xc5b   : > { %v3280_v52 = vsel %vm2411_vm9, %v3279_v51, 0.0  ;;  %3452 = vmatpush.msrb.mxu1 %v3371_v50 }
 0xc62   : > { %3281 = vadd.xlane.f32.xlu2 %v3280_v52 }
 0xccd   : > { %v3270_v53 = vpop.xlane.xlu2 %3269 }
 0xcce   : > { %v3271_v55 = vrot.slane %v3270_v53, 4 }
 0xcd0   : > { %v3272_v56 = vadd.f32 %v3271_v55, %v3270_v53  ;;  %v4058_v55 = vld [vmem:[%s5090_s0 + $0x178] sm:$0xff] }
 0xcd2   : > { %v3273_v57 = vrot.slane %v3272_v56, 2 }
 0xcd4   : > { %v3274_v58 = vadd.f32 %v3273_v57, %v3272_v56  ;;  %v4039_v56 = vld [vmem:[%s5090_s0 + $0xf8] sm:$0xff]  ;;  %v3370_v57 = vld [vmem:[%s5090_s0 + $0x28] sm:$0xff] }
 0xcd5   : > { %v3282_v60 = vpop.xlane.xlu2 %3281  ;;  %3453 = vmatpush.msrb.mxu1 %v3370_v57 }
 0xcd6   : > { %v3283_v61 = vrot.slane %v3282_v60, 4  ;;  %v3275_v62 = vrot.slane %v3274_v58, 1 }
 0xcd8   : > { %v3284_v63 = vadd.f32 %v3283_v61, %v3282_v60  ;;  %v3276_v0 = vadd.f32 %v3275_v62, %v3274_v58  ;;  %v4057_v58 = vld [vmem:[%s5090_s0 + $0x170] sm:$0xff]  ;;  %v4056_v61 = vld [vmem:[%s5090_s0 + $0x168] sm:$0xff] }
 0xcd9   : > { %v4038_v60 = vld [vmem:[%s5090_s0 + $0xf0] sm:$0xff]  ;;  %v4037_v62 = vld [vmem:[%s5090_s0 + $0xe8] sm:$0xff] }
 0xcda   : > { %v3285_v1 = vrot.slane %v3284_v63, 2  ;;  %4072 = vpush %v3276_v0  ;;  %v4036_v0 = vld [vmem:[%s5090_s0 + $0xe0] sm:$0xff] }
 0xcdc   : > { %v3286_v2 = vadd.f32 %v3285_v1, %v3284_v63  ;;  %v4055_v63 = vld [vmem:[%s5090_s0 + $0x160] sm:$0xff] }
 0xcde   : > { %v3287_v3 = vrot.slane %v3286_v2, 1 }
 0xce0   : > { %v3288_v4 = vadd.f32 %v3287_v3, %v3286_v2  ;;  %v4054_v2 = vld [vmem:[%s5090_s0 + $0x158] sm:$0xff] }
 0xce1   : > { %v4035_v3 = vld [vmem:[%s5090_s0 + $0xd8] sm:$0xff] }
 0xce2   : > { %4074 = vpush %v3288_v4  ;;  %v4053_v4 = vld [vmem:[%s5090_s0 + $0x150] sm:$0xff] }
 0xd0b   : > { %s4073_s18 = spop %4072 }
 0xd0c   : > { %v3278_v59 = vstv %s4073_s18  ;;  %s5092_s18 = sld [smem:[#allocation18_spill]] }
 0xd0d   : > { %v3291_v5 = vmul.f32 %v3278_v59, %v4805_v18  ;;  %v4034_v59 = vld [vmem:[%s5090_s0 + $0xd0] sm:$0xff] }
 0xd0f   : > { %v3292_v6 = vmul.f32 512.0, %v3291_v5  ;;  %v3309_v40 = vsub.f32 %v4958_v49, %v3291_v5 }
 0xd11   : > { %v3293_v7 = vmul.f32 %v3292_v6, %v3291_v5  ;;  %v4052_v5 = vld [vmem:[%s5090_s0 + $0x148] sm:$0xff] }
 0xd12   : > { %v4137_v46 = vld [vmem:[%s5092_s18] ss:$0 sm:$0xff]  ;;  %v4033_v6 = vld [vmem:[%s5090_s0 + $0xc8] sm:$0xff] }
 0xd13   : > { %s4075_s26 = spop %4074 }
 0xd14   : > { %v3290_v9 = vstv %s4075_s26  ;;  %s5093_s26 = sld [smem:[#allocation19_spill]] }
 0xd15   : > { %v3294_v11 = vsub.f32 %v3290_v9, %v3293_v7  ;;  %v4051_v7 = vld [vmem:[%s5090_s0 + $0x140] sm:$0xff] }
 0xd16   : > { %v4032_v9 = vld [vmem:[%s5090_s0 + $0xc0] sm:$0xff] }
 0xd17   : > { %v3295_v54 = vmax.f32 %v3294_v11, 0.0  ;;  %v4050_v11 = vld [vmem:[%s5090_s0 + $0x138] sm:$0xff] }
 0xd19   : > { %v3296_v12 = vmul.f32 %v3295_v54, %v4812_v28  ;;  %v4031_v54 = vld [vmem:[%s5090_s0 + $0xb8] sm:$0xff] }
 0xd1a   : > { %v4040_v52 = vld [vmem:[%s5093_s26 + $0x8] sm:$0xf]  ;;  %v3338_v53 = vld [vmem:[%s5093_s26] sm:$0xf]  ;;  %v4021_v1 = vld [vmem:[%s5093_s26 + $0x4] sm:$0xf] }
 0xd1b   : > { %4159 = vrsqrt.f32 %v3296_v12  ;;  %vm3304_vm15 = vcmp.eq.f32.partialorder %v3296_v12, inf  ;;  %v3307_v20 = vand.u32 2147483648, %v3296_v12  ;;  %vm3306_vm0 = vcmp.eq.f32.partialorder %v3296_v12, 0.0 }
 0xd21   : > { %v4160_v13 = vpop.eup %4159 }
 0xd22   : > { %v3298_v14 = vmul.f32 %v4160_v13, %v3296_v12 }
 0xd24   : > { %v3299_v8 = vmul.f32 %v4160_v13, %v3298_v14  ;;  %v4048_v14 = vld [vmem:[%s5090_s0 + $0x128] sm:$0xff] }
 0xd26   : > { %v3300_v15 = vmul.f32 0.5, %v3299_v8  ;;  %v4029_v8 = vld [vmem:[%s5090_s0 + $0xa8] sm:$0xff] }
 0xd28   : > { %v3301_v16 = vsub.f32 1.5, %v3300_v15  ;;  %v4047_v15 = vld [vmem:[%s5090_s0 + $0x120] sm:$0xff] }
 0xd2a   : > { %v3302_v17 = vmul.f32 %v4160_v13, %v3301_v16  ;;  %v4030_v13 = vld [vmem:[%s5090_s0 + $0xb0] sm:$0xff]  ;;  %v4046_v16 = vld [vmem:[%s5090_s0 + $0x118] sm:$0xff] }
 0xd2c   : > { %v3303_v19 = vmul.f32 %v3302_v17, %v3296_v12  ;;  %v3369_v17 = vld [vmem:[%s5090_s0 + $0x20] sm:$0xff] }
 0xd2d   : > { %3454 = vmatpush.msrb.mxu1 %v3369_v17 }
 0xd2e   : > { %v3305_v21 = vsel %vm3304_vm15, %v3296_v12, %v3303_v19  ;;  %v4049_v12 = vld [vmem:[%s5090_s0 + $0x130] sm:$0xff]  ;;  %v3368_v19 = vld [vmem:[%s5090_s0 + $0x18] sm:$0xff] }
 0xd2f   : > { %v3308_v22 = vsel %vm3306_vm0, %v3307_v20, %v3305_v21  ;;  %3455 = vmatpush.msrb.mxu1 %v3368_v19  ;;  %v3367_v20 = vld [vmem:[%s5090_s0 + $0x10] sm:$0xff]  ;;  %v4028_v21 = vld [vmem:[%s5090_s0 + $0xa0] sm:$0xff] }
 0xd30   : > { %v3310_v23 = vadd.f32 1e-05, %v3308_v22  ;;  %v3366_v22 = vld [vmem:[%s5090_s0 + $0x8] sm:$0xff] }
 0xd31   : > { %3456 = vmatpush.msrb.mxu1 %v3367_v20 }
 0xd32   : > { %4161 = vrcp.f32 %v3310_v23  ;;  %v3322_v32 = vand.u32 2147483648, %v3310_v23  ;;  %v3320_v35 = vand.u32 2147483647, %v3310_v23  ;;  %vm3316_vm2 = vweird.f32 %v3310_v23 }
 0xd33   : > { %3457 = vmatpush.msrb.mxu1 %v3366_v22 }
 0xd34   : > { %v3323_v38 = vor.u32 1.1754944e-38, %v3322_v32  ;;  %vm3321_vm4 = vcmp.eq.f32.partialorder %v3320_v35, 8.507059e+37 }
 0xd35   : > { %3458 = vmatpush.msrb.mxu1 %v3365_v27  ;;  %v4140_v27 = vld [vmem:[%s4396_s20] ss:$0 sm:$0xff] }
 0xd38   : > { %v4162_v26 = vpop.eup %4161 }
 0xd39   : > { %v3312_v29 = vmul.f32 %v4162_v26, %v3310_v23  ;;  %vm3317_vm1 = vweird.f32 %v4162_v26  ;;  %v4045_v23 = vld [vmem:[%s5090_s0 + $0x110] sm:$0xff] }
 0xd3a   : > { %vm3318_vm3 = vmor %vm3316_vm2, %vm3317_vm1 }
 0xd3b   : > { %v3313_v31 = vsub.f32 1.0, %v3312_v29  ;;  %v4043_v29 = vld [vmem:[%s5090_s0 + $0x100] sm:$0xff] }
 0xd3d   : > { %v3314_v34 = vmul.f32 %v4162_v26, %v3313_v31  ;;  %v4024_v31 = vld [vmem:[%s5090_s0 + $0x80] sm:$0xff] }
 0xd3f   : > { %v3315_v37 = vadd.f32 %v4162_v26, %v3314_v34 }
 0xd41   : > { %v3319_v41 = vsel %vm3318_vm3, %v4162_v26, %v3315_v37  ;;  %v4026_v26 = vld [vmem:[%s5090_s0 + $0x90] sm:$0xff] }
 0xd42   : > { %v3324_v43 = vsel %vm3321_vm4, %v3323_v38, %v3319_v41  ;;  %v4138_v38 = vld [vmem:[%s4386_s4] ss:$0 sm:$0xff] }
 0xd43   : > { %v3325_v45 = vmul.f32 %v3324_v43, %v3309_v40 }
 0xd45   : > { %v3329_v48 = vmul.f32 %v4136_v42, %v3325_v45 }
 0xd47   : > { %v3333_v49 = vadd.f32 %v4137_v46, %v3329_v48 }
 0xd49   : > { %v3334_v51 = vmax.f32 %v3333_v49, 0.0 }
 0xd4b   : > { %4019 = vmatpush.msk.msrb.mxu0 %vm2411_vm9, %v3334_v51  ;;  %4041 = vmatpush.msk.msrb.mxu2 %vm2411_vm9, %v3334_v51 }
 0xd4c   : > { %4042 = vmatmul.msk.f32.vlgmr.msrb.gmra.mxu2 %vm2538_vm14, %v4040_v52  ;;  %4020 = vmatmul.msk.f32.vlgmr.msrb.gmra.mxu0 %vm2538_vm14, %v3338_v53 }
 0xd4d   : > { %4022 = vmatpush.msk.msra.mxu0 %vm2411_vm9, %v3334_v51  ;;  %3505 = vmatpush.msra.mxu2 %v4058_v55 }
 0xd4f   : > { %3423 = vmatpush.msrb.mxu0 %v4039_v56  ;;  %3506 = vmatpush.msra.mxu2 %v4057_v58 }
 0xd51   : > { %3424 = vmatpush.msrb.mxu0 %v4038_v60  ;;  %3507 = vmatpush.msra.mxu2 %v4056_v61 }
 0xd53   : > { %3425 = vmatpush.msrb.mxu0 %v4037_v62  ;;  %3508 = vmatpush.msra.mxu2 %v4055_v63 }
 0xd54   : > { %4023 = vmatmul.msk.f32.vlgmr.msra.gmra.mxu0 %vm2538_vm14, %v4021_v1 }
 0xd55   : > { %3426 = vmatpush.msrb.mxu0 %v4036_v0  ;;  %3509 = vmatpush.msra.mxu2 %v4054_v2 }
 0xd57   : > { %3427 = vmatpush.msrb.mxu0 %v4035_v3  ;;  %3510 = vmatpush.msra.mxu2 %v4053_v4 }
 0xd59   : > { %3428 = vmatpush.msrb.mxu0 %v4034_v59  ;;  %3511 = vmatpush.msra.mxu2 %v4052_v5 }
 0xd5b   : > { %3429 = vmatpush.msrb.mxu0 %v4033_v6  ;;  %3512 = vmatpush.msra.mxu2 %v4051_v7 }
 0xd5d   : > { %3430 = vmatpush.msrb.mxu0 %v4032_v9  ;;  %3513 = vmatpush.msra.mxu2 %v4050_v11 }
 0xd5f   : > { %3431 = vmatpush.msrb.mxu0 %v4031_v54  ;;  %3514 = vmatpush.msra.mxu2 %v4049_v12 }
 0xd61   : > { %3432 = vmatpush.msrb.mxu0 %v4030_v13  ;;  %3515 = vmatpush.msra.mxu2 %v4048_v14 }
 0xd63   : > { %3433 = vmatpush.msrb.mxu0 %v4029_v8  ;;  %3516 = vmatpush.msra.mxu2 %v4047_v15 }
 0xd65   : > { %3517 = vmatpush.msra.mxu2 %v4046_v16  ;;  %3434 = vmatpush.msrb.mxu0 %v4028_v21 }
 0xd67   : > { %3518 = vmatpush.msra.mxu2 %v4045_v23  ;;  %3435 = vmatpush.msrb.mxu0 %v4027_v24  ;;  %v4139_v24 = vld [vmem:[%s4391_s6] ss:$0 sm:$0xff] }
 0xd69   : > { %3519 = vmatpush.msra.mxu2 %v4044_v25  ;;  %3436 = vmatpush.msrb.mxu0 %v4026_v26 }
 0xd6b   : > { %3520 = vmatpush.msra.mxu2 %v4043_v29  ;;  %3437 = vmatpush.msrb.mxu0 %v4025_v30 }
 0xd6d   : > { %3438 = vmatpush.msrb.mxu0 %v4024_v31 }
 0xdc9   : > { %v3362_v32 = vpop.f32.mrf.mxu0 }
 0xdca   : > { %3459 = vmatmul.f32.vlgmr.msrb.gmra.mxu1 %v3362_v32 }
 0xdcf   : > { %v3485_v33 = vpop.f32.mrf.mxu2 }
 0xdd0   : > { %3521 = vmatmul.f32.vlgmr.msra.gmra.mxu2 %v3485_v33 }
 0xdd1   : > { %v3403_v34 = vpop.f32.mrf.mxu0 }
 0xdd2   : > { %3439 = vmatmul.f32.vlgmr.msrb.gmra.mxu0 %v3403_v34 }
 0xe47   : > { %v3460_v36 = vpop.f32.mrf.mxu1 }
 0xe4f   : > { %v3440_v35 = vpop.f32.mrf.mxu0 }
 0xe50   : > { %v3461_v37 = vadd.f32 %v3460_v36, %v3440_v35 }
 0xe53   : > { %v3522_v39 = vpop.f32.mrf.mxu2 }
 0xe54   : > { %v3525_v40 = vadd.f32 %v3522_v39, %v3461_v37 }
 0xe56   : > { %v5028_v41 = vadd.f32 %v4138_v38, %v3525_v40 }
 0xe58   : > { %v3530_v42 = vsel %vm2411_vm9, %v5028_v41, 0.0  ;;  %v3541_v43 = vmul.f32 %v5028_v41, %v5028_v41 }
 0xe59   : > { %3531 = vadd.xlane.f32.xlu0 %v3530_v42 }
 0xe5a   : > { %v3542_v44 = vsel %vm2411_vm9, %v3541_v43, 0.0 }
 0xe5b   : > { %3543 = vadd.xlane.f32.xlu1 %v3542_v44 }
 0xecc   : > { %v3532_v45 = vpop.xlane.xlu0 %3531 }
 0xecd   : > { %v3533_v46 = vrot.slane %v3532_v45, 4 }
 0xece   : > { %v3544_v47 = vpop.xlane.xlu1 %3543 }
 0xecf   : > { %v3534_v48 = vadd.f32 %v3533_v46, %v3532_v45  ;;  %v3545_v50 = vrot.slane %v3544_v47, 4 }
 0xed1   : > { %v3535_v49 = vrot.slane %v3534_v48, 2  ;;  %v3546_v51 = vadd.f32 %v3545_v50, %v3544_v47 }
 0xed3   : > { %v3536_v52 = vadd.f32 %v3535_v49, %v3534_v48  ;;  %v3547_v53 = vrot.slane %v3546_v51, 2 }
 0xed5   : > { %v3548_v55 = vadd.f32 %v3547_v53, %v3546_v51  ;;  %v3537_v56 = vrot.slane %v3536_v52, 1 }
 0xed7   : > { %v3538_v57 = vadd.f32 %v3537_v56, %v3536_v52  ;;  %v3549_v58 = vrot.slane %v3548_v55, 1 }
 0xed9   : > { %4076 = vpush %v3538_v57  ;;  %v3550_v60 = vadd.f32 %v3549_v58, %v3548_v55 }
 0xedb   : > { %4078 = vpush %v3550_v60 }
 0xf0a   : > { %s4077_s16 = spop %4076 }
 0xf0b   : > { %v3540_v61 = vstv %s4077_s16  ;;  %s3694_s16 = sshll.u32 %s5095_s1, 2 }
 0xf0c   : > { %v3553_v62 = vmul.f32 %v3540_v61, %v4805_v18  ;;  %s4079_s18 = spop %4078 }
 0xf0d   : > { %v3552_v1 = vstv %s4079_s18  ;;  %s1096_s18 = scalar_lea.vmem %s4401_s27, %s3694_s16 }
 0xf0e   : > { %v3554_v63 = vmul.f32 512.0, %v3553_v62  ;;  %v3571_v22 = vsub.f32 %v5028_v41, %v3553_v62 }
 0xf10   : > { %v3555_v0 = vmul.f32 %v3554_v63, %v3553_v62 }
 0xf12   : > { %v3556_v2 = vsub.f32 %v3552_v1, %v3555_v0 }
 0xf14   : > { %v3557_v3 = vmax.f32 %v3556_v2, 0.0 }
 0xf16   : > { %v3558_v4 = vmul.f32 %v3557_v3, %v4812_v28 }
 0xf18   : > { %4163 = vrsqrt.f32 %v3558_v4  ;;  %vm3566_vm9 = vcmp.eq.f32.partialorder %v3558_v4, inf  ;;  %v3569_v12 = vand.u32 2147483648, %v3558_v4  ;;  %vm3568_vm14 = vcmp.eq.f32.partialorder %v3558_v4, 0.0 }
 0xf1e   : > { %v4164_v59 = vpop.eup %4163 }
 0xf1f   : > { %v3560_v5 = vmul.f32 %v4164_v59, %v3558_v4 }
 0xf21   : > { %v3561_v6 = vmul.f32 %v4164_v59, %v3560_v5 }
 0xf23   : > { %v3562_v7 = vmul.f32 0.5, %v3561_v6 }
 0xf25   : > { %v3563_v9 = vsub.f32 1.5, %v3562_v7 }
 0xf27   : > { %v3564_v11 = vmul.f32 %v4164_v59, %v3563_v9 }
 0xf29   : > { %v3565_v54 = vmul.f32 %v3564_v11, %v3558_v4 }
 0xf2b   : > { %v3567_v13 = vsel %vm3566_vm9, %v3558_v4, %v3565_v54 }
 0xf2c   : > { %v3570_v18 = vsel %vm3568_vm14, %v3569_v12, %v3567_v13 }
 0xf2d   : > { %v3572_v14 = vadd.f32 1e-05, %v3570_v18 }
 0xf2f   : > { %4165 = vrcp.f32 %v3572_v14  ;;  %v3584_v16 = vand.u32 2147483648, %v3572_v14  ;;  %v3582_v19 = vand.u32 2147483647, %v3572_v14  ;;  %vm3578_vm6 = vweird.f32 %v3572_v14 }
 0xf31   : > { %v3585_v21 = vor.u32 1.1754944e-38, %v3584_v16  ;;  %vm3583_vm8 = vcmp.eq.f32.partialorder %v3582_v19, 8.507059e+37 }
 0xf35   : > { %v4166_v8 = vpop.eup %4165 }
 0xf36   : > { %v3574_v15 = vmul.f32 %v4166_v8, %v3572_v14  ;;  %vm3579_vm5 = vweird.f32 %v4166_v8 }
 0xf37   : > { %vm3580_vm7 = vmor %vm3578_vm6, %vm3579_vm5 }
 0xf38   : > { %v3575_v28 = vsub.f32 1.0, %v3574_v15 }
 0xf3a   : > { %v3576_v17 = vmul.f32 %v4166_v8, %v3575_v28 }
 0xf3c   : > { %v3577_v20 = vadd.f32 %v4166_v8, %v3576_v17 }
 0xf3e   : > { %v3581_v23 = vsel %vm3580_vm7, %v4166_v8, %v3577_v20 }
 0xf3f   : > { %v3586_v25 = vsel %vm3583_vm8, %v3585_v21, %v3581_v23 }
 0xf40   : > { %v3587_v26 = vmul.f32 %v3586_v25, %v3571_v22 }
 0xf42   : > { %v3591_v29 = vmul.f32 %v4139_v24, %v3587_v26 }
 0xf44   : > { %v3595_v30 = vadd.f32 %v4140_v27, %v3591_v29 }
 0xf46   : > { %v3596_v31 = vadd.f32 %v3595_v30, %v4917_v10 }
 0xf48   : > { %3597 = vst [vmem:[%s1096_s18] sm:$0xf] %v3596_v31 }
 0xf49 PF: > { %s83_s28 = sadd.s32 1, %s4173_s28  }
 0xf4a   : > { %p80_p4 = scmp.ge.s32.totalorder %s83_s28, 4  }
 0xf4c   :  { %82 = sbr.rel (!%p80_p4) target bundleno = 61 (0x3d), region = 270 }

</bundles_post_ra>
